<compile_context>
chip_gen: v6e
topology: v6e:2x2x1
jax: 0.10.0
libtpu: 0.0.40
codegen_flags: <defaults>
</compile_context>

<pallas_src>
import jax
import jax.numpy as jnp
from jax.experimental import pallas as pl
from jax.experimental.pallas import tpu as pltpu


_PACK = 128                      # samples packed per lane-dense row
_VMEM_LIMIT = 40 << 20           # explicit scoped-VMEM limit (< v7x 64 MiB physical)
_VMEM_BUDGET = 36 << 20          # target footprint, leaves compiler headroom


def _logreg_mxu_exact_kernel(b_ref, x_ref, wh_ref, wl_ref, o_ref):
    """Lane-packed logistic regression, f32-faithful (3 MXU passes).

    b_ref : SMEM (1,)        bias (scalar prefetch)
    x_ref : (tb, 128*F)      128 samples per row (free reshape of (128*tb, F))
    wh_ref: (128*F, 128)     block-diag weight, bf16-exact high part (f32)
    wl_ref: (128*F, 128)     block-diag weight, residual low part (f32)
    o_ref : (tb, 128)        lane-dense sigmoid outputs
    """
    x = x_ref[...]
    xh = x.astype(jnp.bfloat16).astype(jnp.float32)   # bf16-exact high part
    xl = x - xh                                       # residual
    logits = (
        jnp.dot(xh, wh_ref[...], preferred_element_type=jnp.float32)
        + jnp.dot(xl, wh_ref[...], preferred_element_type=jnp.float32)
        + jnp.dot(xh, wl_ref[...], preferred_element_type=jnp.float32)
    )
    o_ref[...] = jax.nn.sigmoid(logits + b_ref[0]).astype(o_ref.dtype)


def _logreg_mxu_fast_kernel(b_ref, x_ref, w_ref, o_ref):
    """Lane-packed logistic regression, single MXU pass (default precision)."""
    logits = jnp.dot(x_ref[...], w_ref[...], preferred_element_type=jnp.float32)
    o_ref[...] = jax.nn.sigmoid(logits + b_ref[0]).astype(o_ref.dtype)


def _logreg_vpu_kernel(b_ref, x_ref, w_ref, o_ref):
    """Large-F fallback: exact f32 VPU multiply + full-lane-axis reduction."""
    s = jnp.sum(x_ref[...] * w_ref[...], axis=-1, keepdims=True) + b_ref[0]
    o_ref[...] = jax.nn.sigmoid(s).astype(o_ref.dtype)


def _round_down8(v):
    return max(8, (v // 8) * 8)


def logistic_regression(x, weight, bias, *, vmem_block_bytes=6 << 20, exact=True):
    """Pallas equivalent of torch.sigmoid(nn.Linear(F, 1)(x)).

    x: (B, F), weight: (1, F) (PyTorch Linear layout), bias: (1,).
    Returns (B, 1) in x.dtype.
    """
    B, F = x.shape
    dtype = x.dtype
    itemsize = x.dtype.itemsize
    w_row = jnp.asarray(weight).reshape(1, F).astype(dtype)
    b_vec = jnp.asarray(bias).reshape(1).astype(jnp.float32)

    compiler_params = pltpu.CompilerParams(
        dimension_semantics=("parallel",),       # v7x: shard batch tiles over 2 TCs
        vmem_limit_bytes=_VMEM_LIMIT,
    )

    if F <= 128:
        # ---- Lane-packed MXU path -------------------------------------------
        B_pad = ((B + _PACK - 1) // _PACK) * _PACK
        x_p = x if B_pad == B else jnp.pad(x, ((0, B_pad - B), (0, 0)))
        R = B_pad // _PACK
        lanes = _PACK * F
        x_p = x_p.reshape(R, lanes)              # free row-major reshape

        # Block-diagonal weight: column c holds the F weights of packed sample c.
        w_bd = jnp.kron(jnp.eye(_PACK, dtype=dtype), w_row.reshape(F, 1))
        if exact:
            w_hi = w_bd.astype(jnp.bfloat16).astype(dtype)
            weights = (w_hi, (w_bd - w_hi).astype(dtype))
            kernel = _logreg_mxu_exact_kernel
        else:
            weights = (w_bd,)
            kernel = _logreg_mxu_fast_kernel

        # Batch tiling: ~vmem_block_bytes of x per block, >=4 pipeline steps
        # when there is enough work, shrunk if the VMEM footprint would not fit.
        row_bytes = lanes * itemsize
        tb = max(1, min(R, vmem_block_bytes // row_bytes))
        if tb < R:
            tb = _round_down8(tb)
            if pl.cdiv(R, tb) < 4 and R >= 32:
                tb = _round_down8(pl.cdiv(R, 4))

        def footprint(t):
            x_tile = t * lanes * itemsize
            w_tiles = 2 * len(weights) * lanes * _PACK * itemsize  # (conservative) 2x-buffered
            o_tile = t * _PACK * itemsize
            temps = 2 * x_tile if exact else 0                     # in-kernel hi/lo splits
            return 2 * x_tile + w_tiles + 2 * o_tile + temps

        while tb > 8 and footprint(tb) > _VMEM_BUDGET:
            tb = _round_down8(tb // 2)

        grid = (pl.cdiv(R, tb),)
        cost = pl.CostEstimate(
            flops=2 * B_pad * F * (3 if exact else 1),
            transcendentals=B_pad,
            bytes_accessed=(x_p.size + sum(w.size for w in weights) + R * _PACK)
            * itemsize,
        )

        w_spec = pl.BlockSpec((lanes, _PACK), lambda i, b: (0, 0))   # stays resident
        out = pl.pallas_call(
            kernel,
            out_shape=jax.ShapeDtypeStruct((R, _PACK), dtype),
            grid_spec=pltpu.PrefetchScalarGridSpec(
                num_scalar_prefetch=1,                               # bias -> SMEM
                grid=grid,
                in_specs=[pl.BlockSpec((tb, lanes), lambda i, b: (i, 0))]
                + [w_spec] * len(weights),
                out_specs=pl.BlockSpec((tb, _PACK), lambda i, b: (i, 0)),  # lane-dense
            ),
            compiler_params=compiler_params,
            cost_estimate=cost,
        )(b_vec, x_p, *weights)

        # (R, 128) -> (B_pad, 1) is a free row-major reshape; drop padded rows.
        return out.reshape(B_pad, 1)[:B]

    # ---- Large-F fallback (F > 128): exact streamed VPU/XLU GEMV -------------
    # TODO(synk): add K-tiling (feature-chunk accumulator) for F so large that
    # a single (tb, F) block cannot fit in VMEM.
    row_bytes = F * itemsize
    tb = max(1, min(B, vmem_block_bytes // row_bytes))
    if tb < B:
        tb = _round_down8(tb)
    while tb > 8 and 3 * tb * row_bytes > _VMEM_BUDGET:
        tb = _round_down8(tb // 2)
    B_pad = pl.cdiv(B, tb) * tb                  # pad so batch tiles divide evenly
    x_p = x if B_pad == B else jnp.pad(x, ((0, B_pad - B), (0, 0)))
    grid = (B_pad // tb,)

    cost = pl.CostEstimate(
        flops=2 * B_pad * F,
        transcendentals=B_pad,
        bytes_accessed=(B_pad * F + F + B_pad) * itemsize,
    )
    out = pl.pallas_call(
        _logreg_vpu_kernel,
        out_shape=jax.ShapeDtypeStruct((B_pad, 1), dtype),
        grid_spec=pltpu.PrefetchScalarGridSpec(
            num_scalar_prefetch=1,
            grid=grid,
            in_specs=[
                pl.BlockSpec((tb, F), lambda i, b: (i, 0)),
                pl.BlockSpec((1, F), lambda i, b: (0, 0)),
            ],
            out_specs=pl.BlockSpec((tb, 1), lambda i, b: (i, 0)),
        ),
        compiler_params=compiler_params,
        cost_estimate=cost,
    )(b_vec, x_p, w_row)
    return out[:B]


if __name__ == "__main__":
    key = jax.random.PRNGKey(0)

    def init_linear(k, n_features):
        # Mimic nn.Linear(F, 1) init: U(-1/sqrt(F), 1/sqrt(F)).
        kw, kb = jax.random.split(k)
        bound = 1.0 / (n_features ** 0.5)
        w = jax.random.uniform(kw, (1, n_features), minval=-bound, maxval=bound,
                               dtype=jnp.float32)
        b = jax.random.uniform(kb, (1,), minval=-bound, maxval=bound,
                               dtype=jnp.float32)
        return w, b

    def reference(x, w, b):
        # Exact f32 reference (pure VPU math, no MXU truncation).
        return jax.nn.sigmoid(jnp.sum(x * w, axis=-1, keepdims=True) + b)

    def check(y, y_ref):
        assert y.shape == y_ref.shape, (y.shape, y_ref.shape)
        err = float(jnp.max(jnp.abs(y - y_ref)))
        assert err < 5e-5, f"max abs err {err}"

    # 1) Spec-sized case: batch=8, n_input_features=32 (single lane-dense tile).
    k0, k1, key = jax.random.split(key, 3)
    x = jax.random.normal(k0, (8, 32), dtype=jnp.float32)
    w, b = init_linear(k1, 32)
    y = jax.block_until_ready(logistic_regression(x, w, b))
    check(y, reference(x, w, b))

    # 2) Multi-tile pipelined path: 3072 samples -> 3 lane-packed batch tiles.
    k0, k1, key = jax.random.split(key, 3)
    x = jax.random.normal(k0, (3072, 32), dtype=jnp.float32)
    w, b = init_linear(k1, 32)
    y = jax.block_until_ready(logistic_regression(x, w, b, vmem_block_bytes=1 << 17))
    check(y, reference(x, w, b))

    # 3) Large-F fallback path (F > 128).
    k0, k1, key = jax.random.split(key, 3)
    x = jax.random.normal(k0, (64, 256), dtype=jnp.float32)
    w, b = init_linear(k1, 256)
    y = jax.block_until_ready(logistic_regression(x, w, b))
    check(y, reference(x, w, b))

    print("KERNEL_OK")
</pallas_src>

<mosaic_0001>
module attributes {stable_mosaic.version = 11 : i64} {
  func.func @_logreg_mxu_exact_kernel(%arg0: i32, %arg1: memref<1xf32, #tpu.memory_space<smem>>, %arg2: memref<1x4096xf32, #tpu.memory_space<vmem>>, %arg3: memref<4096x128xf32, #tpu.memory_space<vmem>>, %arg4: memref<4096x128xf32, #tpu.memory_space<vmem>>, %arg5: memref<1x128xf32, #tpu.memory_space<vmem>>) attributes {dimension_semantics = [#tpu.dimension_semantics<parallel>], iteration_bounds = array<i64: 1>, scalar_prefetch = 1 : i64, scratch_operands = 0 : i64, tpu.core_type = #tpu.core_type<tc>, window_params = [{transform_indices = @transform_0, window_bounds = array<i64: 1, 4096>}, {pipeline_mode = #tpu.pipeline_mode<synchronous>, transform_indices = @transform_1, window_bounds = array<i64: 4096, 128>}, {pipeline_mode = #tpu.pipeline_mode<synchronous>, transform_indices = @transform_2, window_bounds = array<i64: 4096, 128>}, {transform_indices = @transform_3, window_bounds = array<i64: 1, 128>}]} {
    %c0 = arith.constant 0 : index
    %c0_0 = arith.constant 0 : index
    %0 = vector.load %arg2[%c0, %c0_0] : memref<1x4096xf32, #tpu.memory_space<vmem>>, vector<1x4096xf32>
    %1 = arith.truncf %0 : vector<1x4096xf32> to vector<1x4096xbf16>
    %2 = arith.extf %1 : vector<1x4096xbf16> to vector<1x4096xf32>
    %3 = arith.subf %0, %2 : vector<1x4096xf32>
    %c0_1 = arith.constant 0 : index
    %c0_2 = arith.constant 0 : index
    %4 = vector.load %arg3[%c0_1, %c0_2] : memref<4096x128xf32, #tpu.memory_space<vmem>>, vector<4096x128xf32>
    %cst = arith.constant dense<0.000000e+00> : vector<1x128xf32>
    %5 = tpu.matmul %2, %4, %cst {dimension_numbers = #tpu.dot_dimension_numbers<[1], [0], [0], [1], [0, 0, 1, 1], [], []>} : vector<1x4096xf32>, vector<4096x128xf32>, vector<1x128xf32> -> vector<1x128xf32>
    %c0_3 = arith.constant 0 : index
    %c0_4 = arith.constant 0 : index
    %6 = vector.load %arg3[%c0_3, %c0_4] : memref<4096x128xf32, #tpu.memory_space<vmem>>, vector<4096x128xf32>
    %cst_5 = arith.constant dense<0.000000e+00> : vector<1x128xf32>
    %7 = tpu.matmul %3, %6, %cst_5 {dimension_numbers = #tpu.dot_dimension_numbers<[1], [0], [0], [1], [0, 0, 1, 1], [], []>} : vector<1x4096xf32>, vector<4096x128xf32>, vector<1x128xf32> -> vector<1x128xf32>
    %8 = arith.addf %5, %7 : vector<1x128xf32>
    %c0_6 = arith.constant 0 : index
    %c0_7 = arith.constant 0 : index
    %9 = vector.load %arg4[%c0_6, %c0_7] : memref<4096x128xf32, #tpu.memory_space<vmem>>, vector<4096x128xf32>
    %cst_8 = arith.constant dense<0.000000e+00> : vector<1x128xf32>
    %10 = tpu.matmul %2, %9, %cst_8 {dimension_numbers = #tpu.dot_dimension_numbers<[1], [0], [0], [1], [0, 0, 1, 1], [], []>} : vector<1x4096xf32>, vector<4096x128xf32>, vector<1x128xf32> -> vector<1x128xf32>
    %11 = arith.addf %8, %10 : vector<1x128xf32>
    %c0_9 = arith.constant 0 : index
    %12 = memref.load %arg1[%c0_9] : memref<1xf32, #tpu.memory_space<smem>>
    %13 = vector.broadcast %12 : f32 to vector<1x128xf32>
    %14 = arith.addf %11, %13 : vector<1x128xf32>
    %15 = arith.negf %14 : vector<1x128xf32>
    %16 = math.exp %15 : vector<1x128xf32>
    %cst_10 = arith.constant 1.000000e+00 : f32
    %17 = vector.broadcast %cst_10 : f32 to vector<1x128xf32>
    %18 = arith.addf %17, %16 : vector<1x128xf32>
    %19 = arith.divf %17, %18 : vector<1x128xf32>
    %c0_11 = arith.constant 0 : index
    %c0_12 = arith.constant 0 : index
    %20 = vector.load %arg5[%c0_11, %c0_12] : memref<1x128xf32, #tpu.memory_space<vmem>>, vector<1x128xf32>
    tpu.vector_store %arg5[%c0_11, %c0_12], %19 {strides = array<i32>} : memref<1x128xf32, #tpu.memory_space<vmem>>, vector<1x128xf32>,
    return
  }
  func.func @transform_0(%arg0: i32, %arg1: memref<1xf32, #tpu.memory_space<smem>>) -> (i32, i32) {
    %c0_i32 = arith.constant 0 : i32
    %c0_i32_0 = arith.constant 0 : i32
    return %arg0, %c0_i32 : i32, i32
  }
  func.func @transform_1(%arg0: i32, %arg1: memref<1xf32, #tpu.memory_space<smem>>) -> (i32, i32) {
    %c0_i32 = arith.constant 0 : i32
    %c0_i32_0 = arith.constant 0 : i32
    %c0_i32_1 = arith.constant 0 : i32
    return %c0_i32, %c0_i32_0 : i32, i32
  }
  func.func @transform_2(%arg0: i32, %arg1: memref<1xf32, #tpu.memory_space<smem>>) -> (i32, i32) {
    %c0_i32 = arith.constant 0 : i32
    %c0_i32_0 = arith.constant 0 : i32
    %c0_i32_1 = arith.constant 0 : i32
    return %c0_i32, %c0_i32_0 : i32, i32
  }
  func.func @transform_3(%arg0: i32, %arg1: memref<1xf32, #tpu.memory_space<smem>>) -> (i32, i32) {
    %c0_i32 = arith.constant 0 : i32
    %c0_i32_0 = arith.constant 0 : i32
    return %arg0, %c0_i32 : i32, i32
  }
}

</mosaic_0001>

<bundles_post_ra>
// kernel: tpu_custom_call.1
= control target key start
LH: loop header
LB: loop body
LE: loop exit
PB: predicated region body
PF: predicated region fallthrough
CT: control target
= control target key end

     0   :  { %10 = vsyncpa [#allocation5], 0  ;;  %s7885_s0 = inlined_call_operand.<no memory space> [shape: f32[1], index: 0, kind: input, shape index: {}]   ;;  %s7886_s1 = inlined_call_operand.hbm [shape: f32[1,4096], index: 1, kind: input, shape index: {}]   ;;  %s7887_s2 = inlined_call_operand.hbm [shape: f32[4096,128], index: 2, kind: input, shape index: {}]   ;;  %s7888_s3 = inlined_call_operand.hbm [shape: f32[4096,128], index: 3, kind: input, shape index: {}]   ;;  %s7889_s4 = inlined_call_operand.hbm [shape: f32[1,128], index: 4, kind: output, shape index: {}]  }
   0x1   :  { %11 = vsyncpa [#allocation8], 0 }
   0x2   :  { %12 = vsyncpa [#allocation6], 0  ;;  %s7389_s15 = smov [#allocation7]  }
   0x3   :  { %s28_s16 = sshll.u32 %s7389_s15, 4  ;;  %s29_s16 = int_to_ptr.vmem [resolvable:$true] %s28_s16 }
   0x4   :  { %s7311_s17 = scalar_lea.vmem %s29_s16, 65536  ;;  %p7316_p1 = scmp.lt.s32.totalorder %s29_s16, %s29_s16 }
   0x5   :  { %p7312_p0 = scmp.ne.s32.totalorder %s29_s16, %s7311_s17  ;;  %p7317_p2 = scmp.lt.s32.totalorder %s7311_s17, %s7311_s17 }
   0x7   :  { %p7318_p3 = por %p7317_p2, %p7316_p1 }
   0x9   :  { %p7319_p4 = pnand %p7318_p3, %p7312_p0 }
   0xb   :  { %7322 = shalt.err (!%p7319_p4)
}
   0xc   :  { %s7390_s18 = smov 128   ;;  %s7391_s19 = smov 8  }
   0xd   :  { %34 = dma.hbm_to_vmem [thread:$0]  %s7887_s2, 65536, %s29_s16, [#allocation8], %s7390_s18, %s7390_s18, %s7391_s19  }
   0xe   :  { %s7392_s22 = smov [#allocation4]   ;;  %s7393_s24 = smov [#allocation9]  }
   0xf   :  { %s19_s23 = sshll.u32 %s7392_s22, 4  ;;  %s40_s25 = sshll.u32 %s7393_s24, 4  ;;  %s20_s23 = int_to_ptr.vmem [resolvable:$true] %s19_s23  ;;  %s41_s25 = int_to_ptr.vmem [resolvable:$true] %s40_s25 }
  0x10   :  { %s7331_s26 = scalar_lea.vmem %s20_s23, 512  ;;  %p7336_p6 = scmp.lt.s32.totalorder %s20_s23, %s20_s23 }
  0x11   :  { %p7332_p5 = scmp.ne.s32.totalorder %s20_s23, %s7331_s26  ;;  %p7337_p7 = scmp.lt.s32.totalorder %s7331_s26, %s7331_s26 }
  0x13   :  { %p7338_p8 = por %p7337_p7, %p7336_p6 }
  0x15   :  { %p7339_p9 = pnand %p7338_p8, %p7332_p5 }
  0x17   :  { %7342 = shalt.err (!%p7339_p9)
}
  0x18   :  { %22 = dma.hbm_to_vmem [thread:$0]  %s7886_s1, 512, %s20_s23, [#allocation5]  }
  0x19   :  { %s7351_s29 = scalar_lea.vmem %s41_s25, 65536  ;;  %p7356_p11 = scmp.lt.s32.totalorder %s41_s25, %s41_s25 }
  0x1a   :  { %p7352_p10 = scmp.ne.s32.totalorder %s41_s25, %s7351_s29  ;;  %p7357_p12 = scmp.lt.s32.totalorder %s7351_s29, %s7351_s29 }
  0x1c   :  { %p7358_p13 = por %p7357_p12, %p7356_p11 }
  0x1e   :  { %p7359_p0 = pnand %p7358_p13, %p7352_p10 }
  0x20   :  { %7362 = shalt.err (!%p7359_p0)
}
  0x21   :  { %46 = dma.hbm_to_vmem [thread:$0]  %s7888_s3, 65536, %s41_s25, [#allocation8], %s7390_s18, %s7390_s18, %s7391_s19  }
  0x22   :  { %7383 = dma.done.wait [#allocation5], 512  }
  0x23   :  { %7384 = vsyncadd [#allocation5], 4294966784 }
  0x24   :  { %7385 = dma.done.wait [#allocation8], 131072  }
  0x25   :  { %7386 = vsyncadd [#allocation8], 4294836224  ;;  %v555_v0 = vld [vmem:[#allocation7 + $0xf8] sm:$0xff]  ;;  %v554_v4 = vld [vmem:[#allocation7 + $0xf0] sm:$0xff]  ;;  %v64_v26 = vlaneseq  ;;  %v7394_v33 = vmov 1966171168  }
  0x26   :  { %v587_v1 = vld [vmem:[#allocation7 + $0x1f8] sm:$0xff]  ;;  %5100 = vmatprep.subr.mxu0 %v555_v0  ;;  %v586_v5 = vld [vmem:[#allocation7 + $0x1f0] sm:$0xff]  ;;  %v553_v8 = vld [vmem:[#allocation7 + $0xe8] sm:$0xff]  ;;  %v325_v34 = vunpack.c.l.s4 %v7394_v33  ;;  %s7395_s5 = smov [#allocation10]  }
  0x27   :  { %v539_v2 = vld [vmem:[#allocation7 + $0x78] sm:$0xff]  ;;  %5135 = vmatprep.subr.mxu1 %v587_v1  ;;  %v538_v6 = vld [vmem:[#allocation7 + $0x70] sm:$0xff]  ;;  %v585_v9 = vld [vmem:[#allocation7 + $0x1e8] sm:$0xff]  ;;  %v65_v37 = vshrl.u32 %v64_v26, 7  ;;  %s5089_s6 = sshll.u32 %s7395_s5, 4  ;;  %s5090_s6 = int_to_ptr.vmem [resolvable:$true] %s5089_s6 }
  0x28   :  { %v571_v3 = vld [vmem:[#allocation7 + $0x178] sm:$0xff]  ;;  %5101 = vmatpush3.msra.mxu0 %v539_v2  ;;  %v570_v7 = vld [vmem:[#allocation7 + $0x170] sm:$0xff]  ;;  %v537_v10 = vld [vmem:[#allocation7 + $0x68] sm:$0xff]  ;;  %v326_v44 = vunpack.c.0.s8 %v325_v34  ;;  %s7363_s7 = scalar_lea.vmem %s5090_s6, 16  ;;  %s7367_s8 = scalar_lea.vmem %s5090_s6, 32 }
  0x29   :  { %5136 = vmatpush3.msra.mxu1 %v571_v3  ;;  %5102 = vmatprep.subr.mxu0 %v554_v4  ;;  %v569_v11 = vld [vmem:[#allocation7 + $0x168] sm:$0xff]  ;;  %v552_v12 = vld [vmem:[#allocation7 + $0xe0] sm:$0xff]  ;;  %v551_v16 = vld [vmem:[#allocation7 + $0xd8] sm:$0xff]  ;;  %v7430_v47 = vsub.s32 0, %v65_v37  ;;  %v7432_v48 = vsub.s32 1, %v65_v37  ;;  %v7434_v49 = vsub.s32 2, %v65_v37  ;;  %p7364_p1 = scmp.ne.s32.totalorder %s5090_s6, %s7363_s7  ;;  %p7368_p2 = scmp.lt.s32.totalorder %s5090_s6, %s5090_s6 }
  0x2a   :  { %5137 = vmatprep.subr.mxu1 %v586_v5  ;;  %5103 = vmatpush3.msra.mxu0 %v538_v6  ;;  %v584_v13 = vld [vmem:[#allocation7 + $0x1e0] sm:$0xff]  ;;  %v583_v17 = vld [vmem:[#allocation7 + $0x1d8] sm:$0xff]  ;;  %v550_v20 = vld [vmem:[#allocation7 + $0xd0] sm:$0xff]  ;;  %v7436_v52 = vsub.s32 3, %v65_v37  ;;  %v7438_v53 = vsub.s32 4, %v65_v37  ;;  %v7440_v54 = vsub.s32 5, %v65_v37  ;;  %v7448_v62 = vsub.s32 %v326_v44, %v65_v37  ;;  %p7369_p3 = scmp.lt.s32.totalorder %s7367_s8, %s7363_s7 }
  0x2b   :  { %5138 = vmatpush3.msra.mxu1 %v570_v7  ;;  %5104 = vmatprep.subr.mxu0 %v553_v8  ;;  %v536_v14 = vld [vmem:[#allocation7 + $0x60] sm:$0xff]  ;;  %v535_v18 = vld [vmem:[#allocation7 + $0x58] sm:$0xff]  ;;  %v582_v21 = vld [vmem:[#allocation7 + $0x1d0] sm:$0xff]  ;;  %v7442_v57 = vsub.s32 6, %v65_v37  ;;  %v7444_v58 = vsub.s32 7, %v65_v37 }
  0x2c   :  { %5139 = vmatprep.subr.mxu1 %v585_v9  ;;  %v568_v15 = vld [vmem:[#allocation7 + $0x160] sm:$0xff]  ;;  %5105 = vmatpush3.msra.mxu0 %v537_v10  ;;  %v567_v19 = vld [vmem:[#allocation7 + $0x158] sm:$0xff]  ;;  %v534_v22 = vld [vmem:[#allocation7 + $0x50] sm:$0xff]  ;;  %p7370_p4 = por %p7369_p3, %p7368_p2 }
  0x2d   :  { %5140 = vmatpush3.msra.mxu1 %v569_v11  ;;  %5106 = vmatprep.subr.mxu0 %v552_v12  ;;  %v566_v23 = vld [vmem:[#allocation7 + $0x150] sm:$0xff]  ;;  %v549_v24 = vld [vmem:[#allocation7 + $0xc8] sm:$0xff]  ;;  %v548_v29 = vld [vmem:[#allocation7 + $0xc0] sm:$0xff] }
  0x2e   :  { %5141 = vmatprep.subr.mxu1 %v584_v13  ;;  %5107 = vmatpush3.msra.mxu0 %v536_v14  ;;  %v581_v25 = vld [vmem:[#allocation7 + $0x1c8] sm:$0xff]  ;;  %v580_v30 = vld [vmem:[#allocation7 + $0x1c0] sm:$0xff]  ;;  %v547_v35 = vld [vmem:[#allocation7 + $0xb8] sm:$0xff]  ;;  %p7371_p5 = pnand %p7370_p4, %p7364_p1 }
  0x2f   :  { %5142 = vmatpush3.msra.mxu1 %v568_v15  ;;  %5108 = vmatprep.subr.mxu0 %v551_v16  ;;  %v533_v27 = vld [vmem:[#allocation7 + $0x48] sm:$0xff]  ;;  %v532_v31 = vld [vmem:[#allocation7 + $0x40] sm:$0xff]  ;;  %v579_v36 = vld [vmem:[#allocation7 + $0x1b8] sm:$0xff] }
  0x30   :  { %5143 = vmatprep.subr.mxu1 %v583_v17  ;;  %5109 = vmatpush3.msra.mxu0 %v535_v18  ;;  %v565_v28 = vld [vmem:[#allocation7 + $0x148] sm:$0xff]  ;;  %v564_v32 = vld [vmem:[#allocation7 + $0x140] sm:$0xff]  ;;  %v531_v38 = vld [vmem:[#allocation7 + $0x38] sm:$0xff] }
  0x31   :  { %5144 = vmatpush3.msra.mxu1 %v567_v19  ;;  %5110 = vmatprep.subr.mxu0 %v550_v20  ;;  %v563_v39 = vld [vmem:[#allocation7 + $0x138] sm:$0xff]  ;;  %v546_v40 = vld [vmem:[#allocation7 + $0xb0] sm:$0xff]  ;;  %v545_v45 = vld [vmem:[#allocation7 + $0xa8] sm:$0xff] }
  0x32   :  { %5145 = vmatprep.subr.mxu1 %v582_v21  ;;  %5111 = vmatpush3.msra.mxu0 %v534_v22  ;;  %v578_v41 = vld [vmem:[#allocation7 + $0x1b0] sm:$0xff]  ;;  %v577_v46 = vld [vmem:[#allocation7 + $0x1a8] sm:$0xff]  ;;  %v544_v55 = vld [vmem:[#allocation7 + $0xa0] sm:$0xff] }
  0x33   :  { %5146 = vmatpush3.msra.mxu1 %v566_v23  ;;  %5112 = vmatprep.subr.mxu0 %v549_v24  ;;  %v530_v42 = vld [vmem:[#allocation7 + $0x30] sm:$0xff]  ;;  %v529_v50 = vld [vmem:[#allocation7 + $0x28] sm:$0xff]  ;;  %v576_v56 = vld [vmem:[#allocation7 + $0x1a0] sm:$0xff] }
  0x34   :  { %5147 = vmatprep.subr.mxu1 %v581_v25  ;;  %5113 = vmatpush3.msra.mxu0 %v533_v27  ;;  %v562_v43 = vld [vmem:[#allocation7 + $0x130] sm:$0xff]  ;;  %v561_v51 = vld [vmem:[#allocation7 + $0x128] sm:$0xff]  ;;  %v528_v59 = vld [vmem:[#allocation7 + $0x20] sm:$0xff] }
  0x35   :  { %5148 = vmatpush3.msra.mxu1 %v565_v28  ;;  %5114 = vmatprep.subr.mxu0 %v548_v29  ;;  %v560_v60 = vld [vmem:[#allocation7 + $0x120] sm:$0xff]  ;;  %v543_v63 = vld [vmem:[#allocation7 + $0x98] sm:$0xff]  ;;  %v542_v9 = vld [vmem:[#allocation7 + $0x90] sm:$0xff] }
  0x36   :  { %5149 = vmatprep.subr.mxu1 %v580_v30  ;;  %5115 = vmatpush3.msra.mxu0 %v532_v31  ;;  %v7446_v61 = vld [vmem:[#allocation4] sm:$0xff]  ;;  %v575_v0 = vld [vmem:[#allocation7 + $0x198] sm:$0xff]  ;;  %v574_v10 = vld [vmem:[#allocation7 + $0x190] sm:$0xff] }
  0x37   :  { %5150 = vmatpush3.msra.mxu1 %v564_v32  ;;  %5116 = vmatprep.subr.mxu0 %v547_v35  ;;  %v67_v1 = vrot.slane %v7446_v61, %v7430_v47  ;;  %v71_v2 = vrot.slane %v7446_v61, %v7432_v48  ;;  %v75_v3 = vrot.slane %v7446_v61, %v7434_v49  ;;  %v527_v4 = vld [vmem:[#allocation7 + $0x18] sm:$0xff]  ;;  %v526_v14 = vld [vmem:[#allocation7 + $0x10] sm:$0xff]  ;;  %v541_v19 = vld [vmem:[#allocation7 + $0x88] sm:$0xff] }
  0x38   :  { %5151 = vmatprep.subr.mxu1 %v579_v36  ;;  %5117 = vmatpush3.msra.mxu0 %v531_v38  ;;  %v559_v5 = vld [vmem:[#allocation7 + $0x118] sm:$0xff]  ;;  %v79_v6 = vrot.slane %v7446_v61, %v7436_v52  ;;  %v83_v7 = vrot.slane %v7446_v61, %v7438_v53  ;;  %v87_v8 = vrot.slane %v7446_v61, %v7440_v54  ;;  %v558_v15 = vld [vmem:[#allocation7 + $0x110] sm:$0xff]  ;;  %v573_v20 = vld [vmem:[#allocation7 + $0x188] sm:$0xff] }
  0x39   :  { %5152 = vmatpush3.msra.mxu1 %v563_v39  ;;  %5118 = vmatprep.subr.mxu0 %v546_v40  ;;  %v91_v11 = vrot.slane %v7446_v61, %v7442_v57  ;;  %v95_v12 = vrot.slane %v7446_v61, %v7444_v58  ;;  %v224_v13 = vpack.c.bf16 %v67_v1, %v67_v1  ;;  %v525_v25 = vld [vmem:[#allocation7 + $0x8] sm:$0xff]  ;;  %v540_v31 = vld [vmem:[#allocation7 + $0x80] sm:$0xff] }
  0x3a   :  { %5153 = vmatprep.subr.mxu1 %v578_v41  ;;  %5119 = vmatpush3.msra.mxu0 %v530_v42  ;;  %v225_v16 = vpack.c.bf16 %v71_v2, %v71_v2  ;;  %v226_v17 = vpack.c.bf16 %v75_v3, %v75_v3  ;;  %v227_v18 = vpack.c.bf16 %v79_v6, %v79_v6  ;;  %v557_v26 = vld [vmem:[#allocation7 + $0x108] sm:$0xff]  ;;  %v572_v32 = vld [vmem:[#allocation7 + $0x180] sm:$0xff]  ;;  %v619_v42 = vld [vmem:[#allocation7 + $0x2f8] sm:$0xff] }
  0x3b   :  { %5154 = vmatpush3.msra.mxu1 %v562_v43  ;;  %5120 = vmatprep.subr.mxu0 %v545_v45  ;;  %v228_v21 = vpack.c.bf16 %v83_v7, %v83_v7  ;;  %v229_v22 = vpack.c.bf16 %v87_v8, %v87_v8  ;;  %v230_v23 = vpack.c.bf16 %v91_v11, %v91_v11  ;;  %v7466_v24 = vunpack.c.l.bf16 %v224_v13  ;;  %v524_v36 = vld [vmem:[#allocation7] sm:$0xff]  ;;  %v651_v43 = vld [vmem:[#allocation7 + $0x3f8] sm:$0xff]  ;;  %v618_v7 = vld [vmem:[#allocation7 + $0x2f0] sm:$0xff] }
  0x3c   :  { %5155 = vmatprep.subr.mxu1 %v577_v46  ;;  %5121 = vmatpush3.msra.mxu0 %v529_v50  ;;  %v231_v27 = vpack.c.bf16 %v95_v12, %v95_v12  ;;  %v7468_v28 = vunpack.c.l.bf16 %v225_v16  ;;  %v7470_v29 = vunpack.c.l.bf16 %v226_v17  ;;  %v7472_v30 = vunpack.c.l.bf16 %v227_v18  ;;  %v556_v40 = vld [vmem:[#allocation7 + $0x100] sm:$0xff]  ;;  %v635_v6 = vld [vmem:[#allocation7 + $0x378] sm:$0xff]  ;;  %v650_v8 = vld [vmem:[#allocation7 + $0x3f0] sm:$0xff] }
  0x3d   :  { %5156 = vmatpush3.msra.mxu1 %v561_v51  ;;  %5122 = vmatprep.subr.mxu0 %v544_v55  ;;  %v7474_v33 = vunpack.c.l.bf16 %v228_v21  ;;  %v7476_v34 = vunpack.c.l.bf16 %v229_v22  ;;  %v7478_v35 = vunpack.c.l.bf16 %v230_v23  ;;  %v649_v11 = vld [vmem:[#allocation7 + $0x3e8] sm:$0xff]  ;;  %v600_v16 = vld [vmem:[#allocation7 + $0x260] sm:$0xff]  ;;  %v615_v18 = vld [vmem:[#allocation7 + $0x2d8] sm:$0xff] }
  0x3e   :  { %5157 = vmatprep.subr.mxu1 %v576_v56  ;;  %5123 = vmatpush3.msra.mxu0 %v528_v59  ;;  %v7480_v37 = vunpack.c.l.bf16 %v231_v27  ;;  %v320_v38 = vcombine.low %v7466_v24, %v7468_v28  ;;  %v321_v39 = vcombine.low %v7470_v29, %v7472_v30  ;;  %v601_v12 = vld [vmem:[#allocation7 + $0x268] sm:$0xff]  ;;  %v632_v17 = vld [vmem:[#allocation7 + $0x360] sm:$0xff]  ;;  %v631_v21 = vld [vmem:[#allocation7 + $0x358] sm:$0xff] }
  0x3f   :  { %5158 = vmatpush3.msra.mxu1 %v560_v60  ;;  %5124 = vmatprep.subr.mxu0 %v543_v63  ;;  %v322_v41 = vcombine.low %v7474_v33, %v7476_v34  ;;  %v633_v13 = vld [vmem:[#allocation7 + $0x368] sm:$0xff]  ;;  %v614_v22 = vld [vmem:[#allocation7 + $0x2d0] sm:$0xff] }
  0x40   :  { %5159 = vmatprep.subr.mxu1 %v575_v0  ;;  %5125 = vmatpush3.msra.mxu0 %v527_v4  ;;  %v323_v44 = vcombine.low %v7478_v35, %v7480_v37  ;;  %v330_v45 = vrot.slane %v320_v38, %v7448_v62  ;;  %v337_v46 = vrot.slane %v321_v39, %v7448_v62  ;;  %v646_v23 = vld [vmem:[#allocation7 + $0x3d0] sm:$0xff]  ;;  %v613_v27 = vld [vmem:[#allocation7 + $0x2c8] sm:$0xff]  ;;  %v612_v38 = vld [vmem:[#allocation7 + $0x2c0] sm:$0xff] }
  0x41   :  { %5160 = vmatpush3.msra.mxu1 %v559_v5  ;;  %5126 = vmatprep.subr.mxu0 %v542_v9  ;;  %v344_v50 = vrot.slane %v322_v41, %v7448_v62  ;;  %v603_v5 = vld [vmem:[#allocation7 + $0x278] sm:$0xff]  ;;  %v634_v9 = vld [vmem:[#allocation7 + $0x370] sm:$0xff]  ;;  %v644_v39 = vld [vmem:[#allocation7 + $0x3c0] sm:$0xff] }
  0x42   :  { %5161 = vmatprep.subr.mxu1 %v574_v10  ;;  %5127 = vmatpush3.msra.mxu0 %v526_v14  ;;  %v351_v51 = vrot.slane %v323_v44, %v7448_v62  ;;  %v352_v55 = vcombine.low %v330_v45, %v337_v46  ;;  %v617_v10 = vld [vmem:[#allocation7 + $0x2e8] sm:$0xff]  ;;  %v616_v14 = vld [vmem:[#allocation7 + $0x2e0] sm:$0xff]  ;;  %v595_v44 = vld [vmem:[#allocation7 + $0x238] sm:$0xff] }
  0x43   :  { %5162 = vmatpush3.msra.mxu1 %v558_v15  ;;  %5128 = vmatprep.subr.mxu0 %v541_v19  ;;  %v648_v15 = vld [vmem:[#allocation7 + $0x3e0] sm:$0xff]  ;;  %v647_v19 = vld [vmem:[#allocation7 + $0x3d8] sm:$0xff]  ;;  %v610_v46 = vld [vmem:[#allocation7 + $0x2b0] sm:$0xff] }
  0x44   :  { %5163 = vmatprep.subr.mxu1 %v573_v20  ;;  %5129 = vmatpush3.msra.mxu0 %v525_v25  ;;  %v353_v56 = vcombine.low %v344_v50, %v351_v51  ;;  %v360_v59 = vrot.slane %v352_v55, %v7448_v62  ;;  %v599_v20 = vld [vmem:[#allocation7 + $0x258] sm:$0xff]  ;;  %v598_v25 = vld [vmem:[#allocation7 + $0x250] sm:$0xff]  ;;  %v628_v41 = vld [vmem:[#allocation7 + $0x340] sm:$0xff] }
  0x45   :  { %5164 = vmatpush3.msra.mxu1 %v557_v26  ;;  %5130 = vmatprep.subr.mxu0 %v540_v31  ;;  %v630_v26 = vld [vmem:[#allocation7 + $0x350] sm:$0xff]  ;;  %v645_v31 = vld [vmem:[#allocation7 + $0x3c8] sm:$0xff]  ;;  %v627_v45 = vld [vmem:[#allocation7 + $0x338] sm:$0xff] }
  0x46   :  { %5165 = vmatprep.subr.mxu1 %v572_v32  ;;  %5131 = vmatpush3.msra.mxu0 %v524_v36  ;;  %v367_v60 = vrot.slane %v353_v56, %v7448_v62  ;;  %v597_v32 = vld [vmem:[#allocation7 + $0x248] sm:$0xff]  ;;  %v642_v50 = vld [vmem:[#allocation7 + $0x3b0] sm:$0xff] }
  0x47   :  { %5166 = vmatpush3.msra.mxu1 %v556_v40  ;;  %5170 = vmatprep.subr.mxu0 %v619_v42  ;;  %v629_v36 = vld [vmem:[#allocation7 + $0x348] sm:$0xff]  ;;  %v596_v40 = vld [vmem:[#allocation7 + $0x240] sm:$0xff]  ;;  %v611_v42 = vld [vmem:[#allocation7 + $0x2b8] sm:$0xff] }
  0x48   :  { %5205 = vmatprep.subr.mxu1 %v651_v43  ;;  %v368_v63 = vcombine.low %v360_v59, %v367_v60  ;;  %v643_v43 = vld [vmem:[#allocation7 + $0x3b8] sm:$0xff]  ;;  %v594_v51 = vld [vmem:[#allocation7 + $0x230] sm:$0xff]  ;;  %v609_v56 = vld [vmem:[#allocation7 + $0x2a8] sm:$0xff] }
  0x49   :  { %v626_v55 = vld [vmem:[#allocation7 + $0x330] sm:$0xff]  ;;  %v641_v59 = vld [vmem:[#allocation7 + $0x3a8] sm:$0xff] }
  0x4a   :  { %v7497_v0 = vsub.f32 %v7446_v61, %v368_v63  ;;  %v602_v61 = vld [vmem:[#allocation7 + $0x270] sm:$0xff]  ;;  %v593_v60 = vld [vmem:[#allocation7 + $0x228] sm:$0xff] }
  0x4b   :  { %v625_v63 = vld [vmem:[#allocation7 + $0x328] sm:$0xff] }
  0x4c   :  { %v1047_v1 = vrot.slane %v7497_v0, %v7432_v48  ;;  %v1055_v2 = vrot.slane %v7497_v0, %v7436_v52  ;;  %v1043_v3 = vrot.slane %v7497_v0, %v7430_v47  ;;  %v1051_v4 = vrot.slane %v7497_v0, %v7434_v49 }
  0x4e   :  { %1264 = vmatprep.mubr.f32.mxu0 %v1047_v1  ;;  %1334 = vmatprep.mubr.f32.mxu1 %v1055_v2  ;;  %v608_v1 = vld [vmem:[#allocation7 + $0x2a0] sm:$0xff] }
  0x4f   :  { %1265 = vmatmul.mubr.f32.vlgmr.msra.gmra.mxu0 %v1043_v3  ;;  %1335 = vmatmul.mubr.f32.vlgmr.msra.gmra.mxu1 %v1051_v4  ;;  %v640_v2 = vld [vmem:[#allocation7 + $0x3a0] sm:$0xff] }
  0x50   :  { %5171 = vmatpush3.msra.mxu0 %v603_v5  ;;  %5206 = vmatpush3.msra.mxu1 %v635_v6  ;;  %v592_v3 = vld [vmem:[#allocation7 + $0x220] sm:$0xff]  ;;  %v7507_v5 = vld [vmem:[#allocation4 + $0x8] sm:$0xff]  ;;  %v607_v6 = vld [vmem:[#allocation7 + $0x298] sm:$0xff] }
  0x51   :  { %5172 = vmatprep.subr.mxu0 %v618_v7  ;;  %5207 = vmatprep.subr.mxu1 %v650_v8  ;;  %v624_v4 = vld [vmem:[#allocation7 + $0x320] sm:$0xff]  ;;  %v639_v7 = vld [vmem:[#allocation7 + $0x398] sm:$0xff] }
  0x52   :  { %5173 = vmatpush3.msra.mxu0 %v602_v61  ;;  %5208 = vmatpush3.msra.mxu1 %v634_v9  ;;  %v591_v8 = vld [vmem:[#allocation7 + $0x218] sm:$0xff]  ;;  %v606_v9 = vld [vmem:[#allocation7 + $0x290] sm:$0xff] }
  0x53   :  { %5174 = vmatprep.subr.mxu0 %v617_v10  ;;  %5209 = vmatprep.subr.mxu1 %v649_v11  ;;  %v623_v61 = vld [vmem:[#allocation7 + $0x318] sm:$0xff]  ;;  %v638_v10 = vld [vmem:[#allocation7 + $0x390] sm:$0xff]  ;;  %v99_v11 = vrot.slane %v7507_v5, %v7430_v47 }
  0x54   :  { %5175 = vmatpush3.msra.mxu0 %v601_v12  ;;  %5210 = vmatpush3.msra.mxu1 %v633_v13  ;;  %v103_v12 = vrot.slane %v7507_v5, %v7432_v48  ;;  %v590_v13 = vld [vmem:[#allocation7 + $0x210] sm:$0xff] }
  0x55   :  { %5176 = vmatprep.subr.mxu0 %v616_v14  ;;  %5211 = vmatprep.subr.mxu1 %v648_v15  ;;  %v622_v14 = vld [vmem:[#allocation7 + $0x310] sm:$0xff]  ;;  %v107_v15 = vrot.slane %v7507_v5, %v7434_v49 }
  0x56   :  { %5177 = vmatpush3.msra.mxu0 %v600_v16  ;;  %5212 = vmatpush3.msra.mxu1 %v632_v17  ;;  %v111_v16 = vrot.slane %v7507_v5, %v7436_v52  ;;  %v115_v17 = vrot.slane %v7507_v5, %v7438_v53 }
  0x57   :  { %5178 = vmatprep.subr.mxu0 %v615_v18  ;;  %5213 = vmatprep.subr.mxu1 %v647_v19  ;;  %v605_v18 = vld [vmem:[#allocation7 + $0x288] sm:$0xff] }
  0x58   :  { %5179 = vmatpush3.msra.mxu0 %v599_v20  ;;  %5214 = vmatpush3.msra.mxu1 %v631_v21  ;;  %v637_v19 = vld [vmem:[#allocation7 + $0x388] sm:$0xff]  ;;  %v119_v20 = vrot.slane %v7507_v5, %v7440_v54  ;;  %v123_v21 = vrot.slane %v7507_v5, %v7442_v57 }
  0x59   :  { %5180 = vmatprep.subr.mxu0 %v614_v22  ;;  %5215 = vmatprep.subr.mxu1 %v646_v23  ;;  %v127_v22 = vrot.slane %v7507_v5, %v7444_v58  ;;  %v589_v23 = vld [vmem:[#allocation7 + $0x208] sm:$0xff] }
  0x5a   :  { %5181 = vmatpush3.msra.mxu0 %v598_v25  ;;  %5216 = vmatpush3.msra.mxu1 %v630_v26  ;;  %v621_v25 = vld [vmem:[#allocation7 + $0x308] sm:$0xff]  ;;  %v1063_v26 = vrot.slane %v7497_v0, %v7440_v54 }
  0x5b   :  { %5182 = vmatprep.subr.mxu0 %v613_v27  ;;  %5217 = vmatprep.subr.mxu1 %v645_v31  ;;  %v1059_v27 = vrot.slane %v7497_v0, %v7438_v53  ;;  %v604_v31 = vld [vmem:[#allocation7 + $0x280] sm:$0xff] }
  0x5c   :  { %5183 = vmatpush3.msra.mxu0 %v597_v32  ;;  %5218 = vmatpush3.msra.mxu1 %v629_v36  ;;  %v636_v32 = vld [vmem:[#allocation7 + $0x380] sm:$0xff]  ;;  %v1071_v36 = vrot.slane %v7497_v0, %v7444_v58 }
  0x5d   :  { %5184 = vmatprep.subr.mxu0 %v612_v38  ;;  %5219 = vmatprep.subr.mxu1 %v644_v39  ;;  %v232_v38 = vpack.c.bf16 %v99_v11, %v99_v11  ;;  %v233_v39 = vpack.c.bf16 %v103_v12, %v103_v12  ;;  %v681_v11 = vld [vmem:[#allocation7 + $0x4e8] sm:$0xff] }
  0x5e   :  { %5185 = vmatpush3.msra.mxu0 %v596_v40  ;;  %5220 = vmatpush3.msra.mxu1 %v628_v41  ;;  %v588_v40 = vld [vmem:[#allocation7 + $0x200] sm:$0xff]  ;;  %v234_v41 = vpack.c.bf16 %v107_v15, %v107_v15  ;;  %v713_v12 = vld [vmem:[#allocation7 + $0x5e8] sm:$0xff] }
  0x5f   :  { %5186 = vmatprep.subr.mxu0 %v611_v42  ;;  %5221 = vmatprep.subr.mxu1 %v643_v43  ;;  %v235_v42 = vpack.c.bf16 %v111_v16, %v111_v16  ;;  %v236_v43 = vpack.c.bf16 %v115_v17, %v115_v17  ;;  %v680_v16 = vld [vmem:[#allocation7 + $0x4e0] sm:$0xff] }
  0x60   :  { %5187 = vmatpush3.msra.mxu0 %v595_v44  ;;  %5222 = vmatpush3.msra.mxu1 %v627_v45  ;;  %v620_v44 = vld [vmem:[#allocation7 + $0x300] sm:$0xff]  ;;  %v237_v45 = vpack.c.bf16 %v119_v20, %v119_v20 }
  0x61   :  { %5188 = vmatprep.subr.mxu0 %v610_v46  ;;  %5223 = vmatprep.subr.mxu1 %v642_v50  ;;  %v238_v46 = vpack.c.bf16 %v123_v21, %v123_v21  ;;  %v239_v50 = vpack.c.bf16 %v127_v22, %v127_v22  ;;  %v712_v17 = vld [vmem:[#allocation7 + $0x5e0] sm:$0xff] }
  0x62   :  { %5189 = vmatpush3.msra.mxu0 %v594_v51  ;;  %5224 = vmatpush3.msra.mxu1 %v626_v55  ;;  %v683_v51 = vld [vmem:[#allocation7 + $0x4f8] sm:$0xff]  ;;  %v1067_v55 = vrot.slane %v7497_v0, %v7442_v57  ;;  %v7541_v0 = vunpack.c.l.bf16 %v236_v43  ;;  %v664_v21 = vld [vmem:[#allocation7 + $0x460] sm:$0xff]  ;;  %v677_v43 = vld [vmem:[#allocation7 + $0x4c8] sm:$0xff] }
  0x63   :  { %5190 = vmatprep.subr.mxu0 %v609_v56  ;;  %5225 = vmatprep.subr.mxu1 %v641_v59  ;;  %v715_v56 = vld [vmem:[#allocation7 + $0x5f8] sm:$0xff]  ;;  %v696_v22 = vld [vmem:[#allocation7 + $0x560] sm:$0xff] }
  0x64   :  { %5191 = vmatpush3.msra.mxu0 %v593_v60  ;;  %5226 = vmatpush3.msra.mxu1 %v625_v63  ;;  %v667_v59 = vld [vmem:[#allocation7 + $0x478] sm:$0xff]  ;;  %v7533_v63 = vunpack.c.l.bf16 %v232_v38 }
  0x65   :  { %5192 = vmatprep.subr.mxu0 %v608_v1  ;;  %5227 = vmatprep.subr.mxu1 %v640_v2  ;;  %v699_v60 = vld [vmem:[#allocation7 + $0x578] sm:$0xff]  ;;  %v7535_v1 = vunpack.c.l.bf16 %v233_v39  ;;  %v7537_v2 = vunpack.c.l.bf16 %v234_v41  ;;  %v662_v41 = vld [vmem:[#allocation7 + $0x450] sm:$0xff] }
  0x66   :  { %5193 = vmatpush3.msra.mxu0 %v592_v3  ;;  %5228 = vmatpush3.msra.mxu1 %v624_v4  ;;  %v7539_v3 = vunpack.c.l.bf16 %v235_v42  ;;  %v682_v4 = vld [vmem:[#allocation7 + $0x4f0] sm:$0xff] }
  0x67   :  { %5194 = vmatprep.subr.mxu0 %v607_v6  ;;  %5229 = vmatprep.subr.mxu1 %v639_v7  ;;  %v714_v6 = vld [vmem:[#allocation7 + $0x5f0] sm:$0xff]  ;;  %v7543_v7 = vunpack.c.l.bf16 %v237_v45  ;;  %v369_v15 = vcombine.low %v7533_v63, %v7535_v1  ;;  %v661_v45 = vld [vmem:[#allocation7 + $0x448] sm:$0xff] }
  0x68   :  { %5195 = vmatpush3.msra.mxu0 %v591_v8  ;;  %5230 = vmatpush3.msra.mxu1 %v623_v61  ;;  %v7545_v8 = vunpack.c.l.bf16 %v238_v46  ;;  %v7547_v61 = vunpack.c.l.bf16 %v239_v50  ;;  %v694_v42 = vld [vmem:[#allocation7 + $0x550] sm:$0xff]  ;;  %v693_v46 = vld [vmem:[#allocation7 + $0x548] sm:$0xff]  ;;  %v676_v50 = vld [vmem:[#allocation7 + $0x4c0] sm:$0xff] }
  0x69   :  { %5196 = vmatprep.subr.mxu0 %v606_v9  ;;  %5231 = vmatprep.subr.mxu1 %v638_v10  ;;  %v666_v9 = vld [vmem:[#allocation7 + $0x470] sm:$0xff] }
  0x6a   :  { %5197 = vmatpush3.msra.mxu0 %v590_v13  ;;  %5232 = vmatpush3.msra.mxu1 %v622_v14  ;;  %v698_v10 = vld [vmem:[#allocation7 + $0x570] sm:$0xff]  ;;  %v665_v13 = vld [vmem:[#allocation7 + $0x468] sm:$0xff]  ;;  %v372_v20 = vcombine.low %v7545_v8, %v7547_v61 }
  0x6b   :  { %5198 = vmatprep.subr.mxu0 %v605_v18  ;;  %5233 = vmatprep.subr.mxu1 %v637_v19  ;;  %v697_v14 = vld [vmem:[#allocation7 + $0x568] sm:$0xff]  ;;  %v370_v18 = vcombine.low %v7537_v2, %v7539_v3  ;;  %v371_v19 = vcombine.low %v7541_v0, %v7543_v7 }
  0x6c   :  { %5199 = vmatpush3.msra.mxu0 %v589_v23  ;;  %5234 = vmatpush3.msra.mxu1 %v621_v25  ;;  %v679_v23 = vld [vmem:[#allocation7 + $0x4d8] sm:$0xff] }
  0x6d   :  { %5200 = vmatprep.subr.mxu0 %v604_v31  ;;  %5235 = vmatprep.subr.mxu1 %v636_v32  ;;  %v711_v25 = vld [vmem:[#allocation7 + $0x5d8] sm:$0xff]  ;;  %v379_v31 = vrot.slane %v369_v15, %v7448_v62  ;;  %v678_v32 = vld [vmem:[#allocation7 + $0x4d0] sm:$0xff]  ;;  %v386_v38 = vrot.slane %v370_v18, %v7448_v62  ;;  %v393_v39 = vrot.slane %v371_v19, %v7448_v62  ;;  %v705_v18 = vld [vmem:[#allocation7 + $0x5a8] sm:$0xff] }
  0x6e   :  { %5201 = vmatpush3.msra.mxu0 %v588_v40  ;;  %1404 = vmatprep.mubr.f32.mxu0 %v1063_v26  ;;  %v663_v26 = vld [vmem:[#allocation7 + $0x458] sm:$0xff]  ;;  %v400_v40 = vrot.slane %v372_v20, %v7448_v62  ;;  %v658_v15 = vld [vmem:[#allocation7 + $0x430] sm:$0xff]  ;;  %v657_v19 = vld [vmem:[#allocation7 + $0x428] sm:$0xff] }
  0x6f   :  { %5236 = vmatpush3.msra.mxu1 %v620_v44  ;;  %1405 = vmatmul.mubr.f32.vlgmr.msra.gmra.mxu0 %v1059_v27  ;;  %v695_v27 = vld [vmem:[#allocation7 + $0x558] sm:$0xff]  ;;  %v709_v44 = vld [vmem:[#allocation7 + $0x5c8] sm:$0xff] }
  0x70   :  { %1474 = vmatprep.mubr.f32.mxu1 %v1071_v36  ;;  %5240 = vmatprep.subr.mxu0 %v683_v51  ;;  %v710_v36 = vld [vmem:[#allocation7 + $0x5d0] sm:$0xff]  ;;  %v708_v51 = vld [vmem:[#allocation7 + $0x5c0] sm:$0xff]  ;;  %v689_v20 = vld [vmem:[#allocation7 + $0x528] sm:$0xff] }
  0x71   :  { %5275 = vmatprep.subr.mxu1 %v715_v56  ;;  %1475 = vmatmul.mubr.f32.vlgmr.msra.gmra.mxu1 %v1067_v55  ;;  %v401_v55 = vcombine.low %v379_v31, %v386_v38  ;;  %v402_v56 = vcombine.low %v393_v39, %v400_v40  ;;  %v703_v31 = vld [vmem:[#allocation7 + $0x598] sm:$0xff]  ;;  %v670_v38 = vld [vmem:[#allocation7 + $0x490] sm:$0xff] }
  0x72   :  { %5241 = vmatpush3.msra.mxu0 %v667_v59  ;;  %5276 = vmatpush3.msra.mxu1 %v699_v60  ;;  %v660_v59 = vld [vmem:[#allocation7 + $0x440] sm:$0xff]  ;;  %v702_v39 = vld [vmem:[#allocation7 + $0x590] sm:$0xff] }
  0x73   :  { %5242 = vmatprep.subr.mxu0 %v682_v4  ;;  %5277 = vmatprep.subr.mxu1 %v714_v6  ;;  %v692_v60 = vld [vmem:[#allocation7 + $0x540] sm:$0xff]  ;;  %v675_v4 = vld [vmem:[#allocation7 + $0x4b8] sm:$0xff] }
  0x74   :  { %5243 = vmatpush3.msra.mxu0 %v666_v9  ;;  %5278 = vmatpush3.msra.mxu1 %v698_v10  ;;  %v707_v6 = vld [vmem:[#allocation7 + $0x5b8] sm:$0xff] }
  0x75   :  { %5244 = vmatprep.subr.mxu0 %v681_v11  ;;  %5279 = vmatprep.subr.mxu1 %v713_v12  ;;  %v659_v9 = vld [vmem:[#allocation7 + $0x438] sm:$0xff]  ;;  %v674_v11 = vld [vmem:[#allocation7 + $0x4b0] sm:$0xff] }
  0x76   :  { %5245 = vmatpush3.msra.mxu0 %v665_v13  ;;  %5280 = vmatpush3.msra.mxu1 %v697_v14  ;;  %v691_v10 = vld [vmem:[#allocation7 + $0x538] sm:$0xff]  ;;  %v706_v12 = vld [vmem:[#allocation7 + $0x5b0] sm:$0xff]  ;;  %v409_v13 = vrot.slane %v401_v55, %v7448_v62  ;;  %v416_v14 = vrot.slane %v402_v56, %v7448_v62  ;;  %v652_v55 = vld [vmem:[#allocation7 + $0x400] sm:$0xff] }
  0x77   :  { %5246 = vmatprep.subr.mxu0 %v680_v16  ;;  %5281 = vmatprep.subr.mxu1 %v712_v17  ;;  %v690_v16 = vld [vmem:[#allocation7 + $0x530] sm:$0xff]  ;;  %v673_v17 = vld [vmem:[#allocation7 + $0x4a8] sm:$0xff] }
  0x78   :  { %5247 = vmatpush3.msra.mxu0 %v664_v21  ;;  %5282 = vmatpush3.msra.mxu1 %v696_v22  ;;  %v672_v21 = vld [vmem:[#allocation7 + $0x4a0] sm:$0xff] }
  0x79   :  { %5248 = vmatprep.subr.mxu0 %v679_v23  ;;  %5283 = vmatprep.subr.mxu1 %v711_v25  ;;  %v704_v22 = vld [vmem:[#allocation7 + $0x5a0] sm:$0xff]  ;;  %v417_v23 = vcombine.low %v409_v13, %v416_v14  ;;  %v778_v13 = vld [vmem:[#allocation7 + $0x7f0] sm:$0xff] }
  0x7a   :  { %5249 = vmatpush3.msra.mxu0 %v663_v26  ;;  %5284 = vmatpush3.msra.mxu1 %v695_v27  ;;  %v656_v25 = vld [vmem:[#allocation7 + $0x420] sm:$0xff]  ;;  %v671_v27 = vld [vmem:[#allocation7 + $0x498] sm:$0xff]  ;;  %v730_v14 = vld [vmem:[#allocation7 + $0x670] sm:$0xff] }
  0x7b   :  { %5250 = vmatprep.subr.mxu0 %v678_v32  ;;  %5285 = vmatprep.subr.mxu1 %v710_v36  ;;  %v688_v26 = vld [vmem:[#allocation7 + $0x520] sm:$0xff]  ;;  %v655_v32 = vld [vmem:[#allocation7 + $0x418] sm:$0xff]  ;;  %v7564_v40 = vsub.f32 %v7507_v5, %v417_v23 }
  0x7c   :  { %5251 = vmatpush3.msra.mxu0 %v662_v41  ;;  %5286 = vmatpush3.msra.mxu1 %v694_v42  ;;  %v687_v36 = vld [vmem:[#allocation7 + $0x518] sm:$0xff]  ;;  %v654_v41 = vld [vmem:[#allocation7 + $0x410] sm:$0xff]  ;;  %v760_v23 = vld [vmem:[#allocation7 + $0x760] sm:$0xff] }
  0x7d   :  { %5252 = vmatprep.subr.mxu0 %v677_v43  ;;  %5287 = vmatprep.subr.mxu1 %v709_v44  ;;  %v686_v42 = vld [vmem:[#allocation7 + $0x510] sm:$0xff]  ;;  %v669_v43 = vld [vmem:[#allocation7 + $0x488] sm:$0xff]  ;;  %v1079_v5 = vrot.slane %v7564_v40, %v7432_v48  ;;  %v1075_v56 = vrot.slane %v7564_v40, %v7430_v47 }
  0x7e   :  { %5253 = vmatpush3.msra.mxu0 %v661_v45  ;;  %5288 = vmatpush3.msra.mxu1 %v693_v46  ;;  %v701_v44 = vld [vmem:[#allocation7 + $0x588] sm:$0xff] }
  0x7f   :  { %5254 = vmatprep.subr.mxu0 %v676_v50  ;;  %5289 = vmatprep.subr.mxu1 %v708_v51  ;;  %v653_v45 = vld [vmem:[#allocation7 + $0x408] sm:$0xff]  ;;  %v668_v50 = vld [vmem:[#allocation7 + $0x480] sm:$0xff] }
  0x80   :  { %5255 = vmatpush3.msra.mxu0 %v660_v59  ;;  %5290 = vmatpush3.msra.mxu1 %v692_v60  ;;  %v685_v46 = vld [vmem:[#allocation7 + $0x508] sm:$0xff]  ;;  %v700_v51 = vld [vmem:[#allocation7 + $0x580] sm:$0xff]  ;;  %v1087_v60 = vrot.slane %v7564_v40, %v7436_v52 }
  0x81   :  { %5256 = vmatprep.subr.mxu0 %v675_v4  ;;  %5291 = vmatprep.subr.mxu1 %v707_v6  ;;  %v684_v59 = vld [vmem:[#allocation7 + $0x500] sm:$0xff]  ;;  %v747_v4 = vld [vmem:[#allocation7 + $0x6f8] sm:$0xff]  ;;  %v1083_v6 = vrot.slane %v7564_v40, %v7434_v49 }
  0x82   :  { %5257 = vmatpush3.msra.mxu0 %v659_v9  ;;  %5292 = vmatpush3.msra.mxu1 %v691_v10  ;;  %v779_v9 = vld [vmem:[#allocation7 + $0x7f8] sm:$0xff] }
  0x83   :  { %5258 = vmatprep.subr.mxu0 %v674_v11  ;;  %5293 = vmatprep.subr.mxu1 %v706_v12  ;;  %v731_v10 = vld [vmem:[#allocation7 + $0x678] sm:$0xff]  ;;  %v746_v12 = vld [vmem:[#allocation7 + $0x6f0] sm:$0xff] }
  0x84   :  { %5259 = vmatpush3.msra.mxu0 %v658_v15  ;;  %5294 = vmatpush3.msra.mxu1 %v690_v16  ;;  %v763_v11 = vld [vmem:[#allocation7 + $0x778] sm:$0xff]  ;;  %v762_v15 = vld [vmem:[#allocation7 + $0x770] sm:$0xff]  ;;  %v745_v16 = vld [vmem:[#allocation7 + $0x6e8] sm:$0xff] }
  0x85   :  { %5260 = vmatprep.subr.mxu0 %v673_v17  ;;  %5295 = vmatprep.subr.mxu1 %v705_v18  ;;  %v777_v17 = vld [vmem:[#allocation7 + $0x7e8] sm:$0xff] }
  0x86   :  { %5261 = vmatpush3.msra.mxu0 %v657_v19  ;;  %5296 = vmatpush3.msra.mxu1 %v689_v20  ;;  %v729_v18 = vld [vmem:[#allocation7 + $0x668] sm:$0xff]  ;;  %v744_v20 = vld [vmem:[#allocation7 + $0x6e0] sm:$0xff] }
  0x87   :  { %5262 = vmatprep.subr.mxu0 %v672_v21  ;;  %5297 = vmatprep.subr.mxu1 %v704_v22  ;;  %v761_v19 = vld [vmem:[#allocation7 + $0x768] sm:$0xff]  ;;  %v776_v21 = vld [vmem:[#allocation7 + $0x7e0] sm:$0xff] }
  0x88   :  { %5263 = vmatpush3.msra.mxu0 %v656_v25  ;;  %5298 = vmatpush3.msra.mxu1 %v688_v26  ;;  %v728_v22 = vld [vmem:[#allocation7 + $0x660] sm:$0xff]  ;;  %v743_v25 = vld [vmem:[#allocation7 + $0x6d8] sm:$0xff] }
  0x89   :  { %5264 = vmatprep.subr.mxu0 %v671_v27  ;;  %5299 = vmatprep.subr.mxu1 %v703_v31  ;;  %v775_v26 = vld [vmem:[#allocation7 + $0x7d8] sm:$0xff] }
  0x8a   :  { %5265 = vmatpush3.msra.mxu0 %v655_v32  ;;  %5300 = vmatpush3.msra.mxu1 %v687_v36  ;;  %v727_v27 = vld [vmem:[#allocation7 + $0x658] sm:$0xff]  ;;  %v742_v32 = vld [vmem:[#allocation7 + $0x6d0] sm:$0xff] }
  0x8b   :  { %5266 = vmatprep.subr.mxu0 %v670_v38  ;;  %5301 = vmatprep.subr.mxu1 %v702_v39  ;;  %v759_v31 = vld [vmem:[#allocation7 + $0x758] sm:$0xff]  ;;  %v774_v36 = vld [vmem:[#allocation7 + $0x7d0] sm:$0xff] }
  0x8c   :  { %5267 = vmatpush3.msra.mxu0 %v654_v41  ;;  %5302 = vmatpush3.msra.mxu1 %v686_v42  ;;  %v726_v38 = vld [vmem:[#allocation7 + $0x650] sm:$0xff]  ;;  %v741_v41 = vld [vmem:[#allocation7 + $0x6c8] sm:$0xff] }
  0x8d   :  { %5268 = vmatprep.subr.mxu0 %v669_v43  ;;  %5303 = vmatprep.subr.mxu1 %v701_v44  ;;  %v758_v39 = vld [vmem:[#allocation7 + $0x750] sm:$0xff]  ;;  %v773_v42 = vld [vmem:[#allocation7 + $0x7c8] sm:$0xff] }
  0x8e   :  { %5269 = vmatpush3.msra.mxu0 %v653_v45  ;;  %5304 = vmatpush3.msra.mxu1 %v685_v46  ;;  %v725_v43 = vld [vmem:[#allocation7 + $0x648] sm:$0xff]  ;;  %v740_v45 = vld [vmem:[#allocation7 + $0x6c0] sm:$0xff] }
  0x8f   :  { %5270 = vmatprep.subr.mxu0 %v668_v50  ;;  %5305 = vmatprep.subr.mxu1 %v700_v51  ;;  %v757_v44 = vld [vmem:[#allocation7 + $0x748] sm:$0xff]  ;;  %v772_v46 = vld [vmem:[#allocation7 + $0x7c0] sm:$0xff] }
  0x90   :  { %5271 = vmatpush3.msra.mxu0 %v652_v55  ;;  %1544 = vmatprep.mubr.f32.mxu0 %v1079_v5  ;;  %v724_v50 = vld [vmem:[#allocation7 + $0x640] sm:$0xff]  ;;  %v739_v5 = vld [vmem:[#allocation7 + $0x6b8] sm:$0xff] }
  0x91   :  { %5306 = vmatpush3.msra.mxu1 %v684_v59  ;;  %1545 = vmatmul.mubr.f32.vlgmr.msra.gmra.mxu0 %v1075_v56  ;;  %v756_v51 = vld [vmem:[#allocation7 + $0x740] sm:$0xff]  ;;  %v771_v55 = vld [vmem:[#allocation7 + $0x7b8] sm:$0xff] }
  0x92   :  { %1614 = vmatprep.mubr.f32.mxu1 %v1087_v60  ;;  %5310 = vmatprep.subr.mxu0 %v747_v4  ;;  %v723_v56 = vld [vmem:[#allocation7 + $0x638] sm:$0xff]  ;;  %v738_v60 = vld [vmem:[#allocation7 + $0x6b0] sm:$0xff] }
  0x93   :  { %5345 = vmatprep.subr.mxu1 %v779_v9  ;;  %1615 = vmatmul.mubr.f32.vlgmr.msra.gmra.mxu1 %v1083_v6  ;;  %v755_v59 = vld [vmem:[#allocation7 + $0x738] sm:$0xff]  ;;  %v770_v4 = vld [vmem:[#allocation7 + $0x7b0] sm:$0xff] }
  0x94   :  { %5311 = vmatpush3.msra.mxu0 %v731_v10  ;;  %5346 = vmatpush3.msra.mxu1 %v763_v11  ;;  %v722_v6 = vld [vmem:[#allocation7 + $0x630] sm:$0xff]  ;;  %v737_v10 = vld [vmem:[#allocation7 + $0x6a8] sm:$0xff] }
  0x95   :  { %5312 = vmatprep.subr.mxu0 %v746_v12  ;;  %5347 = vmatprep.subr.mxu1 %v778_v13  ;;  %v754_v9 = vld [vmem:[#allocation7 + $0x730] sm:$0xff]  ;;  %v769_v11 = vld [vmem:[#allocation7 + $0x7a8] sm:$0xff] }
  0x96   :  { %5313 = vmatpush3.msra.mxu0 %v730_v14  ;;  %5348 = vmatpush3.msra.mxu1 %v762_v15  ;;  %v721_v12 = vld [vmem:[#allocation7 + $0x628] sm:$0xff]  ;;  %v736_v14 = vld [vmem:[#allocation7 + $0x6a0] sm:$0xff] }
  0x97   :  { %5314 = vmatprep.subr.mxu0 %v745_v16  ;;  %5349 = vmatprep.subr.mxu1 %v777_v17  ;;  %v753_v13 = vld [vmem:[#allocation7 + $0x728] sm:$0xff]  ;;  %v768_v15 = vld [vmem:[#allocation7 + $0x7a0] sm:$0xff] }
  0x98   :  { %5315 = vmatpush3.msra.mxu0 %v729_v18  ;;  %5350 = vmatpush3.msra.mxu1 %v761_v19  ;;  %v720_v16 = vld [vmem:[#allocation7 + $0x620] sm:$0xff]  ;;  %v7574_v18 = vld [vmem:[#allocation4 + $0x10] sm:$0xff]  ;;  %v735_v19 = vld [vmem:[#allocation7 + $0x698] sm:$0xff] }
  0x99   :  { %5316 = vmatprep.subr.mxu0 %v744_v20  ;;  %5351 = vmatprep.subr.mxu1 %v776_v21  ;;  %v752_v17 = vld [vmem:[#allocation7 + $0x720] sm:$0xff]  ;;  %v767_v20 = vld [vmem:[#allocation7 + $0x798] sm:$0xff] }
  0x9a   :  { %5317 = vmatpush3.msra.mxu0 %v728_v22  ;;  %5352 = vmatpush3.msra.mxu1 %v760_v23  ;;  %v719_v21 = vld [vmem:[#allocation7 + $0x618] sm:$0xff]  ;;  %v734_v23 = vld [vmem:[#allocation7 + $0x690] sm:$0xff] }
  0x9b   :  { %5318 = vmatprep.subr.mxu0 %v743_v25  ;;  %5353 = vmatprep.subr.mxu1 %v775_v26  ;;  %v751_v22 = vld [vmem:[#allocation7 + $0x718] sm:$0xff]  ;;  %v766_v25 = vld [vmem:[#allocation7 + $0x790] sm:$0xff]  ;;  %v131_v26 = vrot.slane %v7574_v18, %v7430_v47 }
  0x9c   :  { %5319 = vmatpush3.msra.mxu0 %v727_v27  ;;  %5354 = vmatpush3.msra.mxu1 %v759_v31  ;;  %v135_v27 = vrot.slane %v7574_v18, %v7432_v48  ;;  %v718_v31 = vld [vmem:[#allocation7 + $0x610] sm:$0xff] }
  0x9d   :  { %5320 = vmatprep.subr.mxu0 %v742_v32  ;;  %5355 = vmatprep.subr.mxu1 %v774_v36  ;;  %v750_v32 = vld [vmem:[#allocation7 + $0x710] sm:$0xff]  ;;  %v139_v36 = vrot.slane %v7574_v18, %v7434_v49 }
  0x9e   :  { %5321 = vmatpush3.msra.mxu0 %v726_v38  ;;  %5356 = vmatpush3.msra.mxu1 %v758_v39  ;;  %v143_v38 = vrot.slane %v7574_v18, %v7436_v52  ;;  %v147_v39 = vrot.slane %v7574_v18, %v7438_v53 }
  0x9f   :  { %5322 = vmatprep.subr.mxu0 %v741_v41  ;;  %5357 = vmatprep.subr.mxu1 %v773_v42  ;;  %v733_v41 = vld [vmem:[#allocation7 + $0x688] sm:$0xff] }
  0xa0   :  { %5323 = vmatpush3.msra.mxu0 %v725_v43  ;;  %5358 = vmatpush3.msra.mxu1 %v757_v44  ;;  %v765_v42 = vld [vmem:[#allocation7 + $0x788] sm:$0xff]  ;;  %v151_v43 = vrot.slane %v7574_v18, %v7440_v54  ;;  %v155_v44 = vrot.slane %v7574_v18, %v7442_v57 }
  0xa1   :  { %5324 = vmatprep.subr.mxu0 %v740_v45  ;;  %5359 = vmatprep.subr.mxu1 %v772_v46  ;;  %v159_v45 = vrot.slane %v7574_v18, %v7444_v58  ;;  %v717_v46 = vld [vmem:[#allocation7 + $0x608] sm:$0xff] }
  0xa2   :  { %5325 = vmatpush3.msra.mxu0 %v724_v50  ;;  %5360 = vmatpush3.msra.mxu1 %v756_v51  ;;  %v749_v50 = vld [vmem:[#allocation7 + $0x708] sm:$0xff]  ;;  %v1095_v51 = vrot.slane %v7564_v40, %v7440_v54 }
  0xa3   :  { %5326 = vmatprep.subr.mxu0 %v739_v5  ;;  %5361 = vmatprep.subr.mxu1 %v771_v55  ;;  %v1091_v5 = vrot.slane %v7564_v40, %v7438_v53  ;;  %v732_v55 = vld [vmem:[#allocation7 + $0x680] sm:$0xff] }
  0xa4   :  { %5327 = vmatpush3.msra.mxu0 %v723_v56  ;;  %5362 = vmatpush3.msra.mxu1 %v755_v59  ;;  %v764_v56 = vld [vmem:[#allocation7 + $0x780] sm:$0xff]  ;;  %v1103_v59 = vrot.slane %v7564_v40, %v7444_v58 }
  0xa5   :  { %5328 = vmatprep.subr.mxu0 %v738_v60  ;;  %5363 = vmatprep.subr.mxu1 %v770_v4  ;;  %v240_v60 = vpack.c.bf16 %v131_v26, %v131_v26  ;;  %v241_v4 = vpack.c.bf16 %v135_v27, %v135_v27  ;;  %v810_v27 = vld [vmem:[#allocation7 + $0x8f0] sm:$0xff] }
  0xa6   :  { %5329 = vmatpush3.msra.mxu0 %v722_v6  ;;  %5364 = vmatpush3.msra.mxu1 %v754_v9  ;;  %v716_v6 = vld [vmem:[#allocation7 + $0x600] sm:$0xff]  ;;  %v242_v9 = vpack.c.bf16 %v139_v36, %v139_v36 }
  0xa7   :  { %5330 = vmatprep.subr.mxu0 %v737_v10  ;;  %5365 = vmatprep.subr.mxu1 %v769_v11  ;;  %v243_v10 = vpack.c.bf16 %v143_v38, %v143_v38  ;;  %v244_v11 = vpack.c.bf16 %v147_v39, %v147_v39  ;;  %v794_v39 = vld [vmem:[#allocation7 + $0x870] sm:$0xff] }
  0xa8   :  { %5331 = vmatpush3.msra.mxu0 %v721_v12  ;;  %5366 = vmatpush3.msra.mxu1 %v753_v13  ;;  %v748_v12 = vld [vmem:[#allocation7 + $0x700] sm:$0xff]  ;;  %v245_v13 = vpack.c.bf16 %v151_v43, %v151_v43  ;;  %v841_v43 = vld [vmem:[#allocation7 + $0x9e8] sm:$0xff] }
  0xa9   :  { %5332 = vmatprep.subr.mxu0 %v736_v14  ;;  %5367 = vmatprep.subr.mxu1 %v768_v15  ;;  %v246_v14 = vpack.c.bf16 %v155_v44, %v155_v44  ;;  %v247_v15 = vpack.c.bf16 %v159_v45, %v159_v45  ;;  %v7606_v26 = vunpack.c.l.bf16 %v243_v10  ;;  %v793_v44 = vld [vmem:[#allocation7 + $0x868] sm:$0xff]  ;;  %v823_v10 = vld [vmem:[#allocation7 + $0x958] sm:$0xff] }
  0xaa   :  { %5333 = vmatpush3.msra.mxu0 %v720_v16  ;;  %5368 = vmatpush3.msra.mxu1 %v752_v17  ;;  %v811_v16 = vld [vmem:[#allocation7 + $0x8f8] sm:$0xff]  ;;  %v1099_v17 = vrot.slane %v7564_v40, %v7442_v57  ;;  %v7608_v40 = vunpack.c.l.bf16 %v244_v11  ;;  %v825_v45 = vld [vmem:[#allocation7 + $0x968] sm:$0xff] }
  0xab   :  { %5334 = vmatprep.subr.mxu0 %v735_v19  ;;  %5369 = vmatprep.subr.mxu1 %v767_v20  ;;  %v843_v19 = vld [vmem:[#allocation7 + $0x9f8] sm:$0xff]  ;;  %v7612_v36 = vunpack.c.l.bf16 %v246_v14  ;;  %v7614_v38 = vunpack.c.l.bf16 %v247_v15 }
  0xac   :  { %5335 = vmatpush3.msra.mxu0 %v719_v21  ;;  %5370 = vmatpush3.msra.mxu1 %v751_v22  ;;  %v795_v20 = vld [vmem:[#allocation7 + $0x878] sm:$0xff]  ;;  %v7600_v22 = vunpack.c.l.bf16 %v240_v60  ;;  %v824_v60 = vld [vmem:[#allocation7 + $0x960] sm:$0xff] }
  0xad   :  { %5336 = vmatprep.subr.mxu0 %v734_v23  ;;  %5371 = vmatprep.subr.mxu1 %v766_v25  ;;  %v827_v21 = vld [vmem:[#allocation7 + $0x978] sm:$0xff]  ;;  %v7602_v23 = vunpack.c.l.bf16 %v241_v4  ;;  %v7604_v25 = vunpack.c.l.bf16 %v242_v9 }
  0xae   :  { %5337 = vmatpush3.msra.mxu0 %v718_v31  ;;  %5372 = vmatpush3.msra.mxu1 %v750_v32  ;;  %v842_v31 = vld [vmem:[#allocation7 + $0x9f0] sm:$0xff]  ;;  %v7610_v32 = vunpack.c.l.bf16 %v245_v13  ;;  %v807_v4 = vld [vmem:[#allocation7 + $0x8d8] sm:$0xff] }
  0xaf   :  { %5338 = vmatprep.subr.mxu0 %v733_v41  ;;  %5373 = vmatprep.subr.mxu1 %v765_v42  ;;  %v826_v41 = vld [vmem:[#allocation7 + $0x970] sm:$0xff]  ;;  %v809_v42 = vld [vmem:[#allocation7 + $0x8e8] sm:$0xff]  ;;  %v791_v9 = vld [vmem:[#allocation7 + $0x858] sm:$0xff] }
  0xb0   :  { %5339 = vmatpush3.msra.mxu0 %v717_v46  ;;  %5374 = vmatpush3.msra.mxu1 %v749_v50  ;;  %v418_v46 = vcombine.low %v7600_v22, %v7602_v23  ;;  %v808_v50 = vld [vmem:[#allocation7 + $0x8e0] sm:$0xff]  ;;  %v838_v13 = vld [vmem:[#allocation7 + $0x9d0] sm:$0xff] }
  0xb1   :  { %5340 = vmatprep.subr.mxu0 %v732_v55  ;;  %5375 = vmatprep.subr.mxu1 %v764_v56  ;;  %v420_v55 = vcombine.low %v7608_v40, %v7610_v32  ;;  %v421_v56 = vcombine.low %v7612_v36, %v7614_v38 }
  0xb2   :  { %5341 = vmatpush3.msra.mxu0 %v716_v6  ;;  %1684 = vmatprep.mubr.f32.mxu0 %v1095_v51  ;;  %v840_v51 = vld [vmem:[#allocation7 + $0x9e0] sm:$0xff]  ;;  %v839_v6 = vld [vmem:[#allocation7 + $0x9d8] sm:$0xff]  ;;  %v428_v11 = vrot.slane %v418_v46, %v7448_v62 }
  0xb3   :  { %5376 = vmatpush3.msra.mxu1 %v748_v12  ;;  %1685 = vmatmul.mubr.f32.vlgmr.msra.gmra.mxu0 %v1091_v5  ;;  %v419_v5 = vcombine.low %v7604_v25, %v7606_v26  ;;  %v806_v12 = vld [vmem:[#allocation7 + $0x8d0] sm:$0xff]  ;;  %v442_v15 = vrot.slane %v420_v55, %v7448_v62  ;;  %v803_v46 = vld [vmem:[#allocation7 + $0x8b8] sm:$0xff] }
  0xb4   :  { %1754 = vmatprep.mubr.f32.mxu1 %v1103_v59  ;;  %5380 = vmatprep.subr.mxu0 %v811_v16  ;;  %v792_v59 = vld [vmem:[#allocation7 + $0x860] sm:$0xff]  ;;  %v449_v16 = vrot.slane %v421_v56, %v7448_v62  ;;  %v802_v55 = vld [vmem:[#allocation7 + $0x8b0] sm:$0xff] }
  0xb5   :  { %5415 = vmatprep.subr.mxu1 %v843_v19  ;;  %1755 = vmatmul.mubr.f32.vlgmr.msra.gmra.mxu1 %v1099_v17  ;;  %v435_v14 = vrot.slane %v419_v5, %v7448_v62  ;;  %v790_v17 = vld [vmem:[#allocation7 + $0x850] sm:$0xff]  ;;  %v819_v5 = vld [vmem:[#allocation7 + $0x938] sm:$0xff] }
  0xb6   :  { %5381 = vmatpush3.msra.mxu0 %v795_v20  ;;  %5416 = vmatpush3.msra.mxu1 %v827_v21  ;;  %v822_v19 = vld [vmem:[#allocation7 + $0x950] sm:$0xff]  ;;  %v805_v20 = vld [vmem:[#allocation7 + $0x8c8] sm:$0xff] }
  0xb7   :  { %5382 = vmatprep.subr.mxu0 %v810_v27  ;;  %5417 = vmatprep.subr.mxu1 %v842_v31  ;;  %v837_v21 = vld [vmem:[#allocation7 + $0x9c8] sm:$0xff]  ;;  %v834_v56 = vld [vmem:[#allocation7 + $0x9b0] sm:$0xff] }
  0xb8   :  { %5383 = vmatpush3.msra.mxu0 %v794_v39  ;;  %5418 = vmatpush3.msra.mxu1 %v826_v41  ;;  %v789_v27 = vld [vmem:[#allocation7 + $0x848] sm:$0xff]  ;;  %v804_v39 = vld [vmem:[#allocation7 + $0x8c0] sm:$0xff] }
  0xb9   :  { %5384 = vmatprep.subr.mxu0 %v809_v42  ;;  %5419 = vmatprep.subr.mxu1 %v841_v43  ;;  %v821_v31 = vld [vmem:[#allocation7 + $0x948] sm:$0xff]  ;;  %v836_v41 = vld [vmem:[#allocation7 + $0x9c0] sm:$0xff]  ;;  %v450_v42 = vcombine.low %v428_v11, %v435_v14  ;;  %v451_v43 = vcombine.low %v442_v15, %v449_v16 }
  0xba   :  { %5385 = vmatpush3.msra.mxu0 %v793_v44  ;;  %5420 = vmatpush3.msra.mxu1 %v825_v45  ;;  %v788_v44 = vld [vmem:[#allocation7 + $0x840] sm:$0xff]  ;;  %v785_v11 = vld [vmem:[#allocation7 + $0x828] sm:$0xff] }
  0xbb   :  { %5386 = vmatprep.subr.mxu0 %v808_v50  ;;  %5421 = vmatprep.subr.mxu1 %v840_v51  ;;  %v820_v45 = vld [vmem:[#allocation7 + $0x940] sm:$0xff]  ;;  %v835_v50 = vld [vmem:[#allocation7 + $0x9b8] sm:$0xff] }
  0xbc   :  { %5387 = vmatpush3.msra.mxu0 %v792_v59  ;;  %5422 = vmatpush3.msra.mxu1 %v824_v60  ;;  %v787_v51 = vld [vmem:[#allocation7 + $0x838] sm:$0xff]  ;;  %v458_v59 = vrot.slane %v450_v42, %v7448_v62  ;;  %v465_v60 = vrot.slane %v451_v43, %v7448_v62  ;;  %v832_v14 = vld [vmem:[#allocation7 + $0x9a0] sm:$0xff]  ;;  %v782_v42 = vld [vmem:[#allocation7 + $0x810] sm:$0xff] }
  0xbd   :  { %5388 = vmatprep.subr.mxu0 %v807_v4  ;;  %5423 = vmatprep.subr.mxu1 %v839_v6  ;;  %v786_v4 = vld [vmem:[#allocation7 + $0x830] sm:$0xff]  ;;  %v784_v16 = vld [vmem:[#allocation7 + $0x820] sm:$0xff] }
  0xbe   :  { %5389 = vmatpush3.msra.mxu0 %v791_v9  ;;  %5424 = vmatpush3.msra.mxu1 %v823_v10  ;;  %v818_v6 = vld [vmem:[#allocation7 + $0x930] sm:$0xff]  ;;  %v801_v9 = vld [vmem:[#allocation7 + $0x8a8] sm:$0xff]  ;;  %v466_v15 = vcombine.low %v458_v59, %v465_v60  ;;  %v812_v59 = vld [vmem:[#allocation7 + $0x900] sm:$0xff] }
  0xbf   :  { %5390 = vmatprep.subr.mxu0 %v806_v12  ;;  %5425 = vmatprep.subr.mxu1 %v838_v13  ;;  %v833_v10 = vld [vmem:[#allocation7 + $0x9a8] sm:$0xff]  ;;  %v800_v13 = vld [vmem:[#allocation7 + $0x8a0] sm:$0xff]  ;;  %v814_v43 = vld [vmem:[#allocation7 + $0x910] sm:$0xff] }
  0xc0   :  { %5391 = vmatpush3.msra.mxu0 %v790_v17  ;;  %5426 = vmatpush3.msra.mxu1 %v822_v19  ;;  %v817_v12 = vld [vmem:[#allocation7 + $0x928] sm:$0xff]  ;;  %v816_v17 = vld [vmem:[#allocation7 + $0x920] sm:$0xff]  ;;  %v799_v19 = vld [vmem:[#allocation7 + $0x898] sm:$0xff] }
  0xc1   :  { %5392 = vmatprep.subr.mxu0 %v805_v20  ;;  %5427 = vmatprep.subr.mxu1 %v837_v21  ;;  %v831_v20 = vld [vmem:[#allocation7 + $0x998] sm:$0xff] }
  0xc2   :  { %5393 = vmatpush3.msra.mxu0 %v789_v27  ;;  %5428 = vmatpush3.msra.mxu1 %v821_v31  ;;  %v783_v21 = vld [vmem:[#allocation7 + $0x818] sm:$0xff]  ;;  %v798_v31 = vld [vmem:[#allocation7 + $0x890] sm:$0xff] }
  0xc3   :  { %5394 = vmatprep.subr.mxu0 %v804_v39  ;;  %5429 = vmatprep.subr.mxu1 %v836_v41  ;;  %v815_v27 = vld [vmem:[#allocation7 + $0x918] sm:$0xff]  ;;  %v830_v39 = vld [vmem:[#allocation7 + $0x990] sm:$0xff]  ;;  %v7631_v41 = vsub.f32 %v7574_v18, %v466_v15 }
  0xc4   :  { %5395 = vmatpush3.msra.mxu0 %v788_v44  ;;  %5430 = vmatpush3.msra.mxu1 %v820_v45  ;;  %v797_v44 = vld [vmem:[#allocation7 + $0x888] sm:$0xff]  ;;  %v890_v15 = vld [vmem:[#allocation7 + $0xb70] sm:$0xff] }
  0xc5   :  { %5396 = vmatprep.subr.mxu0 %v803_v46  ;;  %5431 = vmatprep.subr.mxu1 %v835_v50  ;;  %v829_v45 = vld [vmem:[#allocation7 + $0x988] sm:$0xff]  ;;  %v1111_v18 = vrot.slane %v7631_v41, %v7432_v48  ;;  %v1119_v60 = vrot.slane %v7631_v41, %v7436_v52 }
  0xc6   :  { %5397 = vmatpush3.msra.mxu0 %v787_v51  ;;  %5432 = vmatpush3.msra.mxu1 %v819_v5  ;;  %v781_v46 = vld [vmem:[#allocation7 + $0x808] sm:$0xff]  ;;  %v796_v51 = vld [vmem:[#allocation7 + $0x880] sm:$0xff] }
  0xc7   :  { %5398 = vmatprep.subr.mxu0 %v802_v55  ;;  %5433 = vmatprep.subr.mxu1 %v834_v56  ;;  %v813_v50 = vld [vmem:[#allocation7 + $0x908] sm:$0xff]  ;;  %v828_v5 = vld [vmem:[#allocation7 + $0x980] sm:$0xff]  ;;  %v1107_v56 = vrot.slane %v7631_v41, %v7430_v47 }
  0xc8   :  { %5399 = vmatpush3.msra.mxu0 %v786_v4  ;;  %5434 = vmatpush3.msra.mxu1 %v818_v6  ;;  %v780_v55 = vld [vmem:[#allocation7 + $0x800] sm:$0xff]  ;;  %v875_v4 = vld [vmem:[#allocation7 + $0xaf8] sm:$0xff]  ;;  %v1115_v6 = vrot.slane %v7631_v41, %v7434_v49 }
  0xc9   :  { %5400 = vmatprep.subr.mxu0 %v801_v9  ;;  %5435 = vmatprep.subr.mxu1 %v833_v10  ;;  %v907_v9 = vld [vmem:[#allocation7 + $0xbf8] sm:$0xff] }
  0xca   :  { %5401 = vmatpush3.msra.mxu0 %v785_v11  ;;  %5436 = vmatpush3.msra.mxu1 %v817_v12  ;;  %v859_v10 = vld [vmem:[#allocation7 + $0xa78] sm:$0xff]  ;;  %v874_v12 = vld [vmem:[#allocation7 + $0xaf0] sm:$0xff] }
  0xcb   :  { %5402 = vmatprep.subr.mxu0 %v800_v13  ;;  %5437 = vmatprep.subr.mxu1 %v832_v14  ;;  %v891_v11 = vld [vmem:[#allocation7 + $0xb78] sm:$0xff]  ;;  %v906_v13 = vld [vmem:[#allocation7 + $0xbf0] sm:$0xff] }
  0xcc   :  { %5403 = vmatpush3.msra.mxu0 %v784_v16  ;;  %5438 = vmatpush3.msra.mxu1 %v816_v17  ;;  %v858_v14 = vld [vmem:[#allocation7 + $0xa70] sm:$0xff]  ;;  %v873_v16 = vld [vmem:[#allocation7 + $0xae8] sm:$0xff] }
  0xcd   :  { %5404 = vmatprep.subr.mxu0 %v799_v19  ;;  %5439 = vmatprep.subr.mxu1 %v831_v20  ;;  %v905_v17 = vld [vmem:[#allocation7 + $0xbe8] sm:$0xff] }
  0xce   :  { %5405 = vmatpush3.msra.mxu0 %v783_v21  ;;  %5440 = vmatpush3.msra.mxu1 %v815_v27  ;;  %v857_v19 = vld [vmem:[#allocation7 + $0xa68] sm:$0xff]  ;;  %v872_v21 = vld [vmem:[#allocation7 + $0xae0] sm:$0xff] }
  0xcf   :  { %5406 = vmatprep.subr.mxu0 %v798_v31  ;;  %5441 = vmatprep.subr.mxu1 %v830_v39  ;;  %v889_v20 = vld [vmem:[#allocation7 + $0xb68] sm:$0xff]  ;;  %v904_v27 = vld [vmem:[#allocation7 + $0xbe0] sm:$0xff] }
  0xd0   :  { %5407 = vmatpush3.msra.mxu0 %v782_v42  ;;  %5442 = vmatpush3.msra.mxu1 %v814_v43  ;;  %v856_v31 = vld [vmem:[#allocation7 + $0xa60] sm:$0xff]  ;;  %v871_v42 = vld [vmem:[#allocation7 + $0xad8] sm:$0xff] }
  0xd1   :  { %5408 = vmatprep.subr.mxu0 %v797_v44  ;;  %5443 = vmatprep.subr.mxu1 %v829_v45  ;;  %v888_v39 = vld [vmem:[#allocation7 + $0xb60] sm:$0xff]  ;;  %v903_v43 = vld [vmem:[#allocation7 + $0xbd8] sm:$0xff] }
  0xd2   :  { %5409 = vmatpush3.msra.mxu0 %v781_v46  ;;  %5444 = vmatpush3.msra.mxu1 %v813_v50  ;;  %v855_v44 = vld [vmem:[#allocation7 + $0xa58] sm:$0xff]  ;;  %v870_v46 = vld [vmem:[#allocation7 + $0xad0] sm:$0xff] }
  0xd3   :  { %5410 = vmatprep.subr.mxu0 %v796_v51  ;;  %5445 = vmatprep.subr.mxu1 %v828_v5  ;;  %v887_v45 = vld [vmem:[#allocation7 + $0xb58] sm:$0xff]  ;;  %v902_v50 = vld [vmem:[#allocation7 + $0xbd0] sm:$0xff] }
  0xd4   :  { %5411 = vmatpush3.msra.mxu0 %v780_v55  ;;  %1824 = vmatprep.mubr.f32.mxu0 %v1111_v18  ;;  %v854_v51 = vld [vmem:[#allocation7 + $0xa50] sm:$0xff]  ;;  %v869_v18 = vld [vmem:[#allocation7 + $0xac8] sm:$0xff] }
  0xd5   :  { %5446 = vmatpush3.msra.mxu1 %v812_v59  ;;  %1825 = vmatmul.mubr.f32.vlgmr.msra.gmra.mxu0 %v1107_v56  ;;  %v886_v5 = vld [vmem:[#allocation7 + $0xb50] sm:$0xff]  ;;  %v901_v55 = vld [vmem:[#allocation7 + $0xbc8] sm:$0xff] }
  0xd6   :  { %1894 = vmatprep.mubr.f32.mxu1 %v1119_v60  ;;  %5450 = vmatprep.subr.mxu0 %v875_v4  ;;  %v853_v56 = vld [vmem:[#allocation7 + $0xa48] sm:$0xff]  ;;  %v868_v60 = vld [vmem:[#allocation7 + $0xac0] sm:$0xff] }
  0xd7   :  { %5485 = vmatprep.subr.mxu1 %v907_v9  ;;  %1895 = vmatmul.mubr.f32.vlgmr.msra.gmra.mxu1 %v1115_v6  ;;  %v885_v59 = vld [vmem:[#allocation7 + $0xb48] sm:$0xff]  ;;  %v900_v4 = vld [vmem:[#allocation7 + $0xbc0] sm:$0xff] }
  0xd8   :  { %5451 = vmatpush3.msra.mxu0 %v859_v10  ;;  %5486 = vmatpush3.msra.mxu1 %v891_v11  ;;  %v852_v6 = vld [vmem:[#allocation7 + $0xa40] sm:$0xff]  ;;  %v867_v10 = vld [vmem:[#allocation7 + $0xab8] sm:$0xff] }
  0xd9   :  { %5452 = vmatprep.subr.mxu0 %v874_v12  ;;  %5487 = vmatprep.subr.mxu1 %v906_v13  ;;  %v884_v9 = vld [vmem:[#allocation7 + $0xb40] sm:$0xff]  ;;  %v899_v11 = vld [vmem:[#allocation7 + $0xbb8] sm:$0xff] }
  0xda   :  { %5453 = vmatpush3.msra.mxu0 %v858_v14  ;;  %5488 = vmatpush3.msra.mxu1 %v890_v15  ;;  %v851_v12 = vld [vmem:[#allocation7 + $0xa38] sm:$0xff]  ;;  %v866_v14 = vld [vmem:[#allocation7 + $0xab0] sm:$0xff] }
  0xdb   :  { %5454 = vmatprep.subr.mxu0 %v873_v16  ;;  %5489 = vmatprep.subr.mxu1 %v905_v17  ;;  %v883_v13 = vld [vmem:[#allocation7 + $0xb38] sm:$0xff]  ;;  %v898_v15 = vld [vmem:[#allocation7 + $0xbb0] sm:$0xff] }
  0xdc   :  { %5455 = vmatpush3.msra.mxu0 %v857_v19  ;;  %5490 = vmatpush3.msra.mxu1 %v889_v20  ;;  %v850_v16 = vld [vmem:[#allocation7 + $0xa30] sm:$0xff]  ;;  %v865_v19 = vld [vmem:[#allocation7 + $0xaa8] sm:$0xff] }
  0xdd   :  { %5456 = vmatprep.subr.mxu0 %v872_v21  ;;  %5491 = vmatprep.subr.mxu1 %v904_v27  ;;  %v882_v17 = vld [vmem:[#allocation7 + $0xb30] sm:$0xff]  ;;  %v897_v20 = vld [vmem:[#allocation7 + $0xba8] sm:$0xff] }
  0xde   :  { %5457 = vmatpush3.msra.mxu0 %v856_v31  ;;  %5492 = vmatpush3.msra.mxu1 %v888_v39  ;;  %v849_v21 = vld [vmem:[#allocation7 + $0xa28] sm:$0xff]  ;;  %v864_v31 = vld [vmem:[#allocation7 + $0xaa0] sm:$0xff] }
  0xdf   :  { %5458 = vmatprep.subr.mxu0 %v871_v42  ;;  %5493 = vmatprep.subr.mxu1 %v903_v43  ;;  %v881_v27 = vld [vmem:[#allocation7 + $0xb28] sm:$0xff]  ;;  %v896_v39 = vld [vmem:[#allocation7 + $0xba0] sm:$0xff] }
  0xe0   :  { %5459 = vmatpush3.msra.mxu0 %v855_v44  ;;  %5494 = vmatpush3.msra.mxu1 %v887_v45  ;;  %v848_v42 = vld [vmem:[#allocation7 + $0xa20] sm:$0xff]  ;;  %v7641_v44 = vld [vmem:[#allocation4 + $0x18] sm:$0xff] }
  0xe1   :  { %5460 = vmatprep.subr.mxu0 %v870_v46  ;;  %5495 = vmatprep.subr.mxu1 %v902_v50  ;;  %v880_v43 = vld [vmem:[#allocation7 + $0xb20] sm:$0xff]  ;;  %v863_v45 = vld [vmem:[#allocation7 + $0xa98] sm:$0xff] }
  0xe2   :  { %5461 = vmatpush3.msra.mxu0 %v854_v51  ;;  %5496 = vmatpush3.msra.mxu1 %v886_v5  ;;  %v895_v46 = vld [vmem:[#allocation7 + $0xb98] sm:$0xff]  ;;  %v862_v5 = vld [vmem:[#allocation7 + $0xa90] sm:$0xff] }
  0xe3   :  { %5462 = vmatprep.subr.mxu0 %v869_v18  ;;  %5497 = vmatprep.subr.mxu1 %v901_v55  ;;  %v847_v50 = vld [vmem:[#allocation7 + $0xa18] sm:$0xff]  ;;  %v894_v18 = vld [vmem:[#allocation7 + $0xb90] sm:$0xff]  ;;  %v163_v55 = vrot.slane %v7641_v44, %v7430_v47 }
  0xe4   :  { %5463 = vmatpush3.msra.mxu0 %v853_v56  ;;  %5498 = vmatpush3.msra.mxu1 %v885_v59  ;;  %v879_v51 = vld [vmem:[#allocation7 + $0xb18] sm:$0xff]  ;;  %v167_v56 = vrot.slane %v7641_v44, %v7432_v48  ;;  %v846_v59 = vld [vmem:[#allocation7 + $0xa10] sm:$0xff] }
  0xe5   :  { %5464 = vmatprep.subr.mxu0 %v868_v60  ;;  %5499 = vmatprep.subr.mxu1 %v900_v4  ;;  %v878_v60 = vld [vmem:[#allocation7 + $0xb10] sm:$0xff]  ;;  %v171_v4 = vrot.slane %v7641_v44, %v7434_v49 }
  0xe6   :  { %5465 = vmatpush3.msra.mxu0 %v852_v6  ;;  %5500 = vmatpush3.msra.mxu1 %v884_v9  ;;  %v175_v6 = vrot.slane %v7641_v44, %v7436_v52  ;;  %v179_v9 = vrot.slane %v7641_v44, %v7438_v53 }
  0xe7   :  { %5466 = vmatprep.subr.mxu0 %v867_v10  ;;  %5501 = vmatprep.subr.mxu1 %v899_v11  ;;  %v861_v10 = vld [vmem:[#allocation7 + $0xa88] sm:$0xff] }
  0xe8   :  { %5467 = vmatpush3.msra.mxu0 %v851_v12  ;;  %5502 = vmatpush3.msra.mxu1 %v883_v13  ;;  %v893_v11 = vld [vmem:[#allocation7 + $0xb88] sm:$0xff]  ;;  %v183_v12 = vrot.slane %v7641_v44, %v7440_v54  ;;  %v187_v13 = vrot.slane %v7641_v44, %v7442_v57 }
  0xe9   :  { %5468 = vmatprep.subr.mxu0 %v866_v14  ;;  %5503 = vmatprep.subr.mxu1 %v898_v15  ;;  %v191_v14 = vrot.slane %v7641_v44, %v7444_v58  ;;  %v845_v15 = vld [vmem:[#allocation7 + $0xa08] sm:$0xff] }
  0xea   :  { %5469 = vmatpush3.msra.mxu0 %v850_v16  ;;  %5504 = vmatpush3.msra.mxu1 %v882_v17  ;;  %v877_v16 = vld [vmem:[#allocation7 + $0xb08] sm:$0xff]  ;;  %v1127_v17 = vrot.slane %v7631_v41, %v7440_v54 }
  0xeb   :  { %5470 = vmatprep.subr.mxu0 %v865_v19  ;;  %5505 = vmatprep.subr.mxu1 %v897_v20  ;;  %v1123_v19 = vrot.slane %v7631_v41, %v7438_v53  ;;  %v860_v20 = vld [vmem:[#allocation7 + $0xa80] sm:$0xff] }
  0xec   :  { %5471 = vmatpush3.msra.mxu0 %v849_v21  ;;  %5506 = vmatpush3.msra.mxu1 %v881_v27  ;;  %v892_v21 = vld [vmem:[#allocation7 + $0xb80] sm:$0xff]  ;;  %v1135_v27 = vrot.slane %v7631_v41, %v7444_v58 }
  0xed   :  { %5472 = vmatprep.subr.mxu0 %v864_v31  ;;  %5507 = vmatprep.subr.mxu1 %v896_v39  ;;  %v248_v31 = vpack.c.bf16 %v163_v55, %v163_v55  ;;  %v249_v39 = vpack.c.bf16 %v167_v56, %v167_v56  ;;  %v971_v55 = vld [vmem:[#allocation7 + $0xdf8] sm:$0xff] }
  0xee   :  { %5473 = vmatpush3.msra.mxu0 %v848_v42  ;;  %5508 = vmatpush3.msra.mxu1 %v880_v43  ;;  %v844_v42 = vld [vmem:[#allocation7 + $0xa00] sm:$0xff]  ;;  %v250_v43 = vpack.c.bf16 %v171_v4, %v171_v4  ;;  %v923_v56 = vld [vmem:[#allocation7 + $0xc78] sm:$0xff] }
  0xef   :  { %5474 = vmatprep.subr.mxu0 %v863_v45  ;;  %5509 = vmatprep.subr.mxu1 %v895_v46  ;;  %v251_v45 = vpack.c.bf16 %v175_v6, %v175_v6  ;;  %v252_v46 = vpack.c.bf16 %v179_v9, %v179_v9  ;;  %v955_v4 = vld [vmem:[#allocation7 + $0xd78] sm:$0xff]  ;;  %v7667_v6 = vunpack.c.l.bf16 %v248_v31  ;;  %v7669_v9 = vunpack.c.l.bf16 %v249_v39  ;;  %v953_v31 = vld [vmem:[#allocation7 + $0xd68] sm:$0xff] }
  0xf0   :  { %5475 = vmatpush3.msra.mxu0 %v847_v50  ;;  %5510 = vmatpush3.msra.mxu1 %v879_v51  ;;  %v876_v50 = vld [vmem:[#allocation7 + $0xb00] sm:$0xff]  ;;  %v253_v51 = vpack.c.bf16 %v183_v12, %v183_v12  ;;  %v938_v12 = vld [vmem:[#allocation7 + $0xcf0] sm:$0xff] }
  0xf1   :  { %5476 = vmatprep.subr.mxu0 %v862_v5  ;;  %5511 = vmatprep.subr.mxu1 %v894_v18  ;;  %v254_v5 = vpack.c.bf16 %v187_v13, %v187_v13  ;;  %v255_v18 = vpack.c.bf16 %v191_v14, %v191_v14  ;;  %v970_v13 = vld [vmem:[#allocation7 + $0xdf0] sm:$0xff]  ;;  %v467_v39 = vcombine.low %v7667_v6, %v7669_v9 }
  0xf2   :  { %5477 = vmatpush3.msra.mxu0 %v846_v59  ;;  %5512 = vmatpush3.msra.mxu1 %v878_v60  ;;  %v939_v59 = vld [vmem:[#allocation7 + $0xcf8] sm:$0xff]  ;;  %v1131_v60 = vrot.slane %v7631_v41, %v7442_v57  ;;  %v7675_v41 = vunpack.c.l.bf16 %v252_v46  ;;  %v7677_v14 = vunpack.c.l.bf16 %v253_v51  ;;  %v920_v51 = vld [vmem:[#allocation7 + $0xc60] sm:$0xff] }
  0xf3   :  { %5478 = vmatprep.subr.mxu0 %v861_v10  ;;  %5513 = vmatprep.subr.mxu1 %v893_v11  ;;  %v7671_v10 = vunpack.c.l.bf16 %v250_v43  ;;  %v7673_v11 = vunpack.c.l.bf16 %v251_v45  ;;  %v968_v43 = vld [vmem:[#allocation7 + $0xde0] sm:$0xff] }
  0xf4   :  { %5479 = vmatpush3.msra.mxu0 %v845_v15  ;;  %5514 = vmatpush3.msra.mxu1 %v877_v16  ;;  %v7679_v15 = vunpack.c.l.bf16 %v254_v5  ;;  %v7681_v16 = vunpack.c.l.bf16 %v255_v18  ;;  %v469_v46 = vcombine.low %v7675_v41, %v7677_v14  ;;  %v952_v5 = vld [vmem:[#allocation7 + $0xd60] sm:$0xff]  ;;  %v935_v18 = vld [vmem:[#allocation7 + $0xcd8] sm:$0xff] }
  0xf5   :  { %5480 = vmatprep.subr.mxu0 %v860_v20  ;;  %5515 = vmatprep.subr.mxu1 %v892_v21  ;;  %v937_v20 = vld [vmem:[#allocation7 + $0xce8] sm:$0xff]  ;;  %v468_v45 = vcombine.low %v7671_v10, %v7673_v11 }
  0xf6   :  { %5481 = vmatpush3.msra.mxu0 %v844_v42  ;;  %1964 = vmatprep.mubr.f32.mxu0 %v1127_v17  ;;  %v922_v17 = vld [vmem:[#allocation7 + $0xc70] sm:$0xff]  ;;  %v969_v21 = vld [vmem:[#allocation7 + $0xde8] sm:$0xff]  ;;  %v936_v42 = vld [vmem:[#allocation7 + $0xce0] sm:$0xff] }
  0xf7   :  { %5516 = vmatpush3.msra.mxu1 %v876_v50  ;;  %1965 = vmatmul.mubr.f32.vlgmr.msra.gmra.mxu0 %v1123_v19  ;;  %v954_v19 = vld [vmem:[#allocation7 + $0xd70] sm:$0xff]  ;;  %v470_v50 = vcombine.low %v7679_v15, %v7681_v16 }
  0xf8   :  { %2034 = vmatprep.mubr.f32.mxu1 %v1135_v27  ;;  %5520 = vmatprep.subr.mxu0 %v939_v59  ;;  %v921_v27 = vld [vmem:[#allocation7 + $0xc68] sm:$0xff]  ;;  %v967_v59 = vld [vmem:[#allocation7 + $0xdd8] sm:$0xff] }
  0xf9   :  { %5555 = vmatprep.subr.mxu1 %v971_v55  ;;  %2035 = vmatmul.mubr.f32.vlgmr.msra.gmra.mxu1 %v1131_v60  ;;  %v919_v60 = vld [vmem:[#allocation7 + $0xc58] sm:$0xff] }
  0xfa   :  { %5521 = vmatpush3.msra.mxu0 %v923_v56  ;;  %5556 = vmatpush3.msra.mxu1 %v955_v4  ;;  %v951_v55 = vld [vmem:[#allocation7 + $0xd58] sm:$0xff]  ;;  %v477_v56 = vrot.slane %v467_v39, %v7448_v62  ;;  %v934_v4 = vld [vmem:[#allocation7 + $0xcd0] sm:$0xff]  ;;  %v917_v39 = vld [vmem:[#allocation7 + $0xc48] sm:$0xff] }
  0xfb   :  { %5522 = vmatprep.subr.mxu0 %v938_v12  ;;  %5557 = vmatprep.subr.mxu1 %v970_v13  ;;  %v966_v12 = vld [vmem:[#allocation7 + $0xdd0] sm:$0xff]  ;;  %v484_v13 = vrot.slane %v468_v45, %v7448_v62  ;;  %v964_v45 = vld [vmem:[#allocation7 + $0xdc0] sm:$0xff] }
  0xfc   :  { %5523 = vmatpush3.msra.mxu0 %v922_v17  ;;  %5558 = vmatpush3.msra.mxu1 %v954_v19  ;;  %v491_v17 = vrot.slane %v469_v46, %v7448_v62  ;;  %v498_v19 = vrot.slane %v470_v50, %v7448_v62  ;;  %v916_v50 = vld [vmem:[#allocation7 + $0xc40] sm:$0xff] }
  0xfd   :  { %5524 = vmatprep.subr.mxu0 %v937_v20  ;;  %5559 = vmatprep.subr.mxu1 %v969_v21  ;;  %v918_v20 = vld [vmem:[#allocation7 + $0xc50] sm:$0xff] }
  0xfe   :  { %5525 = vmatpush3.msra.mxu0 %v921_v27  ;;  %5560 = vmatpush3.msra.mxu1 %v953_v31  ;;  %v950_v21 = vld [vmem:[#allocation7 + $0xd50] sm:$0xff]  ;;  %v933_v27 = vld [vmem:[#allocation7 + $0xcc8] sm:$0xff]  ;;  %v500_v46 = vcombine.low %v491_v17, %v498_v19 }
  0xff   :  { %5526 = vmatprep.subr.mxu0 %v936_v42  ;;  %5561 = vmatprep.subr.mxu1 %v968_v43  ;;  %v965_v31 = vld [vmem:[#allocation7 + $0xdc8] sm:$0xff]  ;;  %v932_v43 = vld [vmem:[#allocation7 + $0xcc0] sm:$0xff]  ;;  %v946_v17 = vld [vmem:[#allocation7 + $0xd30] sm:$0xff] }
 0x100   :  { %5527 = vmatpush3.msra.mxu0 %v920_v51  ;;  %5562 = vmatpush3.msra.mxu1 %v952_v5  ;;  %v949_v42 = vld [vmem:[#allocation7 + $0xd48] sm:$0xff]  ;;  %v499_v51 = vcombine.low %v477_v56, %v484_v13  ;;  %v948_v5 = vld [vmem:[#allocation7 + $0xd40] sm:$0xff]  ;;  %v514_v56 = vrot.slane %v500_v46, %v7448_v62  ;;  %v914_v13 = vld [vmem:[#allocation7 + $0xc30] sm:$0xff] }
 0x101   :  { %5528 = vmatprep.subr.mxu0 %v935_v18  ;;  %5563 = vmatprep.subr.mxu1 %v967_v59  ;;  %v931_v18 = vld [vmem:[#allocation7 + $0xcb8] sm:$0xff]  ;;  %v929_v19 = vld [vmem:[#allocation7 + $0xca8] sm:$0xff] }
 0x102   :  { %5529 = vmatpush3.msra.mxu0 %v919_v60  ;;  %5564 = vmatpush3.msra.mxu1 %v951_v55  ;;  %v963_v59 = vld [vmem:[#allocation7 + $0xdb8] sm:$0xff] }
 0x103   :  { %5530 = vmatprep.subr.mxu0 %v934_v4  ;;  %5565 = vmatprep.subr.mxu1 %v966_v12  ;;  %v915_v60 = vld [vmem:[#allocation7 + $0xc38] sm:$0xff]  ;;  %v930_v4 = vld [vmem:[#allocation7 + $0xcb0] sm:$0xff] }
 0x104   :  { %5531 = vmatpush3.msra.mxu0 %v918_v20  ;;  %5566 = vmatpush3.msra.mxu1 %v950_v21  ;;  %v947_v55 = vld [vmem:[#allocation7 + $0xd38] sm:$0xff]  ;;  %v962_v12 = vld [vmem:[#allocation7 + $0xdb0] sm:$0xff]  ;;  %v507_v20 = vrot.slane %v499_v51, %v7448_v62  ;;  %v961_v21 = vld [vmem:[#allocation7 + $0xda8] sm:$0xff] }
 0x105   :  { %5532 = vmatprep.subr.mxu0 %v933_v27  ;;  %5567 = vmatprep.subr.mxu1 %v965_v31  ;;  %v913_v27 = vld [vmem:[#allocation7 + $0xc28] sm:$0xff]  ;;  %v912_v62 = vld [vmem:[#allocation7 + $0xc20] sm:$0xff]  ;;  %v927_v51 = vld [vmem:[#allocation7 + $0xc98] sm:$0xff] }
 0x106   :  { %5533 = vmatpush3.msra.mxu0 %v917_v39  ;;  %5568 = vmatpush3.msra.mxu1 %v949_v42  ;;  %v945_v31 = vld [vmem:[#allocation7 + $0xd28] sm:$0xff]  ;;  %v928_v39 = vld [vmem:[#allocation7 + $0xca0] sm:$0xff]  ;;  %v959_v46 = vld [vmem:[#allocation7 + $0xd98] sm:$0xff] }
 0x107   :  { %5534 = vmatprep.subr.mxu0 %v932_v43  ;;  %5569 = vmatprep.subr.mxu1 %v964_v45  ;;  %v960_v42 = vld [vmem:[#allocation7 + $0xda0] sm:$0xff]  ;;  %v515_v43 = vcombine.low %v507_v20, %v514_v56  ;;  %v957_v20 = vld [vmem:[#allocation7 + $0xd88] sm:$0xff] }
 0x108   :  { %5535 = vmatpush3.msra.mxu0 %v916_v50  ;;  %5570 = vmatpush3.msra.mxu1 %v948_v5  ;;  %v944_v45 = vld [vmem:[#allocation7 + $0xd20] sm:$0xff]  ;;  %v911_v50 = vld [vmem:[#allocation7 + $0xc18] sm:$0xff]  ;;  %v909_v56 = vld [vmem:[#allocation7 + $0xc08] sm:$0xff] }
 0x109   :  { %5536 = vmatprep.subr.mxu0 %v931_v18  ;;  %5571 = vmatprep.subr.mxu1 %v963_v59  ;;  %v943_v5 = vld [vmem:[#allocation7 + $0xd18] sm:$0xff]  ;;  %v926_v18 = vld [vmem:[#allocation7 + $0xc90] sm:$0xff] }
 0x10a   :  { %5537 = vmatpush3.msra.mxu0 %v915_v60  ;;  %5572 = vmatpush3.msra.mxu1 %v947_v55  ;;  %v958_v59 = vld [vmem:[#allocation7 + $0xd90] sm:$0xff]  ;;  %v7698_v60 = vsub.f32 %v7641_v44, %v515_v43 }
 0x10b   :  { %5538 = vmatprep.subr.mxu0 %v930_v4  ;;  %5573 = vmatprep.subr.mxu1 %v962_v12  ;;  %v910_v55 = vld [vmem:[#allocation7 + $0xc10] sm:$0xff]  ;;  %v925_v12 = vld [vmem:[#allocation7 + $0xc88] sm:$0xff] }
 0x10c   :  { %5539 = vmatpush3.msra.mxu0 %v914_v13  ;;  %5574 = vmatpush3.msra.mxu1 %v946_v17  ;;  %v942_v4 = vld [vmem:[#allocation7 + $0xd10] sm:$0xff]  ;;  %v941_v13 = vld [vmem:[#allocation7 + $0xd08] sm:$0xff]  ;;  %v924_v17 = vld [vmem:[#allocation7 + $0xc80] sm:$0xff]  ;;  %v1143_v44 = vrot.slane %v7698_v60, %v7432_v48  ;;  %v1147_v43 = vrot.slane %v7698_v60, %v7434_v49 }
 0x10d   :  { %5540 = vmatprep.subr.mxu0 %v929_v19  ;;  %5575 = vmatprep.subr.mxu1 %v961_v21  ;;  %v956_v19 = vld [vmem:[#allocation7 + $0xd80] sm:$0xff]  ;;  %v1035_v48 = vld [vmem:[#allocation7 + $0xff8] sm:$0xff]  ;;  %v985_v49 = vld [vmem:[#allocation7 + $0xe68] sm:$0xff] }
 0x10e   :  { %5541 = vmatpush3.msra.mxu0 %v913_v27  ;;  %5576 = vmatpush3.msra.mxu1 %v945_v31  ;;  %v908_v21 = vld [vmem:[#allocation7 + $0xc00] sm:$0xff]  ;;  %v1139_v27 = vrot.slane %v7698_v60, %v7430_v47  ;;  %v1002_v47 = vld [vmem:[#allocation7 + $0xef0] sm:$0xff] }
 0x10f   :  { %5542 = vmatprep.subr.mxu0 %v928_v39  ;;  %5577 = vmatprep.subr.mxu1 %v960_v42  ;;  %v940_v31 = vld [vmem:[#allocation7 + $0xd00] sm:$0xff]  ;;  %v1151_v39 = vrot.slane %v7698_v60, %v7436_v52  ;;  %v1003_v42 = vld [vmem:[#allocation7 + $0xef8] sm:$0xff]  ;;  %v986_v52 = vld [vmem:[#allocation7 + $0xe70] sm:$0xff] }
 0x110   :  { %5543 = vmatpush3.msra.mxu0 %v912_v62  ;;  %5578 = vmatpush3.msra.mxu1 %v944_v45  ;;  %v987_v62 = vld [vmem:[#allocation7 + $0xe78] sm:$0xff] }
 0x111   :  { %5544 = vmatprep.subr.mxu0 %v927_v51  ;;  %5579 = vmatprep.subr.mxu1 %v959_v46  ;;  %v1019_v45 = vld [vmem:[#allocation7 + $0xf78] sm:$0xff]  ;;  %v1034_v51 = vld [vmem:[#allocation7 + $0xff0] sm:$0xff] }
 0x112   :  { %5545 = vmatpush3.msra.mxu0 %v911_v50  ;;  %5580 = vmatpush3.msra.mxu1 %v943_v5  ;;  %v1018_v46 = vld [vmem:[#allocation7 + $0xf70] sm:$0xff]  ;;  %v1001_v50 = vld [vmem:[#allocation7 + $0xee8] sm:$0xff] }
 0x113   :  { %5546 = vmatprep.subr.mxu0 %v926_v18  ;;  %5581 = vmatprep.subr.mxu1 %v958_v59  ;;  %v1033_v5 = vld [vmem:[#allocation7 + $0xfe8] sm:$0xff]  ;;  %v1000_v59 = vld [vmem:[#allocation7 + $0xee0] sm:$0xff] }
 0x114   :  { %5547 = vmatpush3.msra.mxu0 %v910_v55  ;;  %5582 = vmatpush3.msra.mxu1 %v942_v4  ;;  %v1017_v18 = vld [vmem:[#allocation7 + $0xf68] sm:$0xff]  ;;  %v1032_v55 = vld [vmem:[#allocation7 + $0xfe0] sm:$0xff] }
 0x115   :  { %5548 = vmatprep.subr.mxu0 %v925_v12  ;;  %5583 = vmatprep.subr.mxu1 %v957_v20  ;;  %v984_v4 = vld [vmem:[#allocation7 + $0xe60] sm:$0xff]  ;;  %v999_v20 = vld [vmem:[#allocation7 + $0xed8] sm:$0xff] }
 0x116   :  { %5549 = vmatpush3.msra.mxu0 %v909_v56  ;;  %5584 = vmatpush3.msra.mxu1 %v941_v13  ;;  %v1016_v12 = vld [vmem:[#allocation7 + $0xf60] sm:$0xff]  ;;  %v1031_v56 = vld [vmem:[#allocation7 + $0xfd8] sm:$0xff] }
 0x117   :  { %5550 = vmatprep.subr.mxu0 %v924_v17  ;;  %5585 = vmatprep.subr.mxu1 %v956_v19  ;;  %v983_v13 = vld [vmem:[#allocation7 + $0xe58] sm:$0xff]  ;;  %v998_v19 = vld [vmem:[#allocation7 + $0xed0] sm:$0xff] }
 0x118   :  { %5551 = vmatpush3.msra.mxu0 %v908_v21  ;;  %2104 = vmatprep.mubr.f32.mxu0 %v1143_v44  ;;  %v1015_v17 = vld [vmem:[#allocation7 + $0xf58] sm:$0xff]  ;;  %v1030_v44 = vld [vmem:[#allocation7 + $0xfd0] sm:$0xff] }
 0x119   :  { %5586 = vmatpush3.msra.mxu1 %v940_v31  ;;  %2105 = vmatmul.mubr.f32.vlgmr.msra.gmra.mxu0 %v1139_v27  ;;  %v982_v21 = vld [vmem:[#allocation7 + $0xe50] sm:$0xff]  ;;  %v997_v31 = vld [vmem:[#allocation7 + $0xec8] sm:$0xff] }
 0x11a   :  { %2174 = vmatprep.mubr.f32.mxu1 %v1151_v39  ;;  %5590 = vmatprep.subr.mxu0 %v1003_v42  ;;  %v1014_v27 = vld [vmem:[#allocation7 + $0xf50] sm:$0xff]  ;;  %v1029_v39 = vld [vmem:[#allocation7 + $0xfc8] sm:$0xff] }
 0x11b   :  { %5625 = vmatprep.subr.mxu1 %v1035_v48  ;;  %2175 = vmatmul.mubr.f32.vlgmr.msra.gmra.mxu1 %v1147_v43  ;;  %v981_v42 = vld [vmem:[#allocation7 + $0xe48] sm:$0xff]  ;;  %v996_v48 = vld [vmem:[#allocation7 + $0xec0] sm:$0xff] }
 0x11c   :  { %5591 = vmatpush3.msra.mxu0 %v987_v62  ;;  %5626 = vmatpush3.msra.mxu1 %v1019_v45  ;;  %v1013_v43 = vld [vmem:[#allocation7 + $0xf48] sm:$0xff]  ;;  %v1028_v62 = vld [vmem:[#allocation7 + $0xfc0] sm:$0xff] }
 0x11d   :  { %5592 = vmatprep.subr.mxu0 %v1002_v47  ;;  %5627 = vmatprep.subr.mxu1 %v1034_v51  ;;  %v980_v45 = vld [vmem:[#allocation7 + $0xe40] sm:$0xff]  ;;  %v995_v51 = vld [vmem:[#allocation7 + $0xeb8] sm:$0xff] }
 0x11e   :  { %5593 = vmatpush3.msra.mxu0 %v986_v52  ;;  %5628 = vmatpush3.msra.mxu1 %v1018_v46  ;;  %v1012_v47 = vld [vmem:[#allocation7 + $0xf40] sm:$0xff]  ;;  %v1027_v52 = vld [vmem:[#allocation7 + $0xfb8] sm:$0xff] }
 0x11f   :  { %5594 = vmatprep.subr.mxu0 %v1001_v50  ;;  %5629 = vmatprep.subr.mxu1 %v1033_v5  ;;  %v979_v46 = vld [vmem:[#allocation7 + $0xe38] sm:$0xff]  ;;  %v994_v5 = vld [vmem:[#allocation7 + $0xeb0] sm:$0xff] }
 0x120   :  { %5595 = vmatpush3.msra.mxu0 %v985_v49  ;;  %5630 = vmatpush3.msra.mxu1 %v1017_v18  ;;  %v1011_v50 = vld [vmem:[#allocation7 + $0xf38] sm:$0xff]  ;;  %v1026_v49 = vld [vmem:[#allocation7 + $0xfb0] sm:$0xff] }
 0x121   :  { %5596 = vmatprep.subr.mxu0 %v1000_v59  ;;  %5631 = vmatprep.subr.mxu1 %v1032_v55  ;;  %v978_v18 = vld [vmem:[#allocation7 + $0xe30] sm:$0xff]  ;;  %v993_v55 = vld [vmem:[#allocation7 + $0xea8] sm:$0xff] }
 0x122   :  { %5597 = vmatpush3.msra.mxu0 %v984_v4  ;;  %5632 = vmatpush3.msra.mxu1 %v1016_v12  ;;  %v1010_v59 = vld [vmem:[#allocation7 + $0xf30] sm:$0xff]  ;;  %v1025_v4 = vld [vmem:[#allocation7 + $0xfa8] sm:$0xff] }
 0x123   :  { %5598 = vmatprep.subr.mxu0 %v999_v20  ;;  %5633 = vmatprep.subr.mxu1 %v1031_v56  ;;  %v977_v12 = vld [vmem:[#allocation7 + $0xe28] sm:$0xff]  ;;  %v992_v56 = vld [vmem:[#allocation7 + $0xea0] sm:$0xff] }
 0x124   :  { %5599 = vmatpush3.msra.mxu0 %v983_v13  ;;  %5634 = vmatpush3.msra.mxu1 %v1015_v17  ;;  %v1009_v20 = vld [vmem:[#allocation7 + $0xf28] sm:$0xff]  ;;  %v1024_v13 = vld [vmem:[#allocation7 + $0xfa0] sm:$0xff] }
 0x125   :  { %5600 = vmatprep.subr.mxu0 %v998_v19  ;;  %5635 = vmatprep.subr.mxu1 %v1030_v44  ;;  %v976_v17 = vld [vmem:[#allocation7 + $0xe20] sm:$0xff]  ;;  %v991_v44 = vld [vmem:[#allocation7 + $0xe98] sm:$0xff] }
 0x126   :  { %5601 = vmatpush3.msra.mxu0 %v982_v21  ;;  %5636 = vmatpush3.msra.mxu1 %v1014_v27  ;;  %v1008_v19 = vld [vmem:[#allocation7 + $0xf20] sm:$0xff]  ;;  %v1023_v21 = vld [vmem:[#allocation7 + $0xf98] sm:$0xff] }
 0x127   :  { %5602 = vmatprep.subr.mxu0 %v997_v31  ;;  %5637 = vmatprep.subr.mxu1 %v1029_v39  ;;  %v975_v27 = vld [vmem:[#allocation7 + $0xe18] sm:$0xff]  ;;  %v990_v39 = vld [vmem:[#allocation7 + $0xe90] sm:$0xff] }
 0x128   :  { %5603 = vmatpush3.msra.mxu0 %v981_v42  ;;  %5638 = vmatpush3.msra.mxu1 %v1013_v43  ;;  %v1007_v31 = vld [vmem:[#allocation7 + $0xf18] sm:$0xff]  ;;  %v1022_v42 = vld [vmem:[#allocation7 + $0xf90] sm:$0xff] }
 0x129   :  { %5604 = vmatprep.subr.mxu0 %v996_v48  ;;  %5639 = vmatprep.subr.mxu1 %v1028_v62  ;;  %v974_v43 = vld [vmem:[#allocation7 + $0xe10] sm:$0xff]  ;;  %v989_v62 = vld [vmem:[#allocation7 + $0xe88] sm:$0xff] }
 0x12a   :  { %5605 = vmatpush3.msra.mxu0 %v980_v45  ;;  %5640 = vmatpush3.msra.mxu1 %v1012_v47  ;;  %v1006_v48 = vld [vmem:[#allocation7 + $0xf10] sm:$0xff]  ;;  %v1021_v45 = vld [vmem:[#allocation7 + $0xf88] sm:$0xff] }
 0x12b   :  { %5606 = vmatprep.subr.mxu0 %v995_v51  ;;  %5641 = vmatprep.subr.mxu1 %v1027_v52  ;;  %v973_v47 = vld [vmem:[#allocation7 + $0xe08] sm:$0xff]  ;;  %v988_v52 = vld [vmem:[#allocation7 + $0xe80] sm:$0xff] }
 0x12c   :  { %5607 = vmatpush3.msra.mxu0 %v979_v46  ;;  %5642 = vmatpush3.msra.mxu1 %v1011_v50  ;;  %v1005_v51 = vld [vmem:[#allocation7 + $0xf08] sm:$0xff]  ;;  %v1020_v46 = vld [vmem:[#allocation7 + $0xf80] sm:$0xff]  ;;  %v1159_v50 = vrot.slane %v7698_v60, %v7440_v54  ;;  %v6791_v54 = vld [vmem:[#allocation7 + $0xf8] sm:$0xff] }
 0x12d   :  { %5608 = vmatprep.subr.mxu0 %v994_v5  ;;  %5643 = vmatprep.subr.mxu1 %v1026_v49  ;;  %v972_v5 = vld [vmem:[#allocation7 + $0xe00] sm:$0xff]  ;;  %v1155_v49 = vrot.slane %v7698_v60, %v7438_v53  ;;  %v6793_v53 = vld [vmem:[#allocation7 + $0x78] sm:$0xff] }
 0x12e   :  { %5609 = vmatpush3.msra.mxu0 %v978_v18  ;;  %5644 = vmatpush3.msra.mxu1 %v1010_v59  ;;  %v1004_v18 = vld [vmem:[#allocation7 + $0xf00] sm:$0xff]  ;;  %v1167_v59 = vrot.slane %v7698_v60, %v7444_v58  ;;  %v6795_v58 = vld [vmem:[#allocation7 + $0xf0] sm:$0xff] }
 0x12f   :  { %5610 = vmatprep.subr.mxu0 %v993_v55  ;;  %5645 = vmatprep.subr.mxu1 %v1025_v4  ;;  %v1163_v55 = vrot.slane %v7698_v60, %v7442_v57  ;;  %v6792_v4 = vld [vmem:[#allocation7 + $0x1f8] sm:$0xff]  ;;  %v6798_v57 = vld [vmem:[#allocation7 + $0x170] sm:$0xff]  ;;  %v6799_v60 = vld [vmem:[#allocation7 + $0xe8] sm:$0xff] }
 0x130   :  { %5611 = vmatpush3.msra.mxu0 %v977_v12  ;;  %5646 = vmatpush3.msra.mxu1 %v1009_v20  ;;  %v6794_v12 = vld [vmem:[#allocation7 + $0x178] sm:$0xff]  ;;  %v6796_v20 = vld [vmem:[#allocation7 + $0x1f0] sm:$0xff] }
 0x131   :  { %5612 = vmatprep.subr.mxu0 %v992_v56  ;;  %5647 = vmatprep.subr.mxu1 %v1024_v13  ;;  %v6797_v56 = vld [vmem:[#allocation7 + $0x70] sm:$0xff]  ;;  %v6800_v13 = vld [vmem:[#allocation7 + $0x1e8] sm:$0xff] }
 0x132   :  { %5613 = vmatpush3.msra.mxu0 %v976_v17  ;;  %5648 = vmatpush3.msra.mxu1 %v1008_v19  ;;  %v6801_v17 = vld [vmem:[#allocation7 + $0x68] sm:$0xff] }
 0x133   :  { %5614 = vmatprep.subr.mxu0 %v991_v44  ;;  %5649 = vmatprep.subr.mxu1 %v1023_v21  ;;  %v6802_v19 = vld [vmem:[#allocation7 + $0x168] sm:$0xff]  ;;  %v6803_v44 = vld [vmem:[#allocation7 + $0xe0] sm:$0xff] }
 0x134   :  { %5615 = vmatpush3.msra.mxu0 %v975_v27  ;;  %5650 = vmatpush3.msra.mxu1 %v1007_v31  ;;  %v6804_v21 = vld [vmem:[#allocation7 + $0x1e0] sm:$0xff] }
 0x135   :  { %5616 = vmatprep.subr.mxu0 %v990_v39  ;;  %5651 = vmatprep.subr.mxu1 %v1022_v42  ;;  %v6805_v27 = vld [vmem:[#allocation7 + $0x60] sm:$0xff]  ;;  %v6807_v39 = vld [vmem:[#allocation7 + $0xd8] sm:$0xff] }
 0x136   :  { %5617 = vmatpush3.msra.mxu0 %v974_v43  ;;  %5652 = vmatpush3.msra.mxu1 %v1006_v48  ;;  %v6806_v31 = vld [vmem:[#allocation7 + $0x160] sm:$0xff]  ;;  %v6808_v42 = vld [vmem:[#allocation7 + $0x1d8] sm:$0xff] }
 0x137   :  { %5618 = vmatprep.subr.mxu0 %v989_v62  ;;  %5653 = vmatprep.subr.mxu1 %v1021_v45  ;;  %v6809_v43 = vld [vmem:[#allocation7 + $0x58] sm:$0xff]  ;;  %v6811_v62 = vld [vmem:[#allocation7 + $0xd0] sm:$0xff] }
 0x138   :  { %5619 = vmatpush3.msra.mxu0 %v973_v47  ;;  %5654 = vmatpush3.msra.mxu1 %v1005_v51  ;;  %v6810_v48 = vld [vmem:[#allocation7 + $0x158] sm:$0xff]  ;;  %v6812_v45 = vld [vmem:[#allocation7 + $0x1d0] sm:$0xff] }
 0x139   :  { %5620 = vmatprep.subr.mxu0 %v988_v52  ;;  %5655 = vmatprep.subr.mxu1 %v1020_v46  ;;  %v6813_v47 = vld [vmem:[#allocation7 + $0x50] sm:$0xff]  ;;  %v6815_v52 = vld [vmem:[#allocation7 + $0xc8] sm:$0xff] }
 0x13a   :  { %5621 = vmatpush3.msra.mxu0 %v972_v5  ;;  %2244 = vmatprep.mubr.f32.mxu0 %v1159_v50  ;;  %v6814_v51 = vld [vmem:[#allocation7 + $0x150] sm:$0xff]  ;;  %v6816_v46 = vld [vmem:[#allocation7 + $0x1c8] sm:$0xff] }
 0x13b   :  { %5656 = vmatpush3.msra.mxu1 %v1004_v18  ;;  %2245 = vmatmul.mubr.f32.vlgmr.msra.gmra.mxu0 %v1155_v49  ;;  %v6817_v50 = vld [vmem:[#allocation7 + $0x48] sm:$0xff]  ;;  %v6819_v49 = vld [vmem:[#allocation7 + $0xc0] sm:$0xff] }
 0x13c   :  { %2314 = vmatprep.mubr.f32.mxu1 %v1167_v59  ;;  %5660 = vmatprep.subr.mxu0 %v6791_v54  ;;  %v6818_v5 = vld [vmem:[#allocation7 + $0x148] sm:$0xff]  ;;  %v6820_v18 = vld [vmem:[#allocation7 + $0x1c0] sm:$0xff]  ;;  %v6823_v54 = vld [vmem:[#allocation7 + $0xb8] sm:$0xff] }
 0x13d   :  { %5695 = vmatprep.subr.mxu1 %v6792_v4  ;;  %2315 = vmatmul.mubr.f32.vlgmr.msra.gmra.mxu1 %v1163_v55  ;;  %v6821_v59 = vld [vmem:[#allocation7 + $0x40] sm:$0xff]  ;;  %v6824_v4 = vld [vmem:[#allocation7 + $0x1b8] sm:$0xff] }
 0x13e   :  { %5661 = vmatpush3.msra.mxu0 %v6793_v53  ;;  %5696 = vmatpush3.msra.mxu1 %v6794_v12  ;;  %v6822_v55 = vld [vmem:[#allocation7 + $0x140] sm:$0xff]  ;;  %v6825_v53 = vld [vmem:[#allocation7 + $0x38] sm:$0xff] }
 0x13f   :  { %5662 = vmatprep.subr.mxu0 %v6795_v58  ;;  %5697 = vmatprep.subr.mxu1 %v6796_v20  ;;  %v6826_v12 = vld [vmem:[#allocation7 + $0x138] sm:$0xff]  ;;  %v6827_v58 = vld [vmem:[#allocation7 + $0xb0] sm:$0xff] }
 0x140   :  { %5663 = vmatpush3.msra.mxu0 %v6797_v56  ;;  %5698 = vmatpush3.msra.mxu1 %v6798_v57  ;;  %v6828_v20 = vld [vmem:[#allocation7 + $0x1b0] sm:$0xff] }
 0x141   :  { %5664 = vmatprep.subr.mxu0 %v6799_v60  ;;  %5699 = vmatprep.subr.mxu1 %v6800_v13  ;;  %v6829_v56 = vld [vmem:[#allocation7 + $0x30] sm:$0xff]  ;;  %v6831_v60 = vld [vmem:[#allocation7 + $0xa8] sm:$0xff] }
 0x142   :  { %5665 = vmatpush3.msra.mxu0 %v6801_v17  ;;  %5700 = vmatpush3.msra.mxu1 %v6802_v19  ;;  %v6830_v57 = vld [vmem:[#allocation7 + $0x130] sm:$0xff]  ;;  %v6832_v13 = vld [vmem:[#allocation7 + $0x1a8] sm:$0xff] }
 0x143   :  { %5666 = vmatprep.subr.mxu0 %v6803_v44  ;;  %5701 = vmatprep.subr.mxu1 %v6804_v21  ;;  %v6833_v17 = vld [vmem:[#allocation7 + $0x28] sm:$0xff]  ;;  %v6835_v44 = vld [vmem:[#allocation7 + $0xa0] sm:$0xff] }
 0x144   :  { %5667 = vmatpush3.msra.mxu0 %v6805_v27  ;;  %5702 = vmatpush3.msra.mxu1 %v6806_v31  ;;  %v6834_v19 = vld [vmem:[#allocation7 + $0x128] sm:$0xff]  ;;  %v6836_v21 = vld [vmem:[#allocation7 + $0x1a0] sm:$0xff] }
 0x145   :  { %5668 = vmatprep.subr.mxu0 %v6807_v39  ;;  %5703 = vmatprep.subr.mxu1 %v6808_v42  ;;  %v6837_v27 = vld [vmem:[#allocation7 + $0x20] sm:$0xff]  ;;  %v6839_v39 = vld [vmem:[#allocation7 + $0x98] sm:$0xff] }
 0x146   :  { %5669 = vmatpush3.msra.mxu0 %v6809_v43  ;;  %5704 = vmatpush3.msra.mxu1 %v6810_v48  ;;  %v6838_v31 = vld [vmem:[#allocation7 + $0x120] sm:$0xff]  ;;  %v6840_v42 = vld [vmem:[#allocation7 + $0x198] sm:$0xff] }
 0x147   :  { %5670 = vmatprep.subr.mxu0 %v6811_v62  ;;  %5705 = vmatprep.subr.mxu1 %v6812_v45  ;;  %v6841_v43 = vld [vmem:[#allocation7 + $0x18] sm:$0xff]  ;;  %v6843_v62 = vld [vmem:[#allocation7 + $0x90] sm:$0xff] }
 0x148   :  { %5671 = vmatpush3.msra.mxu0 %v6813_v47  ;;  %5706 = vmatpush3.msra.mxu1 %v6814_v51  ;;  %v6842_v48 = vld [vmem:[#allocation7 + $0x118] sm:$0xff]  ;;  %v6844_v45 = vld [vmem:[#allocation7 + $0x190] sm:$0xff] }
 0x149   :  { %5672 = vmatprep.subr.mxu0 %v6815_v52  ;;  %5707 = vmatprep.subr.mxu1 %v6816_v46  ;;  %v6845_v47 = vld [vmem:[#allocation7 + $0x10] sm:$0xff]  ;;  %v6847_v52 = vld [vmem:[#allocation7 + $0x88] sm:$0xff] }
 0x14a   :  { %5673 = vmatpush3.msra.mxu0 %v6817_v50  ;;  %5708 = vmatpush3.msra.mxu1 %v6818_v5  ;;  %v6846_v51 = vld [vmem:[#allocation7 + $0x110] sm:$0xff]  ;;  %v6848_v46 = vld [vmem:[#allocation7 + $0x188] sm:$0xff] }
 0x14b   :  { %5674 = vmatprep.subr.mxu0 %v6819_v49  ;;  %5709 = vmatprep.subr.mxu1 %v6820_v18  ;;  %v6849_v50 = vld [vmem:[#allocation7 + $0x8] sm:$0xff]  ;;  %v6851_v49 = vld [vmem:[#allocation7 + $0x80] sm:$0xff] }
 0x14c   :  { %5675 = vmatpush3.msra.mxu0 %v6821_v59  ;;  %5710 = vmatpush3.msra.mxu1 %v6822_v55  ;;  %v6850_v5 = vld [vmem:[#allocation7 + $0x108] sm:$0xff]  ;;  %v6852_v18 = vld [vmem:[#allocation7 + $0x180] sm:$0xff] }
 0x14d   :  { %5676 = vmatprep.subr.mxu0 %v6823_v54  ;;  %5711 = vmatprep.subr.mxu1 %v6824_v4  ;;  %v6853_v59 = vld [vmem:[#allocation7] sm:$0xff]  ;;  %v6855_v54 = vld [vmem:[#allocation7 + $0x2f8] sm:$0xff] }
 0x14e   :  { %5677 = vmatpush3.msra.mxu0 %v6825_v53  ;;  %5712 = vmatpush3.msra.mxu1 %v6826_v12  ;;  %v6854_v55 = vld [vmem:[#allocation7 + $0x100] sm:$0xff]  ;;  %v6856_v4 = vld [vmem:[#allocation7 + $0x3f8] sm:$0xff] }
 0x14f   :  { %5678 = vmatprep.subr.mxu0 %v6827_v58  ;;  %5713 = vmatprep.subr.mxu1 %v6828_v20  ;;  %v6857_v53 = vld [vmem:[#allocation7 + $0x278] sm:$0xff]  ;;  %v6859_v58 = vld [vmem:[#allocation7 + $0x2f0] sm:$0xff] }
 0x150   :  { %5679 = vmatpush3.msra.mxu0 %v6829_v56  ;;  %5714 = vmatpush3.msra.mxu1 %v6830_v57  ;;  %v6858_v12 = vld [vmem:[#allocation7 + $0x378] sm:$0xff]  ;;  %v6860_v20 = vld [vmem:[#allocation7 + $0x3f0] sm:$0xff] }
 0x151   :  { %5680 = vmatprep.subr.mxu0 %v6831_v60  ;;  %5715 = vmatprep.subr.mxu1 %v6832_v13  ;;  %v6861_v56 = vld [vmem:[#allocation7 + $0x270] sm:$0xff]  ;;  %v6863_v60 = vld [vmem:[#allocation7 + $0x2e8] sm:$0xff] }
 0x152   :  { %5681 = vmatpush3.msra.mxu0 %v6833_v17  ;;  %5716 = vmatpush3.msra.mxu1 %v6834_v19  ;;  %v6862_v57 = vld [vmem:[#allocation7 + $0x370] sm:$0xff]  ;;  %v6864_v13 = vld [vmem:[#allocation7 + $0x3e8] sm:$0xff] }
 0x153   :  { %5682 = vmatprep.subr.mxu0 %v6835_v44  ;;  %5717 = vmatprep.subr.mxu1 %v6836_v21  ;;  %v6865_v17 = vld [vmem:[#allocation7 + $0x268] sm:$0xff]  ;;  %v6867_v44 = vld [vmem:[#allocation7 + $0x2e0] sm:$0xff] }
 0x154   :  { %5683 = vmatpush3.msra.mxu0 %v6837_v27  ;;  %5718 = vmatpush3.msra.mxu1 %v6838_v31  ;;  %v6866_v19 = vld [vmem:[#allocation7 + $0x368] sm:$0xff]  ;;  %v6868_v21 = vld [vmem:[#allocation7 + $0x3e0] sm:$0xff] }
 0x155   :  { %5684 = vmatprep.subr.mxu0 %v6839_v39  ;;  %5719 = vmatprep.subr.mxu1 %v6840_v42  ;;  %v6869_v27 = vld [vmem:[#allocation7 + $0x260] sm:$0xff]  ;;  %v6871_v39 = vld [vmem:[#allocation7 + $0x2d8] sm:$0xff] }
 0x156   :  { %5685 = vmatpush3.msra.mxu0 %v6841_v43  ;;  %5720 = vmatpush3.msra.mxu1 %v6842_v48  ;;  %v6870_v31 = vld [vmem:[#allocation7 + $0x360] sm:$0xff]  ;;  %v6872_v42 = vld [vmem:[#allocation7 + $0x3d8] sm:$0xff] }
 0x157   :  { %5686 = vmatprep.subr.mxu0 %v6843_v62  ;;  %5721 = vmatprep.subr.mxu1 %v6844_v45  ;;  %v6873_v43 = vld [vmem:[#allocation7 + $0x258] sm:$0xff]  ;;  %v6875_v62 = vld [vmem:[#allocation7 + $0x2d0] sm:$0xff] }
 0x158   :  { %5687 = vmatpush3.msra.mxu0 %v6845_v47  ;;  %5722 = vmatpush3.msra.mxu1 %v6846_v51  ;;  %v6874_v48 = vld [vmem:[#allocation7 + $0x358] sm:$0xff]  ;;  %v6876_v45 = vld [vmem:[#allocation7 + $0x3d0] sm:$0xff] }
 0x159   :  { %5688 = vmatprep.subr.mxu0 %v6847_v52  ;;  %5723 = vmatprep.subr.mxu1 %v6848_v46  ;;  %v6877_v47 = vld [vmem:[#allocation7 + $0x250] sm:$0xff]  ;;  %v6879_v52 = vld [vmem:[#allocation7 + $0x2c8] sm:$0xff] }
 0x15a   :  { %5689 = vmatpush3.msra.mxu0 %v6849_v50  ;;  %5724 = vmatpush3.msra.mxu1 %v6850_v5  ;;  %v6878_v51 = vld [vmem:[#allocation7 + $0x350] sm:$0xff]  ;;  %v6880_v46 = vld [vmem:[#allocation7 + $0x3c8] sm:$0xff] }
 0x15b   :  { %5690 = vmatprep.subr.mxu0 %v6851_v49  ;;  %5725 = vmatprep.subr.mxu1 %v6852_v18  ;;  %v6881_v50 = vld [vmem:[#allocation7 + $0x248] sm:$0xff]  ;;  %v6883_v49 = vld [vmem:[#allocation7 + $0x2c0] sm:$0xff] }
 0x15c   :  { %5691 = vmatpush3.msra.mxu0 %v6853_v59  ;;  %2384 = vmatprep.mubr.f32.mxu0 %v7468_v28  ;;  %v6882_v5 = vld [vmem:[#allocation7 + $0x348] sm:$0xff]  ;;  %v6884_v18 = vld [vmem:[#allocation7 + $0x3c0] sm:$0xff] }
 0x15d   :  { %5726 = vmatpush3.msra.mxu1 %v6854_v55  ;;  %2385 = vmatmul.mubr.f32.vlgmr.msra.gmra.mxu0 %v7466_v24  ;;  %v6885_v59 = vld [vmem:[#allocation7 + $0x240] sm:$0xff] }
 0x15e   :  { %2454 = vmatprep.mubr.f32.mxu1 %v7472_v30  ;;  %5730 = vmatprep.subr.mxu0 %v6855_v54  ;;  %v6886_v55 = vld [vmem:[#allocation7 + $0x340] sm:$0xff]  ;;  %v6887_v54 = vld [vmem:[#allocation7 + $0x2b8] sm:$0xff] }
 0x15f   :  { %5765 = vmatprep.subr.mxu1 %v6856_v4  ;;  %2455 = vmatmul.mubr.f32.vlgmr.msra.gmra.mxu1 %v7470_v29  ;;  %v6888_v4 = vld [vmem:[#allocation7 + $0x3b8] sm:$0xff] }
 0x160   :  { %5731 = vmatpush3.msra.mxu0 %v6857_v53  ;;  %5766 = vmatpush3.msra.mxu1 %v6858_v12  ;;  %v6889_v53 = vld [vmem:[#allocation7 + $0x238] sm:$0xff] }
 0x161   :  { %5732 = vmatprep.subr.mxu0 %v6859_v58  ;;  %5767 = vmatprep.subr.mxu1 %v6860_v20  ;;  %v6890_v12 = vld [vmem:[#allocation7 + $0x338] sm:$0xff]  ;;  %v6891_v58 = vld [vmem:[#allocation7 + $0x2b0] sm:$0xff] }
 0x162   :  { %5733 = vmatpush3.msra.mxu0 %v6861_v56  ;;  %5768 = vmatpush3.msra.mxu1 %v6862_v57  ;;  %v6892_v20 = vld [vmem:[#allocation7 + $0x3b0] sm:$0xff] }
 0x163   :  { %5734 = vmatprep.subr.mxu0 %v6863_v60  ;;  %5769 = vmatprep.subr.mxu1 %v6864_v13  ;;  %v6893_v56 = vld [vmem:[#allocation7 + $0x230] sm:$0xff]  ;;  %v6895_v60 = vld [vmem:[#allocation7 + $0x2a8] sm:$0xff] }
 0x164   :  { %5735 = vmatpush3.msra.mxu0 %v6865_v17  ;;  %5770 = vmatpush3.msra.mxu1 %v6866_v19  ;;  %v6894_v57 = vld [vmem:[#allocation7 + $0x330] sm:$0xff]  ;;  %v6896_v13 = vld [vmem:[#allocation7 + $0x3a8] sm:$0xff] }
 0x165   :  { %5736 = vmatprep.subr.mxu0 %v6867_v44  ;;  %5771 = vmatprep.subr.mxu1 %v6868_v21  ;;  %v6897_v17 = vld [vmem:[#allocation7 + $0x228] sm:$0xff]  ;;  %v6899_v44 = vld [vmem:[#allocation7 + $0x2a0] sm:$0xff] }
 0x166   :  { %5737 = vmatpush3.msra.mxu0 %v6869_v27  ;;  %5772 = vmatpush3.msra.mxu1 %v6870_v31  ;;  %v6898_v19 = vld [vmem:[#allocation7 + $0x328] sm:$0xff]  ;;  %v6900_v21 = vld [vmem:[#allocation7 + $0x3a0] sm:$0xff] }
 0x167   :  { %5738 = vmatprep.subr.mxu0 %v6871_v39  ;;  %5773 = vmatprep.subr.mxu1 %v6872_v42  ;;  %v6901_v27 = vld [vmem:[#allocation7 + $0x220] sm:$0xff]  ;;  %v6903_v39 = vld [vmem:[#allocation7 + $0x298] sm:$0xff] }
 0x168   :  { %5739 = vmatpush3.msra.mxu0 %v6873_v43  ;;  %5774 = vmatpush3.msra.mxu1 %v6874_v48  ;;  %v6902_v31 = vld [vmem:[#allocation7 + $0x320] sm:$0xff]  ;;  %v6904_v42 = vld [vmem:[#allocation7 + $0x398] sm:$0xff] }
 0x169   :  { %5740 = vmatprep.subr.mxu0 %v6875_v62  ;;  %5775 = vmatprep.subr.mxu1 %v6876_v45  ;;  %v6905_v43 = vld [vmem:[#allocation7 + $0x218] sm:$0xff]  ;;  %v6907_v62 = vld [vmem:[#allocation7 + $0x290] sm:$0xff] }
 0x16a   :  { %5741 = vmatpush3.msra.mxu0 %v6877_v47  ;;  %5776 = vmatpush3.msra.mxu1 %v6878_v51  ;;  %v6906_v48 = vld [vmem:[#allocation7 + $0x318] sm:$0xff]  ;;  %v6908_v45 = vld [vmem:[#allocation7 + $0x390] sm:$0xff] }
 0x16b   :  { %5742 = vmatprep.subr.mxu0 %v6879_v52  ;;  %5777 = vmatprep.subr.mxu1 %v6880_v46  ;;  %v6909_v47 = vld [vmem:[#allocation7 + $0x210] sm:$0xff]  ;;  %v6911_v52 = vld [vmem:[#allocation7 + $0x288] sm:$0xff] }
 0x16c   :  { %5743 = vmatpush3.msra.mxu0 %v6881_v50  ;;  %5778 = vmatpush3.msra.mxu1 %v6882_v5  ;;  %v6910_v51 = vld [vmem:[#allocation7 + $0x310] sm:$0xff]  ;;  %v6912_v46 = vld [vmem:[#allocation7 + $0x388] sm:$0xff] }
 0x16d   :  { %5744 = vmatprep.subr.mxu0 %v6883_v49  ;;  %5779 = vmatprep.subr.mxu1 %v6884_v18  ;;  %v6913_v50 = vld [vmem:[#allocation7 + $0x208] sm:$0xff]  ;;  %v6915_v49 = vld [vmem:[#allocation7 + $0x280] sm:$0xff] }
 0x16e   :  { %5745 = vmatpush3.msra.mxu0 %v6885_v59  ;;  %5780 = vmatpush3.msra.mxu1 %v6886_v55  ;;  %v6914_v5 = vld [vmem:[#allocation7 + $0x308] sm:$0xff]  ;;  %v6916_v18 = vld [vmem:[#allocation7 + $0x380] sm:$0xff] }
 0x16f   :  { %5746 = vmatprep.subr.mxu0 %v6887_v54  ;;  %5781 = vmatprep.subr.mxu1 %v6888_v4  ;;  %v6917_v59 = vld [vmem:[#allocation7 + $0x200] sm:$0xff]  ;;  %v6919_v54 = vld [vmem:[#allocation7 + $0x4f8] sm:$0xff] }
 0x170   :  { %5747 = vmatpush3.msra.mxu0 %v6889_v53  ;;  %5782 = vmatpush3.msra.mxu1 %v6890_v12  ;;  %v6918_v55 = vld [vmem:[#allocation7 + $0x300] sm:$0xff]  ;;  %v6920_v4 = vld [vmem:[#allocation7 + $0x5f8] sm:$0xff] }
 0x171   :  { %5748 = vmatprep.subr.mxu0 %v6891_v58  ;;  %5783 = vmatprep.subr.mxu1 %v6892_v20  ;;  %v6921_v53 = vld [vmem:[#allocation7 + $0x478] sm:$0xff]  ;;  %v6923_v58 = vld [vmem:[#allocation7 + $0x4f0] sm:$0xff] }
 0x172   :  { %5749 = vmatpush3.msra.mxu0 %v6893_v56  ;;  %5784 = vmatpush3.msra.mxu1 %v6894_v57  ;;  %v6922_v12 = vld [vmem:[#allocation7 + $0x578] sm:$0xff]  ;;  %v6924_v20 = vld [vmem:[#allocation7 + $0x5f0] sm:$0xff] }
 0x173   :  { %5750 = vmatprep.subr.mxu0 %v6895_v60  ;;  %5785 = vmatprep.subr.mxu1 %v6896_v13  ;;  %v6925_v56 = vld [vmem:[#allocation7 + $0x470] sm:$0xff]  ;;  %v6927_v60 = vld [vmem:[#allocation7 + $0x4e8] sm:$0xff] }
 0x174   :  { %5751 = vmatpush3.msra.mxu0 %v6897_v17  ;;  %5786 = vmatpush3.msra.mxu1 %v6898_v19  ;;  %v6926_v57 = vld [vmem:[#allocation7 + $0x570] sm:$0xff]  ;;  %v6928_v13 = vld [vmem:[#allocation7 + $0x5e8] sm:$0xff] }
 0x175   :  { %5752 = vmatprep.subr.mxu0 %v6899_v44  ;;  %5787 = vmatprep.subr.mxu1 %v6900_v21  ;;  %v6929_v17 = vld [vmem:[#allocation7 + $0x468] sm:$0xff]  ;;  %v6931_v44 = vld [vmem:[#allocation7 + $0x4e0] sm:$0xff] }
 0x176   :  { %5753 = vmatpush3.msra.mxu0 %v6901_v27  ;;  %5788 = vmatpush3.msra.mxu1 %v6902_v31  ;;  %v6930_v19 = vld [vmem:[#allocation7 + $0x568] sm:$0xff]  ;;  %v6932_v21 = vld [vmem:[#allocation7 + $0x5e0] sm:$0xff] }
 0x177   :  { %5754 = vmatprep.subr.mxu0 %v6903_v39  ;;  %5789 = vmatprep.subr.mxu1 %v6904_v42  ;;  %v6933_v27 = vld [vmem:[#allocation7 + $0x460] sm:$0xff]  ;;  %v6935_v39 = vld [vmem:[#allocation7 + $0x4d8] sm:$0xff] }
 0x178   :  { %5755 = vmatpush3.msra.mxu0 %v6905_v43  ;;  %5790 = vmatpush3.msra.mxu1 %v6906_v48  ;;  %v6934_v31 = vld [vmem:[#allocation7 + $0x560] sm:$0xff]  ;;  %v6936_v42 = vld [vmem:[#allocation7 + $0x5d8] sm:$0xff] }
 0x179   :  { %5756 = vmatprep.subr.mxu0 %v6907_v62  ;;  %5791 = vmatprep.subr.mxu1 %v6908_v45  ;;  %v6937_v43 = vld [vmem:[#allocation7 + $0x458] sm:$0xff]  ;;  %v6939_v62 = vld [vmem:[#allocation7 + $0x4d0] sm:$0xff] }
 0x17a   :  { %5757 = vmatpush3.msra.mxu0 %v6909_v47  ;;  %5792 = vmatpush3.msra.mxu1 %v6910_v51  ;;  %v6938_v48 = vld [vmem:[#allocation7 + $0x558] sm:$0xff]  ;;  %v6940_v45 = vld [vmem:[#allocation7 + $0x5d0] sm:$0xff] }
 0x17b   :  { %5758 = vmatprep.subr.mxu0 %v6911_v52  ;;  %5793 = vmatprep.subr.mxu1 %v6912_v46  ;;  %v6941_v47 = vld [vmem:[#allocation7 + $0x450] sm:$0xff]  ;;  %v6943_v52 = vld [vmem:[#allocation7 + $0x4c8] sm:$0xff] }
 0x17c   :  { %5759 = vmatpush3.msra.mxu0 %v6913_v50  ;;  %5794 = vmatpush3.msra.mxu1 %v6914_v5  ;;  %v6942_v51 = vld [vmem:[#allocation7 + $0x550] sm:$0xff]  ;;  %v6944_v46 = vld [vmem:[#allocation7 + $0x5c8] sm:$0xff] }
 0x17d   :  { %5760 = vmatprep.subr.mxu0 %v6915_v49  ;;  %5795 = vmatprep.subr.mxu1 %v6916_v18  ;;  %v6945_v50 = vld [vmem:[#allocation7 + $0x448] sm:$0xff]  ;;  %v6947_v49 = vld [vmem:[#allocation7 + $0x4c0] sm:$0xff] }
 0x17e   :  { %5761 = vmatpush3.msra.mxu0 %v6917_v59  ;;  %2524 = vmatprep.mubr.f32.mxu0 %v7476_v34  ;;  %v6946_v5 = vld [vmem:[#allocation7 + $0x548] sm:$0xff]  ;;  %v6948_v18 = vld [vmem:[#allocation7 + $0x5c0] sm:$0xff] }
 0x17f   :  { %5796 = vmatpush3.msra.mxu1 %v6918_v55  ;;  %2525 = vmatmul.mubr.f32.vlgmr.msra.gmra.mxu0 %v7474_v33  ;;  %v6949_v59 = vld [vmem:[#allocation7 + $0x440] sm:$0xff] }
 0x180   :  { %2594 = vmatprep.mubr.f32.mxu1 %v7480_v37  ;;  %5800 = vmatprep.subr.mxu0 %v6919_v54  ;;  %v6950_v55 = vld [vmem:[#allocation7 + $0x540] sm:$0xff]  ;;  %v6951_v54 = vld [vmem:[#allocation7 + $0x4b8] sm:$0xff] }
 0x181   :  { %5835 = vmatprep.subr.mxu1 %v6920_v4  ;;  %2595 = vmatmul.mubr.f32.vlgmr.msra.gmra.mxu1 %v7478_v35  ;;  %v6952_v4 = vld [vmem:[#allocation7 + $0x5b8] sm:$0xff] }
 0x182   :  { %5801 = vmatpush3.msra.mxu0 %v6921_v53  ;;  %5836 = vmatpush3.msra.mxu1 %v6922_v12  ;;  %v6953_v53 = vld [vmem:[#allocation7 + $0x438] sm:$0xff] }
 0x183   :  { %5802 = vmatprep.subr.mxu0 %v6923_v58  ;;  %5837 = vmatprep.subr.mxu1 %v6924_v20  ;;  %v6954_v12 = vld [vmem:[#allocation7 + $0x538] sm:$0xff]  ;;  %v6955_v58 = vld [vmem:[#allocation7 + $0x4b0] sm:$0xff] }
 0x184   :  { %5803 = vmatpush3.msra.mxu0 %v6925_v56  ;;  %5838 = vmatpush3.msra.mxu1 %v6926_v57  ;;  %v6956_v20 = vld [vmem:[#allocation7 + $0x5b0] sm:$0xff] }
 0x185   :  { %5804 = vmatprep.subr.mxu0 %v6927_v60  ;;  %5839 = vmatprep.subr.mxu1 %v6928_v13  ;;  %v6957_v56 = vld [vmem:[#allocation7 + $0x430] sm:$0xff]  ;;  %v6959_v60 = vld [vmem:[#allocation7 + $0x4a8] sm:$0xff] }
 0x186   :  { %5805 = vmatpush3.msra.mxu0 %v6929_v17  ;;  %5840 = vmatpush3.msra.mxu1 %v6930_v19  ;;  %v6958_v57 = vld [vmem:[#allocation7 + $0x530] sm:$0xff]  ;;  %v6960_v13 = vld [vmem:[#allocation7 + $0x5a8] sm:$0xff] }
 0x187   :  { %5806 = vmatprep.subr.mxu0 %v6931_v44  ;;  %5841 = vmatprep.subr.mxu1 %v6932_v21  ;;  %v6961_v17 = vld [vmem:[#allocation7 + $0x428] sm:$0xff]  ;;  %v6963_v44 = vld [vmem:[#allocation7 + $0x4a0] sm:$0xff] }
 0x188   :  { %5807 = vmatpush3.msra.mxu0 %v6933_v27  ;;  %5842 = vmatpush3.msra.mxu1 %v6934_v31  ;;  %v6962_v19 = vld [vmem:[#allocation7 + $0x528] sm:$0xff]  ;;  %v6964_v21 = vld [vmem:[#allocation7 + $0x5a0] sm:$0xff] }
 0x189   :  { %5808 = vmatprep.subr.mxu0 %v6935_v39  ;;  %5843 = vmatprep.subr.mxu1 %v6936_v42  ;;  %v6965_v27 = vld [vmem:[#allocation7 + $0x420] sm:$0xff]  ;;  %v6967_v39 = vld [vmem:[#allocation7 + $0x498] sm:$0xff] }
 0x18a   :  { %5809 = vmatpush3.msra.mxu0 %v6937_v43  ;;  %5844 = vmatpush3.msra.mxu1 %v6938_v48  ;;  %v6966_v31 = vld [vmem:[#allocation7 + $0x520] sm:$0xff]  ;;  %v6968_v42 = vld [vmem:[#allocation7 + $0x598] sm:$0xff] }
 0x18b   :  { %5810 = vmatprep.subr.mxu0 %v6939_v62  ;;  %5845 = vmatprep.subr.mxu1 %v6940_v45  ;;  %v6969_v43 = vld [vmem:[#allocation7 + $0x418] sm:$0xff]  ;;  %v6971_v62 = vld [vmem:[#allocation7 + $0x490] sm:$0xff] }
 0x18c   :  { %5811 = vmatpush3.msra.mxu0 %v6941_v47  ;;  %5846 = vmatpush3.msra.mxu1 %v6942_v51  ;;  %v6970_v48 = vld [vmem:[#allocation7 + $0x518] sm:$0xff]  ;;  %v6972_v45 = vld [vmem:[#allocation7 + $0x590] sm:$0xff] }
 0x18d   :  { %5812 = vmatprep.subr.mxu0 %v6943_v52  ;;  %5847 = vmatprep.subr.mxu1 %v6944_v46  ;;  %v6973_v47 = vld [vmem:[#allocation7 + $0x410] sm:$0xff]  ;;  %v6975_v52 = vld [vmem:[#allocation7 + $0x488] sm:$0xff] }
 0x18e   :  { %5813 = vmatpush3.msra.mxu0 %v6945_v50  ;;  %5848 = vmatpush3.msra.mxu1 %v6946_v5  ;;  %v6974_v51 = vld [vmem:[#allocation7 + $0x510] sm:$0xff]  ;;  %v6976_v46 = vld [vmem:[#allocation7 + $0x588] sm:$0xff] }
 0x18f   :  { %5814 = vmatprep.subr.mxu0 %v6947_v49  ;;  %5849 = vmatprep.subr.mxu1 %v6948_v18  ;;  %v6977_v50 = vld [vmem:[#allocation7 + $0x408] sm:$0xff]  ;;  %v6979_v49 = vld [vmem:[#allocation7 + $0x480] sm:$0xff] }
 0x190   :  { %5815 = vmatpush3.msra.mxu0 %v6949_v59  ;;  %5850 = vmatpush3.msra.mxu1 %v6950_v55  ;;  %v6978_v5 = vld [vmem:[#allocation7 + $0x508] sm:$0xff]  ;;  %v6980_v18 = vld [vmem:[#allocation7 + $0x580] sm:$0xff] }
 0x191   :  { %5816 = vmatprep.subr.mxu0 %v6951_v54  ;;  %5851 = vmatprep.subr.mxu1 %v6952_v4  ;;  %v6981_v59 = vld [vmem:[#allocation7 + $0x400] sm:$0xff]  ;;  %v6983_v54 = vld [vmem:[#allocation7 + $0x6f8] sm:$0xff] }
 0x192   :  { %5817 = vmatpush3.msra.mxu0 %v6953_v53  ;;  %5852 = vmatpush3.msra.mxu1 %v6954_v12  ;;  %v6982_v55 = vld [vmem:[#allocation7 + $0x500] sm:$0xff]  ;;  %v6984_v4 = vld [vmem:[#allocation7 + $0x7f8] sm:$0xff] }
 0x193   :  { %5818 = vmatprep.subr.mxu0 %v6955_v58  ;;  %5853 = vmatprep.subr.mxu1 %v6956_v20  ;;  %v6985_v53 = vld [vmem:[#allocation7 + $0x678] sm:$0xff]  ;;  %v6987_v58 = vld [vmem:[#allocation7 + $0x6f0] sm:$0xff] }
 0x194   :  { %5819 = vmatpush3.msra.mxu0 %v6957_v56  ;;  %5854 = vmatpush3.msra.mxu1 %v6958_v57  ;;  %v6986_v12 = vld [vmem:[#allocation7 + $0x778] sm:$0xff]  ;;  %v6988_v20 = vld [vmem:[#allocation7 + $0x7f0] sm:$0xff] }
 0x195   :  { %5820 = vmatprep.subr.mxu0 %v6959_v60  ;;  %5855 = vmatprep.subr.mxu1 %v6960_v13  ;;  %v6989_v56 = vld [vmem:[#allocation7 + $0x670] sm:$0xff]  ;;  %v6991_v60 = vld [vmem:[#allocation7 + $0x6e8] sm:$0xff] }
 0x196   :  { %5821 = vmatpush3.msra.mxu0 %v6961_v17  ;;  %5856 = vmatpush3.msra.mxu1 %v6962_v19  ;;  %v6990_v57 = vld [vmem:[#allocation7 + $0x770] sm:$0xff]  ;;  %v6992_v13 = vld [vmem:[#allocation7 + $0x7e8] sm:$0xff] }
 0x197   :  { %5822 = vmatprep.subr.mxu0 %v6963_v44  ;;  %5857 = vmatprep.subr.mxu1 %v6964_v21  ;;  %v6993_v17 = vld [vmem:[#allocation7 + $0x668] sm:$0xff]  ;;  %v6995_v44 = vld [vmem:[#allocation7 + $0x6e0] sm:$0xff] }
 0x198   :  { %5823 = vmatpush3.msra.mxu0 %v6965_v27  ;;  %5858 = vmatpush3.msra.mxu1 %v6966_v31  ;;  %v6994_v19 = vld [vmem:[#allocation7 + $0x768] sm:$0xff]  ;;  %v6996_v21 = vld [vmem:[#allocation7 + $0x7e0] sm:$0xff] }
 0x199   :  { %5824 = vmatprep.subr.mxu0 %v6967_v39  ;;  %5859 = vmatprep.subr.mxu1 %v6968_v42  ;;  %v6997_v27 = vld [vmem:[#allocation7 + $0x660] sm:$0xff]  ;;  %v6999_v39 = vld [vmem:[#allocation7 + $0x6d8] sm:$0xff] }
 0x19a   :  { %5825 = vmatpush3.msra.mxu0 %v6969_v43  ;;  %5860 = vmatpush3.msra.mxu1 %v6970_v48  ;;  %v6998_v31 = vld [vmem:[#allocation7 + $0x760] sm:$0xff]  ;;  %v7000_v42 = vld [vmem:[#allocation7 + $0x7d8] sm:$0xff] }
 0x19b   :  { %5826 = vmatprep.subr.mxu0 %v6971_v62  ;;  %5861 = vmatprep.subr.mxu1 %v6972_v45  ;;  %v7001_v43 = vld [vmem:[#allocation7 + $0x658] sm:$0xff]  ;;  %v7003_v62 = vld [vmem:[#allocation7 + $0x6d0] sm:$0xff] }
 0x19c   :  { %5827 = vmatpush3.msra.mxu0 %v6973_v47  ;;  %5862 = vmatpush3.msra.mxu1 %v6974_v51  ;;  %v7002_v48 = vld [vmem:[#allocation7 + $0x758] sm:$0xff]  ;;  %v7004_v45 = vld [vmem:[#allocation7 + $0x7d0] sm:$0xff] }
 0x19d   :  { %5828 = vmatprep.subr.mxu0 %v6975_v52  ;;  %5863 = vmatprep.subr.mxu1 %v6976_v46  ;;  %v7005_v47 = vld [vmem:[#allocation7 + $0x650] sm:$0xff]  ;;  %v7007_v52 = vld [vmem:[#allocation7 + $0x6c8] sm:$0xff] }
 0x19e   :  { %5829 = vmatpush3.msra.mxu0 %v6977_v50  ;;  %5864 = vmatpush3.msra.mxu1 %v6978_v5  ;;  %v7006_v51 = vld [vmem:[#allocation7 + $0x750] sm:$0xff]  ;;  %v7008_v46 = vld [vmem:[#allocation7 + $0x7c8] sm:$0xff] }
 0x19f   :  { %5830 = vmatprep.subr.mxu0 %v6979_v49  ;;  %5865 = vmatprep.subr.mxu1 %v6980_v18  ;;  %v7009_v50 = vld [vmem:[#allocation7 + $0x648] sm:$0xff]  ;;  %v7011_v49 = vld [vmem:[#allocation7 + $0x6c0] sm:$0xff] }
 0x1a0   :  { %5831 = vmatpush3.msra.mxu0 %v6981_v59  ;;  %2664 = vmatprep.mubr.f32.mxu0 %v7535_v1  ;;  %v7010_v5 = vld [vmem:[#allocation7 + $0x748] sm:$0xff]  ;;  %v7012_v18 = vld [vmem:[#allocation7 + $0x7c0] sm:$0xff] }
 0x1a1   :  { %5866 = vmatpush3.msra.mxu1 %v6982_v55  ;;  %2665 = vmatmul.mubr.f32.vlgmr.msra.gmra.mxu0 %v7533_v63  ;;  %v7013_v59 = vld [vmem:[#allocation7 + $0x640] sm:$0xff] }
 0x1a2   :  { %2734 = vmatprep.mubr.f32.mxu1 %v7539_v3  ;;  %5870 = vmatprep.subr.mxu0 %v6983_v54  ;;  %v7014_v55 = vld [vmem:[#allocation7 + $0x740] sm:$0xff]  ;;  %v7015_v54 = vld [vmem:[#allocation7 + $0x6b8] sm:$0xff] }
 0x1a3   :  { %5905 = vmatprep.subr.mxu1 %v6984_v4  ;;  %2735 = vmatmul.mubr.f32.vlgmr.msra.gmra.mxu1 %v7537_v2  ;;  %v7016_v4 = vld [vmem:[#allocation7 + $0x7b8] sm:$0xff] }
 0x1a4   :  { %5871 = vmatpush3.msra.mxu0 %v6985_v53  ;;  %5906 = vmatpush3.msra.mxu1 %v6986_v12  ;;  %v7017_v53 = vld [vmem:[#allocation7 + $0x638] sm:$0xff] }
 0x1a5   :  { %5872 = vmatprep.subr.mxu0 %v6987_v58  ;;  %5907 = vmatprep.subr.mxu1 %v6988_v20  ;;  %v7018_v12 = vld [vmem:[#allocation7 + $0x738] sm:$0xff]  ;;  %v7019_v58 = vld [vmem:[#allocation7 + $0x6b0] sm:$0xff] }
 0x1a6   :  { %5873 = vmatpush3.msra.mxu0 %v6989_v56  ;;  %5908 = vmatpush3.msra.mxu1 %v6990_v57  ;;  %v7020_v20 = vld [vmem:[#allocation7 + $0x7b0] sm:$0xff] }
 0x1a7   :  { %5874 = vmatprep.subr.mxu0 %v6991_v60  ;;  %5909 = vmatprep.subr.mxu1 %v6992_v13  ;;  %v7021_v56 = vld [vmem:[#allocation7 + $0x630] sm:$0xff]  ;;  %v7023_v60 = vld [vmem:[#allocation7 + $0x6a8] sm:$0xff] }
 0x1a8   :  { %5875 = vmatpush3.msra.mxu0 %v6993_v17  ;;  %5910 = vmatpush3.msra.mxu1 %v6994_v19  ;;  %v7022_v57 = vld [vmem:[#allocation7 + $0x730] sm:$0xff]  ;;  %v7024_v13 = vld [vmem:[#allocation7 + $0x7a8] sm:$0xff] }
 0x1a9   :  { %5876 = vmatprep.subr.mxu0 %v6995_v44  ;;  %5911 = vmatprep.subr.mxu1 %v6996_v21  ;;  %v7025_v17 = vld [vmem:[#allocation7 + $0x628] sm:$0xff]  ;;  %v7027_v44 = vld [vmem:[#allocation7 + $0x6a0] sm:$0xff] }
 0x1aa   :  { %5877 = vmatpush3.msra.mxu0 %v6997_v27  ;;  %5912 = vmatpush3.msra.mxu1 %v6998_v31  ;;  %v7026_v19 = vld [vmem:[#allocation7 + $0x728] sm:$0xff]  ;;  %v7028_v21 = vld [vmem:[#allocation7 + $0x7a0] sm:$0xff] }
 0x1ab   :  { %5878 = vmatprep.subr.mxu0 %v6999_v39  ;;  %5913 = vmatprep.subr.mxu1 %v7000_v42  ;;  %v7029_v27 = vld [vmem:[#allocation7 + $0x620] sm:$0xff]  ;;  %v7031_v39 = vld [vmem:[#allocation7 + $0x698] sm:$0xff] }
 0x1ac   :  { %5879 = vmatpush3.msra.mxu0 %v7001_v43  ;;  %5914 = vmatpush3.msra.mxu1 %v7002_v48  ;;  %v7030_v31 = vld [vmem:[#allocation7 + $0x720] sm:$0xff]  ;;  %v7032_v42 = vld [vmem:[#allocation7 + $0x798] sm:$0xff] }
 0x1ad   :  { %5880 = vmatprep.subr.mxu0 %v7003_v62  ;;  %5915 = vmatprep.subr.mxu1 %v7004_v45  ;;  %v7033_v43 = vld [vmem:[#allocation7 + $0x618] sm:$0xff]  ;;  %v7035_v62 = vld [vmem:[#allocation7 + $0x690] sm:$0xff] }
 0x1ae   :  { %5881 = vmatpush3.msra.mxu0 %v7005_v47  ;;  %5916 = vmatpush3.msra.mxu1 %v7006_v51  ;;  %v7034_v48 = vld [vmem:[#allocation7 + $0x718] sm:$0xff]  ;;  %v7036_v45 = vld [vmem:[#allocation7 + $0x790] sm:$0xff] }
 0x1af   :  { %5882 = vmatprep.subr.mxu0 %v7007_v52  ;;  %5917 = vmatprep.subr.mxu1 %v7008_v46  ;;  %v7037_v47 = vld [vmem:[#allocation7 + $0x610] sm:$0xff]  ;;  %v7039_v52 = vld [vmem:[#allocation7 + $0x688] sm:$0xff] }
 0x1b0   :  { %5883 = vmatpush3.msra.mxu0 %v7009_v50  ;;  %5918 = vmatpush3.msra.mxu1 %v7010_v5  ;;  %v7038_v51 = vld [vmem:[#allocation7 + $0x710] sm:$0xff]  ;;  %v7040_v46 = vld [vmem:[#allocation7 + $0x788] sm:$0xff] }
 0x1b1   :  { %5884 = vmatprep.subr.mxu0 %v7011_v49  ;;  %5919 = vmatprep.subr.mxu1 %v7012_v18  ;;  %v7041_v50 = vld [vmem:[#allocation7 + $0x608] sm:$0xff]  ;;  %v7043_v49 = vld [vmem:[#allocation7 + $0x680] sm:$0xff] }
 0x1b2   :  { %5885 = vmatpush3.msra.mxu0 %v7013_v59  ;;  %5920 = vmatpush3.msra.mxu1 %v7014_v55  ;;  %v7042_v5 = vld [vmem:[#allocation7 + $0x708] sm:$0xff]  ;;  %v7044_v18 = vld [vmem:[#allocation7 + $0x780] sm:$0xff] }
 0x1b3   :  { %5886 = vmatprep.subr.mxu0 %v7015_v54  ;;  %5921 = vmatprep.subr.mxu1 %v7016_v4  ;;  %v7045_v59 = vld [vmem:[#allocation7 + $0x600] sm:$0xff]  ;;  %v7047_v54 = vld [vmem:[#allocation7 + $0x8f8] sm:$0xff] }
 0x1b4   :  { %5887 = vmatpush3.msra.mxu0 %v7017_v53  ;;  %5922 = vmatpush3.msra.mxu1 %v7018_v12  ;;  %v7046_v55 = vld [vmem:[#allocation7 + $0x700] sm:$0xff]  ;;  %v7048_v4 = vld [vmem:[#allocation7 + $0x9f8] sm:$0xff] }
 0x1b5   :  { %5888 = vmatprep.subr.mxu0 %v7019_v58  ;;  %5923 = vmatprep.subr.mxu1 %v7020_v20  ;;  %v7049_v53 = vld [vmem:[#allocation7 + $0x878] sm:$0xff]  ;;  %v7051_v58 = vld [vmem:[#allocation7 + $0x8f0] sm:$0xff] }
 0x1b6   :  { %5889 = vmatpush3.msra.mxu0 %v7021_v56  ;;  %5924 = vmatpush3.msra.mxu1 %v7022_v57  ;;  %v7050_v12 = vld [vmem:[#allocation7 + $0x978] sm:$0xff]  ;;  %v7052_v20 = vld [vmem:[#allocation7 + $0x9f0] sm:$0xff] }
 0x1b7   :  { %5890 = vmatprep.subr.mxu0 %v7023_v60  ;;  %5925 = vmatprep.subr.mxu1 %v7024_v13  ;;  %v7053_v56 = vld [vmem:[#allocation7 + $0x870] sm:$0xff]  ;;  %v7055_v60 = vld [vmem:[#allocation7 + $0x8e8] sm:$0xff] }
 0x1b8   :  { %5891 = vmatpush3.msra.mxu0 %v7025_v17  ;;  %5926 = vmatpush3.msra.mxu1 %v7026_v19  ;;  %v7054_v57 = vld [vmem:[#allocation7 + $0x970] sm:$0xff]  ;;  %v7056_v13 = vld [vmem:[#allocation7 + $0x9e8] sm:$0xff] }
 0x1b9   :  { %5892 = vmatprep.subr.mxu0 %v7027_v44  ;;  %5927 = vmatprep.subr.mxu1 %v7028_v21  ;;  %v7057_v17 = vld [vmem:[#allocation7 + $0x868] sm:$0xff]  ;;  %v7059_v44 = vld [vmem:[#allocation7 + $0x8e0] sm:$0xff] }
 0x1ba   :  { %5893 = vmatpush3.msra.mxu0 %v7029_v27  ;;  %5928 = vmatpush3.msra.mxu1 %v7030_v31  ;;  %v7058_v19 = vld [vmem:[#allocation7 + $0x968] sm:$0xff]  ;;  %v7060_v21 = vld [vmem:[#allocation7 + $0x9e0] sm:$0xff] }
 0x1bb   :  { %5894 = vmatprep.subr.mxu0 %v7031_v39  ;;  %5929 = vmatprep.subr.mxu1 %v7032_v42  ;;  %v7061_v27 = vld [vmem:[#allocation7 + $0x860] sm:$0xff]  ;;  %v7063_v39 = vld [vmem:[#allocation7 + $0x8d8] sm:$0xff] }
 0x1bc   :  { %5895 = vmatpush3.msra.mxu0 %v7033_v43  ;;  %5930 = vmatpush3.msra.mxu1 %v7034_v48  ;;  %v7062_v31 = vld [vmem:[#allocation7 + $0x960] sm:$0xff]  ;;  %v7064_v42 = vld [vmem:[#allocation7 + $0x9d8] sm:$0xff] }
 0x1bd   :  { %5896 = vmatprep.subr.mxu0 %v7035_v62  ;;  %5931 = vmatprep.subr.mxu1 %v7036_v45  ;;  %v7065_v43 = vld [vmem:[#allocation7 + $0x858] sm:$0xff]  ;;  %v7067_v62 = vld [vmem:[#allocation7 + $0x8d0] sm:$0xff] }
 0x1be   :  { %5897 = vmatpush3.msra.mxu0 %v7037_v47  ;;  %5932 = vmatpush3.msra.mxu1 %v7038_v51  ;;  %v7066_v48 = vld [vmem:[#allocation7 + $0x958] sm:$0xff]  ;;  %v7068_v45 = vld [vmem:[#allocation7 + $0x9d0] sm:$0xff] }
 0x1bf   :  { %5898 = vmatprep.subr.mxu0 %v7039_v52  ;;  %5933 = vmatprep.subr.mxu1 %v7040_v46  ;;  %v7069_v47 = vld [vmem:[#allocation7 + $0x850] sm:$0xff]  ;;  %v7071_v52 = vld [vmem:[#allocation7 + $0x8c8] sm:$0xff] }
 0x1c0   :  { %5899 = vmatpush3.msra.mxu0 %v7041_v50  ;;  %5934 = vmatpush3.msra.mxu1 %v7042_v5  ;;  %v7070_v51 = vld [vmem:[#allocation7 + $0x950] sm:$0xff]  ;;  %v7072_v46 = vld [vmem:[#allocation7 + $0x9c8] sm:$0xff] }
 0x1c1   :  { %5900 = vmatprep.subr.mxu0 %v7043_v49  ;;  %5935 = vmatprep.subr.mxu1 %v7044_v18  ;;  %v7073_v50 = vld [vmem:[#allocation7 + $0x848] sm:$0xff]  ;;  %v7075_v49 = vld [vmem:[#allocation7 + $0x8c0] sm:$0xff] }
 0x1c2   :  { %5901 = vmatpush3.msra.mxu0 %v7045_v59  ;;  %2804 = vmatprep.mubr.f32.mxu0 %v7543_v7  ;;  %v7074_v5 = vld [vmem:[#allocation7 + $0x948] sm:$0xff]  ;;  %v7076_v18 = vld [vmem:[#allocation7 + $0x9c0] sm:$0xff] }
 0x1c3   :  { %5936 = vmatpush3.msra.mxu1 %v7046_v55  ;;  %2805 = vmatmul.mubr.f32.vlgmr.msra.gmra.mxu0 %v7541_v0  ;;  %v7077_v59 = vld [vmem:[#allocation7 + $0x840] sm:$0xff] }
 0x1c4   :  { %2874 = vmatprep.mubr.f32.mxu1 %v7547_v61  ;;  %5940 = vmatprep.subr.mxu0 %v7047_v54  ;;  %v7078_v55 = vld [vmem:[#allocation7 + $0x940] sm:$0xff]  ;;  %v7079_v54 = vld [vmem:[#allocation7 + $0x8b8] sm:$0xff] }
 0x1c5   :  { %5975 = vmatprep.subr.mxu1 %v7048_v4  ;;  %2875 = vmatmul.mubr.f32.vlgmr.msra.gmra.mxu1 %v7545_v8  ;;  %v7080_v4 = vld [vmem:[#allocation7 + $0x9b8] sm:$0xff] }
 0x1c6   :  { %5941 = vmatpush3.msra.mxu0 %v7049_v53  ;;  %5976 = vmatpush3.msra.mxu1 %v7050_v12  ;;  %v7081_v53 = vld [vmem:[#allocation7 + $0x838] sm:$0xff] }
 0x1c7   :  { %5942 = vmatprep.subr.mxu0 %v7051_v58  ;;  %5977 = vmatprep.subr.mxu1 %v7052_v20  ;;  %v7082_v12 = vld [vmem:[#allocation7 + $0x938] sm:$0xff]  ;;  %v7083_v58 = vld [vmem:[#allocation7 + $0x8b0] sm:$0xff] }
 0x1c8   :  { %5943 = vmatpush3.msra.mxu0 %v7053_v56  ;;  %5978 = vmatpush3.msra.mxu1 %v7054_v57  ;;  %v7084_v20 = vld [vmem:[#allocation7 + $0x9b0] sm:$0xff] }
 0x1c9   :  { %5944 = vmatprep.subr.mxu0 %v7055_v60  ;;  %5979 = vmatprep.subr.mxu1 %v7056_v13  ;;  %v7085_v56 = vld [vmem:[#allocation7 + $0x830] sm:$0xff]  ;;  %v7087_v60 = vld [vmem:[#allocation7 + $0x8a8] sm:$0xff] }
 0x1ca   :  { %5945 = vmatpush3.msra.mxu0 %v7057_v17  ;;  %5980 = vmatpush3.msra.mxu1 %v7058_v19  ;;  %v7086_v57 = vld [vmem:[#allocation7 + $0x930] sm:$0xff]  ;;  %v7088_v13 = vld [vmem:[#allocation7 + $0x9a8] sm:$0xff] }
 0x1cb   :  { %5946 = vmatprep.subr.mxu0 %v7059_v44  ;;  %5981 = vmatprep.subr.mxu1 %v7060_v21  ;;  %v7089_v17 = vld [vmem:[#allocation7 + $0x828] sm:$0xff]  ;;  %v7091_v44 = vld [vmem:[#allocation7 + $0x8a0] sm:$0xff] }
 0x1cc   :  { %5947 = vmatpush3.msra.mxu0 %v7061_v27  ;;  %5982 = vmatpush3.msra.mxu1 %v7062_v31  ;;  %v7090_v19 = vld [vmem:[#allocation7 + $0x928] sm:$0xff]  ;;  %v7092_v21 = vld [vmem:[#allocation7 + $0x9a0] sm:$0xff] }
 0x1cd   :  { %5948 = vmatprep.subr.mxu0 %v7063_v39  ;;  %5983 = vmatprep.subr.mxu1 %v7064_v42  ;;  %v7093_v27 = vld [vmem:[#allocation7 + $0x820] sm:$0xff]  ;;  %v7095_v39 = vld [vmem:[#allocation7 + $0x898] sm:$0xff] }
 0x1ce   :  { %5949 = vmatpush3.msra.mxu0 %v7065_v43  ;;  %5984 = vmatpush3.msra.mxu1 %v7066_v48  ;;  %v7094_v31 = vld [vmem:[#allocation7 + $0x920] sm:$0xff]  ;;  %v7096_v42 = vld [vmem:[#allocation7 + $0x998] sm:$0xff] }
 0x1cf   :  { %5950 = vmatprep.subr.mxu0 %v7067_v62  ;;  %5985 = vmatprep.subr.mxu1 %v7068_v45  ;;  %v7097_v43 = vld [vmem:[#allocation7 + $0x818] sm:$0xff]  ;;  %v7099_v62 = vld [vmem:[#allocation7 + $0x890] sm:$0xff] }
 0x1d0   :  { %5951 = vmatpush3.msra.mxu0 %v7069_v47  ;;  %5986 = vmatpush3.msra.mxu1 %v7070_v51  ;;  %v7098_v48 = vld [vmem:[#allocation7 + $0x918] sm:$0xff]  ;;  %v7100_v45 = vld [vmem:[#allocation7 + $0x990] sm:$0xff] }
 0x1d1   :  { %5952 = vmatprep.subr.mxu0 %v7071_v52  ;;  %5987 = vmatprep.subr.mxu1 %v7072_v46  ;;  %v7101_v47 = vld [vmem:[#allocation7 + $0x810] sm:$0xff]  ;;  %v7103_v52 = vld [vmem:[#allocation7 + $0x888] sm:$0xff] }
 0x1d2   :  { %5953 = vmatpush3.msra.mxu0 %v7073_v50  ;;  %5988 = vmatpush3.msra.mxu1 %v7074_v5  ;;  %v7102_v51 = vld [vmem:[#allocation7 + $0x910] sm:$0xff]  ;;  %v7104_v46 = vld [vmem:[#allocation7 + $0x988] sm:$0xff] }
 0x1d3   :  { %5954 = vmatprep.subr.mxu0 %v7075_v49  ;;  %5989 = vmatprep.subr.mxu1 %v7076_v18  ;;  %v7105_v50 = vld [vmem:[#allocation7 + $0x808] sm:$0xff]  ;;  %v7107_v49 = vld [vmem:[#allocation7 + $0x880] sm:$0xff] }
 0x1d4   :  { %5955 = vmatpush3.msra.mxu0 %v7077_v59  ;;  %5990 = vmatpush3.msra.mxu1 %v7078_v55  ;;  %v7106_v5 = vld [vmem:[#allocation7 + $0x908] sm:$0xff]  ;;  %v7108_v18 = vld [vmem:[#allocation7 + $0x980] sm:$0xff] }
 0x1d5   :  { %5956 = vmatprep.subr.mxu0 %v7079_v54  ;;  %5991 = vmatprep.subr.mxu1 %v7080_v4  ;;  %v7109_v59 = vld [vmem:[#allocation7 + $0x800] sm:$0xff]  ;;  %v7111_v54 = vld [vmem:[#allocation7 + $0xaf8] sm:$0xff] }
 0x1d6   :  { %5957 = vmatpush3.msra.mxu0 %v7081_v53  ;;  %5992 = vmatpush3.msra.mxu1 %v7082_v12  ;;  %v7110_v55 = vld [vmem:[#allocation7 + $0x900] sm:$0xff]  ;;  %v7112_v4 = vld [vmem:[#allocation7 + $0xbf8] sm:$0xff] }
 0x1d7   :  { %5958 = vmatprep.subr.mxu0 %v7083_v58  ;;  %5993 = vmatprep.subr.mxu1 %v7084_v20  ;;  %v7113_v53 = vld [vmem:[#allocation7 + $0xa78] sm:$0xff]  ;;  %v7115_v58 = vld [vmem:[#allocation7 + $0xaf0] sm:$0xff] }
 0x1d8   :  { %5959 = vmatpush3.msra.mxu0 %v7085_v56  ;;  %5994 = vmatpush3.msra.mxu1 %v7086_v57  ;;  %v7114_v12 = vld [vmem:[#allocation7 + $0xb78] sm:$0xff]  ;;  %v7116_v20 = vld [vmem:[#allocation7 + $0xbf0] sm:$0xff] }
 0x1d9   :  { %5960 = vmatprep.subr.mxu0 %v7087_v60  ;;  %5995 = vmatprep.subr.mxu1 %v7088_v13  ;;  %v7117_v56 = vld [vmem:[#allocation7 + $0xa70] sm:$0xff]  ;;  %v7119_v60 = vld [vmem:[#allocation7 + $0xae8] sm:$0xff] }
 0x1da   :  { %5961 = vmatpush3.msra.mxu0 %v7089_v17  ;;  %5996 = vmatpush3.msra.mxu1 %v7090_v19  ;;  %v7118_v57 = vld [vmem:[#allocation7 + $0xb70] sm:$0xff]  ;;  %v7120_v13 = vld [vmem:[#allocation7 + $0xbe8] sm:$0xff] }
 0x1db   :  { %5962 = vmatprep.subr.mxu0 %v7091_v44  ;;  %5997 = vmatprep.subr.mxu1 %v7092_v21  ;;  %v7121_v17 = vld [vmem:[#allocation7 + $0xa68] sm:$0xff]  ;;  %v7123_v44 = vld [vmem:[#allocation7 + $0xae0] sm:$0xff] }
 0x1dc   :  { %5963 = vmatpush3.msra.mxu0 %v7093_v27  ;;  %5998 = vmatpush3.msra.mxu1 %v7094_v31  ;;  %v7122_v19 = vld [vmem:[#allocation7 + $0xb68] sm:$0xff]  ;;  %v7124_v21 = vld [vmem:[#allocation7 + $0xbe0] sm:$0xff] }
 0x1dd   :  { %5964 = vmatprep.subr.mxu0 %v7095_v39  ;;  %5999 = vmatprep.subr.mxu1 %v7096_v42  ;;  %v7125_v27 = vld [vmem:[#allocation7 + $0xa60] sm:$0xff]  ;;  %v7127_v39 = vld [vmem:[#allocation7 + $0xad8] sm:$0xff] }
 0x1de   :  { %5965 = vmatpush3.msra.mxu0 %v7097_v43  ;;  %6000 = vmatpush3.msra.mxu1 %v7098_v48  ;;  %v7126_v31 = vld [vmem:[#allocation7 + $0xb60] sm:$0xff]  ;;  %v7128_v42 = vld [vmem:[#allocation7 + $0xbd8] sm:$0xff] }
 0x1df   :  { %5966 = vmatprep.subr.mxu0 %v7099_v62  ;;  %6001 = vmatprep.subr.mxu1 %v7100_v45  ;;  %v7129_v43 = vld [vmem:[#allocation7 + $0xa58] sm:$0xff]  ;;  %v7131_v62 = vld [vmem:[#allocation7 + $0xad0] sm:$0xff] }
 0x1e0   :  { %5967 = vmatpush3.msra.mxu0 %v7101_v47  ;;  %6002 = vmatpush3.msra.mxu1 %v7102_v51  ;;  %v7130_v48 = vld [vmem:[#allocation7 + $0xb58] sm:$0xff]  ;;  %v7132_v45 = vld [vmem:[#allocation7 + $0xbd0] sm:$0xff] }
 0x1e1   :  { %5968 = vmatprep.subr.mxu0 %v7103_v52  ;;  %6003 = vmatprep.subr.mxu1 %v7104_v46  ;;  %v7133_v47 = vld [vmem:[#allocation7 + $0xa50] sm:$0xff]  ;;  %v7135_v52 = vld [vmem:[#allocation7 + $0xac8] sm:$0xff] }
 0x1e2   :  { %5969 = vmatpush3.msra.mxu0 %v7105_v50  ;;  %6004 = vmatpush3.msra.mxu1 %v7106_v5  ;;  %v7134_v51 = vld [vmem:[#allocation7 + $0xb50] sm:$0xff]  ;;  %v7136_v46 = vld [vmem:[#allocation7 + $0xbc8] sm:$0xff] }
 0x1e3   :  { %5970 = vmatprep.subr.mxu0 %v7107_v49  ;;  %6005 = vmatprep.subr.mxu1 %v7108_v18  ;;  %v7137_v50 = vld [vmem:[#allocation7 + $0xa48] sm:$0xff]  ;;  %v7139_v49 = vld [vmem:[#allocation7 + $0xac0] sm:$0xff] }
 0x1e4   :  { %5971 = vmatpush3.msra.mxu0 %v7109_v59  ;;  %2944 = vmatprep.mubr.f32.mxu0 %v7602_v23  ;;  %v7138_v5 = vld [vmem:[#allocation7 + $0xb48] sm:$0xff]  ;;  %v7140_v18 = vld [vmem:[#allocation7 + $0xbc0] sm:$0xff] }
 0x1e5   :  { %6006 = vmatpush3.msra.mxu1 %v7110_v55  ;;  %2945 = vmatmul.mubr.f32.vlgmr.msra.gmra.mxu0 %v7600_v22  ;;  %v7141_v59 = vld [vmem:[#allocation7 + $0xa40] sm:$0xff] }
 0x1e6   :  { %3014 = vmatprep.mubr.f32.mxu1 %v7606_v26  ;;  %6010 = vmatprep.subr.mxu0 %v7111_v54  ;;  %v7142_v55 = vld [vmem:[#allocation7 + $0xb40] sm:$0xff]  ;;  %v7143_v54 = vld [vmem:[#allocation7 + $0xab8] sm:$0xff] }
 0x1e7   :  { %6045 = vmatprep.subr.mxu1 %v7112_v4  ;;  %3015 = vmatmul.mubr.f32.vlgmr.msra.gmra.mxu1 %v7604_v25  ;;  %v7144_v4 = vld [vmem:[#allocation7 + $0xbb8] sm:$0xff] }
 0x1e8   :  { %6011 = vmatpush3.msra.mxu0 %v7113_v53  ;;  %6046 = vmatpush3.msra.mxu1 %v7114_v12  ;;  %v7145_v53 = vld [vmem:[#allocation7 + $0xa38] sm:$0xff] }
 0x1e9   :  { %6012 = vmatprep.subr.mxu0 %v7115_v58  ;;  %6047 = vmatprep.subr.mxu1 %v7116_v20  ;;  %v7146_v12 = vld [vmem:[#allocation7 + $0xb38] sm:$0xff]  ;;  %v7147_v58 = vld [vmem:[#allocation7 + $0xab0] sm:$0xff] }
 0x1ea   :  { %6013 = vmatpush3.msra.mxu0 %v7117_v56  ;;  %6048 = vmatpush3.msra.mxu1 %v7118_v57  ;;  %v7148_v20 = vld [vmem:[#allocation7 + $0xbb0] sm:$0xff] }
 0x1eb   :  { %6014 = vmatprep.subr.mxu0 %v7119_v60  ;;  %6049 = vmatprep.subr.mxu1 %v7120_v13  ;;  %v7149_v56 = vld [vmem:[#allocation7 + $0xa30] sm:$0xff]  ;;  %v7151_v60 = vld [vmem:[#allocation7 + $0xaa8] sm:$0xff] }
 0x1ec   :  { %6015 = vmatpush3.msra.mxu0 %v7121_v17  ;;  %6050 = vmatpush3.msra.mxu1 %v7122_v19  ;;  %v7150_v57 = vld [vmem:[#allocation7 + $0xb30] sm:$0xff]  ;;  %v7152_v13 = vld [vmem:[#allocation7 + $0xba8] sm:$0xff] }
 0x1ed   :  { %6016 = vmatprep.subr.mxu0 %v7123_v44  ;;  %6051 = vmatprep.subr.mxu1 %v7124_v21  ;;  %v7153_v17 = vld [vmem:[#allocation7 + $0xa28] sm:$0xff]  ;;  %v7155_v44 = vld [vmem:[#allocation7 + $0xaa0] sm:$0xff] }
 0x1ee   :  { %6017 = vmatpush3.msra.mxu0 %v7125_v27  ;;  %6052 = vmatpush3.msra.mxu1 %v7126_v31  ;;  %v7154_v19 = vld [vmem:[#allocation7 + $0xb28] sm:$0xff]  ;;  %v7156_v21 = vld [vmem:[#allocation7 + $0xba0] sm:$0xff] }
 0x1ef   :  { %6018 = vmatprep.subr.mxu0 %v7127_v39  ;;  %6053 = vmatprep.subr.mxu1 %v7128_v42  ;;  %v7157_v27 = vld [vmem:[#allocation7 + $0xa20] sm:$0xff]  ;;  %v7159_v39 = vld [vmem:[#allocation7 + $0xa98] sm:$0xff] }
 0x1f0   :  { %6019 = vmatpush3.msra.mxu0 %v7129_v43  ;;  %6054 = vmatpush3.msra.mxu1 %v7130_v48  ;;  %v7158_v31 = vld [vmem:[#allocation7 + $0xb20] sm:$0xff]  ;;  %v7160_v42 = vld [vmem:[#allocation7 + $0xb98] sm:$0xff] }
 0x1f1   :  { %6020 = vmatprep.subr.mxu0 %v7131_v62  ;;  %6055 = vmatprep.subr.mxu1 %v7132_v45  ;;  %v7161_v43 = vld [vmem:[#allocation7 + $0xa18] sm:$0xff]  ;;  %v7163_v62 = vld [vmem:[#allocation7 + $0xa90] sm:$0xff] }
 0x1f2   :  { %6021 = vmatpush3.msra.mxu0 %v7133_v47  ;;  %6056 = vmatpush3.msra.mxu1 %v7134_v51  ;;  %v7162_v48 = vld [vmem:[#allocation7 + $0xb18] sm:$0xff]  ;;  %v7164_v45 = vld [vmem:[#allocation7 + $0xb90] sm:$0xff] }
 0x1f3   :  { %6022 = vmatprep.subr.mxu0 %v7135_v52  ;;  %6057 = vmatprep.subr.mxu1 %v7136_v46  ;;  %v7165_v47 = vld [vmem:[#allocation7 + $0xa10] sm:$0xff]  ;;  %v7167_v52 = vld [vmem:[#allocation7 + $0xa88] sm:$0xff] }
 0x1f4   :  { %6023 = vmatpush3.msra.mxu0 %v7137_v50  ;;  %6058 = vmatpush3.msra.mxu1 %v7138_v5  ;;  %v7166_v51 = vld [vmem:[#allocation7 + $0xb10] sm:$0xff]  ;;  %v7168_v46 = vld [vmem:[#allocation7 + $0xb88] sm:$0xff] }
 0x1f5   :  { %6024 = vmatprep.subr.mxu0 %v7139_v49  ;;  %6059 = vmatprep.subr.mxu1 %v7140_v18  ;;  %v7169_v50 = vld [vmem:[#allocation7 + $0xa08] sm:$0xff]  ;;  %v7171_v49 = vld [vmem:[#allocation7 + $0xa80] sm:$0xff] }
 0x1f6   :  { %6025 = vmatpush3.msra.mxu0 %v7141_v59  ;;  %6060 = vmatpush3.msra.mxu1 %v7142_v55  ;;  %v7170_v5 = vld [vmem:[#allocation7 + $0xb08] sm:$0xff]  ;;  %v7172_v18 = vld [vmem:[#allocation7 + $0xb80] sm:$0xff] }
 0x1f7   :  { %6026 = vmatprep.subr.mxu0 %v7143_v54  ;;  %6061 = vmatprep.subr.mxu1 %v7144_v4  ;;  %v7173_v59 = vld [vmem:[#allocation7 + $0xa00] sm:$0xff]  ;;  %v7175_v54 = vld [vmem:[#allocation7 + $0xcf8] sm:$0xff] }
 0x1f8   :  { %6027 = vmatpush3.msra.mxu0 %v7145_v53  ;;  %6062 = vmatpush3.msra.mxu1 %v7146_v12  ;;  %v7174_v55 = vld [vmem:[#allocation7 + $0xb00] sm:$0xff]  ;;  %v7176_v4 = vld [vmem:[#allocation7 + $0xdf8] sm:$0xff] }
 0x1f9   :  { %6028 = vmatprep.subr.mxu0 %v7147_v58  ;;  %6063 = vmatprep.subr.mxu1 %v7148_v20  ;;  %v7177_v53 = vld [vmem:[#allocation7 + $0xc78] sm:$0xff]  ;;  %v7179_v58 = vld [vmem:[#allocation7 + $0xcf0] sm:$0xff] }
 0x1fa   :  { %6029 = vmatpush3.msra.mxu0 %v7149_v56  ;;  %6064 = vmatpush3.msra.mxu1 %v7150_v57  ;;  %v7178_v12 = vld [vmem:[#allocation7 + $0xd78] sm:$0xff]  ;;  %v7180_v20 = vld [vmem:[#allocation7 + $0xdf0] sm:$0xff] }
 0x1fb   :  { %6030 = vmatprep.subr.mxu0 %v7151_v60  ;;  %6065 = vmatprep.subr.mxu1 %v7152_v13  ;;  %v7181_v56 = vld [vmem:[#allocation7 + $0xc70] sm:$0xff]  ;;  %v7183_v60 = vld [vmem:[#allocation7 + $0xce8] sm:$0xff] }
 0x1fc   :  { %6031 = vmatpush3.msra.mxu0 %v7153_v17  ;;  %6066 = vmatpush3.msra.mxu1 %v7154_v19  ;;  %v7182_v57 = vld [vmem:[#allocation7 + $0xd70] sm:$0xff]  ;;  %v7184_v13 = vld [vmem:[#allocation7 + $0xde8] sm:$0xff] }
 0x1fd   :  { %6032 = vmatprep.subr.mxu0 %v7155_v44  ;;  %6067 = vmatprep.subr.mxu1 %v7156_v21  ;;  %v7185_v17 = vld [vmem:[#allocation7 + $0xc68] sm:$0xff]  ;;  %v7187_v44 = vld [vmem:[#allocation7 + $0xce0] sm:$0xff] }
 0x1fe   :  { %6033 = vmatpush3.msra.mxu0 %v7157_v27  ;;  %6068 = vmatpush3.msra.mxu1 %v7158_v31  ;;  %v7186_v19 = vld [vmem:[#allocation7 + $0xd68] sm:$0xff]  ;;  %v7188_v21 = vld [vmem:[#allocation7 + $0xde0] sm:$0xff] }
 0x1ff   :  { %6034 = vmatprep.subr.mxu0 %v7159_v39  ;;  %6069 = vmatprep.subr.mxu1 %v7160_v42  ;;  %v7189_v27 = vld [vmem:[#allocation7 + $0xc60] sm:$0xff]  ;;  %v7191_v39 = vld [vmem:[#allocation7 + $0xcd8] sm:$0xff] }
 0x200   :  { %6035 = vmatpush3.msra.mxu0 %v7161_v43  ;;  %6070 = vmatpush3.msra.mxu1 %v7162_v48  ;;  %v7190_v31 = vld [vmem:[#allocation7 + $0xd60] sm:$0xff]  ;;  %v7192_v42 = vld [vmem:[#allocation7 + $0xdd8] sm:$0xff] }
 0x201   :  { %6036 = vmatprep.subr.mxu0 %v7163_v62  ;;  %6071 = vmatprep.subr.mxu1 %v7164_v45  ;;  %v7193_v43 = vld [vmem:[#allocation7 + $0xc58] sm:$0xff]  ;;  %v7195_v62 = vld [vmem:[#allocation7 + $0xcd0] sm:$0xff] }
 0x202   :  { %6037 = vmatpush3.msra.mxu0 %v7165_v47  ;;  %6072 = vmatpush3.msra.mxu1 %v7166_v51  ;;  %v7194_v48 = vld [vmem:[#allocation7 + $0xd58] sm:$0xff]  ;;  %v7196_v45 = vld [vmem:[#allocation7 + $0xdd0] sm:$0xff] }
 0x203   :  { %6038 = vmatprep.subr.mxu0 %v7167_v52  ;;  %6073 = vmatprep.subr.mxu1 %v7168_v46  ;;  %v7197_v47 = vld [vmem:[#allocation7 + $0xc50] sm:$0xff]  ;;  %v7199_v52 = vld [vmem:[#allocation7 + $0xcc8] sm:$0xff] }
 0x204   :  { %6039 = vmatpush3.msra.mxu0 %v7169_v50  ;;  %6074 = vmatpush3.msra.mxu1 %v7170_v5  ;;  %v7198_v51 = vld [vmem:[#allocation7 + $0xd50] sm:$0xff]  ;;  %v7200_v46 = vld [vmem:[#allocation7 + $0xdc8] sm:$0xff] }
 0x205   :  { %6040 = vmatprep.subr.mxu0 %v7171_v49  ;;  %6075 = vmatprep.subr.mxu1 %v7172_v18  ;;  %v7201_v50 = vld [vmem:[#allocation7 + $0xc48] sm:$0xff]  ;;  %v7203_v49 = vld [vmem:[#allocation7 + $0xcc0] sm:$0xff] }
 0x206   :  { %6041 = vmatpush3.msra.mxu0 %v7173_v59  ;;  %3084 = vmatprep.mubr.f32.mxu0 %v7610_v32  ;;  %v7202_v5 = vld [vmem:[#allocation7 + $0xd48] sm:$0xff]  ;;  %v7204_v18 = vld [vmem:[#allocation7 + $0xdc0] sm:$0xff] }
 0x207   :  { %6076 = vmatpush3.msra.mxu1 %v7174_v55  ;;  %3085 = vmatmul.mubr.f32.vlgmr.msra.gmra.mxu0 %v7608_v40  ;;  %v7205_v59 = vld [vmem:[#allocation7 + $0xc40] sm:$0xff] }
 0x208   :  { %3154 = vmatprep.mubr.f32.mxu1 %v7614_v38  ;;  %6080 = vmatprep.subr.mxu0 %v7175_v54  ;;  %v7206_v55 = vld [vmem:[#allocation7 + $0xd40] sm:$0xff]  ;;  %v7207_v54 = vld [vmem:[#allocation7 + $0xcb8] sm:$0xff] }
 0x209   :  { %6115 = vmatprep.subr.mxu1 %v7176_v4  ;;  %3155 = vmatmul.mubr.f32.vlgmr.msra.gmra.mxu1 %v7612_v36  ;;  %v7208_v4 = vld [vmem:[#allocation7 + $0xdb8] sm:$0xff] }
 0x20a   :  { %6081 = vmatpush3.msra.mxu0 %v7177_v53  ;;  %6116 = vmatpush3.msra.mxu1 %v7178_v12  ;;  %v7209_v53 = vld [vmem:[#allocation7 + $0xc38] sm:$0xff] }
 0x20b   :  { %6082 = vmatprep.subr.mxu0 %v7179_v58  ;;  %6117 = vmatprep.subr.mxu1 %v7180_v20  ;;  %v7210_v12 = vld [vmem:[#allocation7 + $0xd38] sm:$0xff]  ;;  %v7211_v58 = vld [vmem:[#allocation7 + $0xcb0] sm:$0xff] }
 0x20c   :  { %6083 = vmatpush3.msra.mxu0 %v7181_v56  ;;  %6118 = vmatpush3.msra.mxu1 %v7182_v57  ;;  %v7212_v20 = vld [vmem:[#allocation7 + $0xdb0] sm:$0xff] }
 0x20d   :  { %6084 = vmatprep.subr.mxu0 %v7183_v60  ;;  %6119 = vmatprep.subr.mxu1 %v7184_v13  ;;  %v7213_v56 = vld [vmem:[#allocation7 + $0xc30] sm:$0xff]  ;;  %v7215_v60 = vld [vmem:[#allocation7 + $0xca8] sm:$0xff] }
 0x20e   :  { %6085 = vmatpush3.msra.mxu0 %v7185_v17  ;;  %6120 = vmatpush3.msra.mxu1 %v7186_v19  ;;  %v7214_v57 = vld [vmem:[#allocation7 + $0xd30] sm:$0xff]  ;;  %v7216_v13 = vld [vmem:[#allocation7 + $0xda8] sm:$0xff] }
 0x20f   :  { %6086 = vmatprep.subr.mxu0 %v7187_v44  ;;  %6121 = vmatprep.subr.mxu1 %v7188_v21  ;;  %v7217_v17 = vld [vmem:[#allocation7 + $0xc28] sm:$0xff]  ;;  %v7219_v44 = vld [vmem:[#allocation7 + $0xca0] sm:$0xff] }
 0x210   :  { %6087 = vmatpush3.msra.mxu0 %v7189_v27  ;;  %6122 = vmatpush3.msra.mxu1 %v7190_v31  ;;  %v7218_v19 = vld [vmem:[#allocation7 + $0xd28] sm:$0xff]  ;;  %v7220_v21 = vld [vmem:[#allocation7 + $0xda0] sm:$0xff] }
 0x211   :  { %6088 = vmatprep.subr.mxu0 %v7191_v39  ;;  %6123 = vmatprep.subr.mxu1 %v7192_v42  ;;  %v7221_v27 = vld [vmem:[#allocation7 + $0xc20] sm:$0xff]  ;;  %v7223_v39 = vld [vmem:[#allocation7 + $0xc98] sm:$0xff] }
 0x212   :  { %6089 = vmatpush3.msra.mxu0 %v7193_v43  ;;  %6124 = vmatpush3.msra.mxu1 %v7194_v48  ;;  %v7222_v31 = vld [vmem:[#allocation7 + $0xd20] sm:$0xff]  ;;  %v7224_v42 = vld [vmem:[#allocation7 + $0xd98] sm:$0xff] }
 0x213   :  { %6090 = vmatprep.subr.mxu0 %v7195_v62  ;;  %6125 = vmatprep.subr.mxu1 %v7196_v45  ;;  %v7225_v43 = vld [vmem:[#allocation7 + $0xc18] sm:$0xff]  ;;  %v7227_v62 = vld [vmem:[#allocation7 + $0xc90] sm:$0xff] }
 0x214   :  { %6091 = vmatpush3.msra.mxu0 %v7197_v47  ;;  %6126 = vmatpush3.msra.mxu1 %v7198_v51  ;;  %v7226_v48 = vld [vmem:[#allocation7 + $0xd18] sm:$0xff]  ;;  %v7228_v45 = vld [vmem:[#allocation7 + $0xd90] sm:$0xff] }
 0x215   :  { %6092 = vmatprep.subr.mxu0 %v7199_v52  ;;  %6127 = vmatprep.subr.mxu1 %v7200_v46  ;;  %v7229_v47 = vld [vmem:[#allocation7 + $0xc10] sm:$0xff]  ;;  %v7231_v52 = vld [vmem:[#allocation7 + $0xc88] sm:$0xff] }
 0x216   :  { %6093 = vmatpush3.msra.mxu0 %v7201_v50  ;;  %6128 = vmatpush3.msra.mxu1 %v7202_v5  ;;  %v7230_v51 = vld [vmem:[#allocation7 + $0xd10] sm:$0xff]  ;;  %v7232_v46 = vld [vmem:[#allocation7 + $0xd88] sm:$0xff] }
 0x217   :  { %6094 = vmatprep.subr.mxu0 %v7203_v49  ;;  %6129 = vmatprep.subr.mxu1 %v7204_v18  ;;  %v7233_v50 = vld [vmem:[#allocation7 + $0xc08] sm:$0xff]  ;;  %v7235_v49 = vld [vmem:[#allocation7 + $0xc80] sm:$0xff] }
 0x218   :  { %6095 = vmatpush3.msra.mxu0 %v7205_v59  ;;  %6130 = vmatpush3.msra.mxu1 %v7206_v55  ;;  %v7234_v5 = vld [vmem:[#allocation7 + $0xd08] sm:$0xff]  ;;  %v7236_v18 = vld [vmem:[#allocation7 + $0xd80] sm:$0xff] }
 0x219   :  { %6096 = vmatprep.subr.mxu0 %v7207_v54  ;;  %6131 = vmatprep.subr.mxu1 %v7208_v4  ;;  %v7237_v59 = vld [vmem:[#allocation7 + $0xc00] sm:$0xff]  ;;  %v7239_v54 = vld [vmem:[#allocation7 + $0xef8] sm:$0xff] }
 0x21a   :  { %6097 = vmatpush3.msra.mxu0 %v7209_v53  ;;  %6132 = vmatpush3.msra.mxu1 %v7210_v12  ;;  %v7238_v55 = vld [vmem:[#allocation7 + $0xd00] sm:$0xff]  ;;  %v7240_v4 = vld [vmem:[#allocation7 + $0xff8] sm:$0xff] }
 0x21b   :  { %6098 = vmatprep.subr.mxu0 %v7211_v58  ;;  %6133 = vmatprep.subr.mxu1 %v7212_v20  ;;  %v7241_v53 = vld [vmem:[#allocation7 + $0xe78] sm:$0xff]  ;;  %v7243_v58 = vld [vmem:[#allocation7 + $0xef0] sm:$0xff] }
 0x21c   :  { %6099 = vmatpush3.msra.mxu0 %v7213_v56  ;;  %6134 = vmatpush3.msra.mxu1 %v7214_v57  ;;  %v7242_v12 = vld [vmem:[#allocation7 + $0xf78] sm:$0xff]  ;;  %v7244_v20 = vld [vmem:[#allocation7 + $0xff0] sm:$0xff] }
 0x21d   :  { %6100 = vmatprep.subr.mxu0 %v7215_v60  ;;  %6135 = vmatprep.subr.mxu1 %v7216_v13  ;;  %v7245_v56 = vld [vmem:[#allocation7 + $0xe70] sm:$0xff]  ;;  %v7247_v60 = vld [vmem:[#allocation7 + $0xee8] sm:$0xff] }
 0x21e   :  { %6101 = vmatpush3.msra.mxu0 %v7217_v17  ;;  %6136 = vmatpush3.msra.mxu1 %v7218_v19  ;;  %v7246_v57 = vld [vmem:[#allocation7 + $0xf70] sm:$0xff]  ;;  %v7248_v13 = vld [vmem:[#allocation7 + $0xfe8] sm:$0xff] }
 0x21f   :  { %6102 = vmatprep.subr.mxu0 %v7219_v44  ;;  %6137 = vmatprep.subr.mxu1 %v7220_v21  ;;  %v7249_v17 = vld [vmem:[#allocation7 + $0xe68] sm:$0xff]  ;;  %v7251_v44 = vld [vmem:[#allocation7 + $0xee0] sm:$0xff] }
 0x220   :  { %6103 = vmatpush3.msra.mxu0 %v7221_v27  ;;  %6138 = vmatpush3.msra.mxu1 %v7222_v31  ;;  %v7250_v19 = vld [vmem:[#allocation7 + $0xf68] sm:$0xff]  ;;  %v7252_v21 = vld [vmem:[#allocation7 + $0xfe0] sm:$0xff] }
 0x221   :  { %6104 = vmatprep.subr.mxu0 %v7223_v39  ;;  %6139 = vmatprep.subr.mxu1 %v7224_v42  ;;  %v7253_v27 = vld [vmem:[#allocation7 + $0xe60] sm:$0xff]  ;;  %v7255_v39 = vld [vmem:[#allocation7 + $0xed8] sm:$0xff] }
 0x222   :  { %6105 = vmatpush3.msra.mxu0 %v7225_v43  ;;  %6140 = vmatpush3.msra.mxu1 %v7226_v48  ;;  %v7254_v31 = vld [vmem:[#allocation7 + $0xf60] sm:$0xff]  ;;  %v7256_v42 = vld [vmem:[#allocation7 + $0xfd8] sm:$0xff] }
 0x223   :  { %6106 = vmatprep.subr.mxu0 %v7227_v62  ;;  %6141 = vmatprep.subr.mxu1 %v7228_v45  ;;  %v7257_v43 = vld [vmem:[#allocation7 + $0xe58] sm:$0xff]  ;;  %v7259_v62 = vld [vmem:[#allocation7 + $0xed0] sm:$0xff] }
 0x224   :  { %6107 = vmatpush3.msra.mxu0 %v7229_v47  ;;  %6142 = vmatpush3.msra.mxu1 %v7230_v51  ;;  %v7258_v48 = vld [vmem:[#allocation7 + $0xf58] sm:$0xff]  ;;  %v7260_v45 = vld [vmem:[#allocation7 + $0xfd0] sm:$0xff] }
 0x225   :  { %6108 = vmatprep.subr.mxu0 %v7231_v52  ;;  %6143 = vmatprep.subr.mxu1 %v7232_v46  ;;  %v7261_v47 = vld [vmem:[#allocation7 + $0xe50] sm:$0xff]  ;;  %v7263_v52 = vld [vmem:[#allocation7 + $0xec8] sm:$0xff] }
 0x226   :  { %6109 = vmatpush3.msra.mxu0 %v7233_v50  ;;  %6144 = vmatpush3.msra.mxu1 %v7234_v5  ;;  %v7262_v51 = vld [vmem:[#allocation7 + $0xf50] sm:$0xff]  ;;  %v7264_v46 = vld [vmem:[#allocation7 + $0xfc8] sm:$0xff] }
 0x227   :  { %6110 = vmatprep.subr.mxu0 %v7235_v49  ;;  %6145 = vmatprep.subr.mxu1 %v7236_v18  ;;  %v7265_v50 = vld [vmem:[#allocation7 + $0xe48] sm:$0xff]  ;;  %v7267_v49 = vld [vmem:[#allocation7 + $0xec0] sm:$0xff] }
 0x228   :  { %6111 = vmatpush3.msra.mxu0 %v7237_v59  ;;  %3224 = vmatprep.mubr.f32.mxu0 %v7669_v9  ;;  %v7266_v5 = vld [vmem:[#allocation7 + $0xf48] sm:$0xff]  ;;  %v7268_v18 = vld [vmem:[#allocation7 + $0xfc0] sm:$0xff] }
 0x229   :  { %6146 = vmatpush3.msra.mxu1 %v7238_v55  ;;  %3225 = vmatmul.mubr.f32.vlgmr.msra.gmra.mxu0 %v7667_v6  ;;  %v7269_v59 = vld [vmem:[#allocation7 + $0xe40] sm:$0xff] }
 0x22a   :  { %3294 = vmatprep.mubr.f32.mxu1 %v7673_v11  ;;  %6150 = vmatprep.subr.mxu0 %v7239_v54  ;;  %v7270_v55 = vld [vmem:[#allocation7 + $0xf40] sm:$0xff]  ;;  %v7271_v54 = vld [vmem:[#allocation7 + $0xeb8] sm:$0xff] }
 0x22b   :  { %6185 = vmatprep.subr.mxu1 %v7240_v4  ;;  %3295 = vmatmul.mubr.f32.vlgmr.msra.gmra.mxu1 %v7671_v10  ;;  %v7272_v4 = vld [vmem:[#allocation7 + $0xfb8] sm:$0xff] }
 0x22c   :  { %6151 = vmatpush3.msra.mxu0 %v7241_v53  ;;  %6186 = vmatpush3.msra.mxu1 %v7242_v12  ;;  %v7273_v53 = vld [vmem:[#allocation7 + $0xe38] sm:$0xff] }
 0x22d   :  { %6152 = vmatprep.subr.mxu0 %v7243_v58  ;;  %6187 = vmatprep.subr.mxu1 %v7244_v20  ;;  %v7274_v12 = vld [vmem:[#allocation7 + $0xf38] sm:$0xff]  ;;  %v7275_v58 = vld [vmem:[#allocation7 + $0xeb0] sm:$0xff] }
 0x22e   :  { %6153 = vmatpush3.msra.mxu0 %v7245_v56  ;;  %6188 = vmatpush3.msra.mxu1 %v7246_v57  ;;  %v7276_v20 = vld [vmem:[#allocation7 + $0xfb0] sm:$0xff] }
 0x22f   :  { %6154 = vmatprep.subr.mxu0 %v7247_v60  ;;  %6189 = vmatprep.subr.mxu1 %v7248_v13  ;;  %v7277_v56 = vld [vmem:[#allocation7 + $0xe30] sm:$0xff]  ;;  %v7279_v60 = vld [vmem:[#allocation7 + $0xea8] sm:$0xff] }
 0x230   :  { %6155 = vmatpush3.msra.mxu0 %v7249_v17  ;;  %6190 = vmatpush3.msra.mxu1 %v7250_v19  ;;  %v7278_v57 = vld [vmem:[#allocation7 + $0xf30] sm:$0xff]  ;;  %v7280_v13 = vld [vmem:[#allocation7 + $0xfa8] sm:$0xff] }
 0x231   :  { %6156 = vmatprep.subr.mxu0 %v7251_v44  ;;  %6191 = vmatprep.subr.mxu1 %v7252_v21  ;;  %v7281_v17 = vld [vmem:[#allocation7 + $0xe28] sm:$0xff]  ;;  %v7283_v44 = vld [vmem:[#allocation7 + $0xea0] sm:$0xff] }
 0x232   :  { %6157 = vmatpush3.msra.mxu0 %v7253_v27  ;;  %6192 = vmatpush3.msra.mxu1 %v7254_v31  ;;  %v7282_v19 = vld [vmem:[#allocation7 + $0xf28] sm:$0xff]  ;;  %v7284_v21 = vld [vmem:[#allocation7 + $0xfa0] sm:$0xff] }
 0x233   :  { %6158 = vmatprep.subr.mxu0 %v7255_v39  ;;  %6193 = vmatprep.subr.mxu1 %v7256_v42  ;;  %v7285_v27 = vld [vmem:[#allocation7 + $0xe20] sm:$0xff]  ;;  %v7287_v39 = vld [vmem:[#allocation7 + $0xe98] sm:$0xff] }
 0x234   :  { %6159 = vmatpush3.msra.mxu0 %v7257_v43  ;;  %6194 = vmatpush3.msra.mxu1 %v7258_v48  ;;  %v7286_v31 = vld [vmem:[#allocation7 + $0xf20] sm:$0xff]  ;;  %v7288_v42 = vld [vmem:[#allocation7 + $0xf98] sm:$0xff] }
 0x235   :  { %6160 = vmatprep.subr.mxu0 %v7259_v62  ;;  %6195 = vmatprep.subr.mxu1 %v7260_v45  ;;  %v7289_v43 = vld [vmem:[#allocation7 + $0xe18] sm:$0xff]  ;;  %v7291_v62 = vld [vmem:[#allocation7 + $0xe90] sm:$0xff] }
 0x236   :  { %6161 = vmatpush3.msra.mxu0 %v7261_v47  ;;  %6196 = vmatpush3.msra.mxu1 %v7262_v51  ;;  %v7290_v48 = vld [vmem:[#allocation7 + $0xf18] sm:$0xff]  ;;  %v7292_v45 = vld [vmem:[#allocation7 + $0xf90] sm:$0xff] }
 0x237   :  { %6162 = vmatprep.subr.mxu0 %v7263_v52  ;;  %6197 = vmatprep.subr.mxu1 %v7264_v46  ;;  %v7293_v47 = vld [vmem:[#allocation7 + $0xe10] sm:$0xff]  ;;  %v7295_v52 = vld [vmem:[#allocation7 + $0xe88] sm:$0xff] }
 0x238   :  { %6163 = vmatpush3.msra.mxu0 %v7265_v50  ;;  %6198 = vmatpush3.msra.mxu1 %v7266_v5  ;;  %v7294_v51 = vld [vmem:[#allocation7 + $0xf10] sm:$0xff]  ;;  %v7296_v46 = vld [vmem:[#allocation7 + $0xf88] sm:$0xff] }
 0x239   :  { %6164 = vmatprep.subr.mxu0 %v7267_v49  ;;  %6199 = vmatprep.subr.mxu1 %v7268_v18  ;;  %v7297_v50 = vld [vmem:[#allocation7 + $0xe08] sm:$0xff]  ;;  %v7299_v49 = vld [vmem:[#allocation7 + $0xe80] sm:$0xff] }
 0x23a   :  { %6165 = vmatpush3.msra.mxu0 %v7269_v59  ;;  %6200 = vmatpush3.msra.mxu1 %v7270_v55  ;;  %v7298_v5 = vld [vmem:[#allocation7 + $0xf08] sm:$0xff]  ;;  %v7300_v18 = vld [vmem:[#allocation7 + $0xf80] sm:$0xff]  ;;  %v3471_v59 = vld [vmem:[#allocation9 + $0xf8] sm:$0xff] }
 0x23b   :  { %6166 = vmatprep.subr.mxu0 %v7271_v54  ;;  %6201 = vmatprep.subr.mxu1 %v7272_v4  ;;  %v7301_v55 = vld [vmem:[#allocation7 + $0xe00] sm:$0xff]  ;;  %v3503_v54 = vld [vmem:[#allocation9 + $0x1f8] sm:$0xff] }
 0x23c   :  { %6167 = vmatpush3.msra.mxu0 %v7273_v53  ;;  %6202 = vmatpush3.msra.mxu1 %v7274_v12  ;;  %v7302_v4 = vld [vmem:[#allocation7 + $0xf00] sm:$0xff]  ;;  %v3455_v53 = vld [vmem:[#allocation9 + $0x78] sm:$0xff] }
 0x23d   :  { %6168 = vmatprep.subr.mxu0 %v7275_v58  ;;  %6203 = vmatprep.subr.mxu1 %v7276_v20  ;;  %v3487_v12 = vld [vmem:[#allocation9 + $0x178] sm:$0xff]  ;;  %v3470_v58 = vld [vmem:[#allocation9 + $0xf0] sm:$0xff] }
 0x23e   :  { %6169 = vmatpush3.msra.mxu0 %v7277_v56  ;;  %6204 = vmatpush3.msra.mxu1 %v7278_v57  ;;  %v3502_v20 = vld [vmem:[#allocation9 + $0x1f0] sm:$0xff] }
 0x23f   :  { %6170 = vmatprep.subr.mxu0 %v7279_v60  ;;  %6205 = vmatprep.subr.mxu1 %v7280_v13  ;;  %v3454_v56 = vld [vmem:[#allocation9 + $0x70] sm:$0xff]  ;;  %v3469_v60 = vld [vmem:[#allocation9 + $0xe8] sm:$0xff] }
 0x240   :  { %6171 = vmatpush3.msra.mxu0 %v7281_v17  ;;  %6206 = vmatpush3.msra.mxu1 %v7282_v19  ;;  %v3486_v57 = vld [vmem:[#allocation9 + $0x170] sm:$0xff]  ;;  %v3501_v13 = vld [vmem:[#allocation9 + $0x1e8] sm:$0xff] }
 0x241   :  { %6172 = vmatprep.subr.mxu0 %v7283_v44  ;;  %6207 = vmatprep.subr.mxu1 %v7284_v21  ;;  %v3453_v17 = vld [vmem:[#allocation9 + $0x68] sm:$0xff]  ;;  %v3468_v44 = vld [vmem:[#allocation9 + $0xe0] sm:$0xff] }
 0x242   :  { %6173 = vmatpush3.msra.mxu0 %v7285_v27  ;;  %6208 = vmatpush3.msra.mxu1 %v7286_v31  ;;  %v3485_v19 = vld [vmem:[#allocation9 + $0x168] sm:$0xff]  ;;  %v3500_v21 = vld [vmem:[#allocation9 + $0x1e0] sm:$0xff] }
 0x243   :  { %6174 = vmatprep.subr.mxu0 %v7287_v39  ;;  %6209 = vmatprep.subr.mxu1 %v7288_v42  ;;  %v3452_v27 = vld [vmem:[#allocation9 + $0x60] sm:$0xff]  ;;  %v3467_v39 = vld [vmem:[#allocation9 + $0xd8] sm:$0xff] }
 0x244   :  { %6175 = vmatpush3.msra.mxu0 %v7289_v43  ;;  %6210 = vmatpush3.msra.mxu1 %v7290_v48  ;;  %v3484_v31 = vld [vmem:[#allocation9 + $0x160] sm:$0xff]  ;;  %v3499_v42 = vld [vmem:[#allocation9 + $0x1d8] sm:$0xff] }
 0x245   :  { %6176 = vmatprep.subr.mxu0 %v7291_v62  ;;  %6211 = vmatprep.subr.mxu1 %v7292_v45  ;;  %v3451_v43 = vld [vmem:[#allocation9 + $0x58] sm:$0xff]  ;;  %v3466_v62 = vld [vmem:[#allocation9 + $0xd0] sm:$0xff] }
 0x246   :  { %6177 = vmatpush3.msra.mxu0 %v7293_v47  ;;  %6212 = vmatpush3.msra.mxu1 %v7294_v51  ;;  %v3483_v48 = vld [vmem:[#allocation9 + $0x158] sm:$0xff]  ;;  %v3498_v45 = vld [vmem:[#allocation9 + $0x1d0] sm:$0xff] }
 0x247   :  { %6178 = vmatprep.subr.mxu0 %v7295_v52  ;;  %6213 = vmatprep.subr.mxu1 %v7296_v46  ;;  %v3450_v47 = vld [vmem:[#allocation9 + $0x50] sm:$0xff]  ;;  %v3465_v52 = vld [vmem:[#allocation9 + $0xc8] sm:$0xff] }
 0x248   :  { %6179 = vmatpush3.msra.mxu0 %v7297_v50  ;;  %6214 = vmatpush3.msra.mxu1 %v7298_v5  ;;  %v3482_v51 = vld [vmem:[#allocation9 + $0x150] sm:$0xff]  ;;  %v3497_v46 = vld [vmem:[#allocation9 + $0x1c8] sm:$0xff] }
 0x249   :  { %6180 = vmatprep.subr.mxu0 %v7299_v49  ;;  %6215 = vmatprep.subr.mxu1 %v7300_v18  ;;  %v3449_v50 = vld [vmem:[#allocation9 + $0x48] sm:$0xff]  ;;  %v3464_v49 = vld [vmem:[#allocation9 + $0xc0] sm:$0xff] }
 0x24a   :  { %6181 = vmatpush3.msra.mxu0 %v7301_v55  ;;  %3364 = vmatprep.mubr.f32.mxu0 %v7677_v14  ;;  %v3481_v5 = vld [vmem:[#allocation9 + $0x148] sm:$0xff]  ;;  %v3496_v18 = vld [vmem:[#allocation9 + $0x1c0] sm:$0xff] }
 0x24b   :  { %6216 = vmatpush3.msra.mxu1 %v7302_v4  ;;  %3365 = vmatmul.mubr.f32.vlgmr.msra.gmra.mxu0 %v7675_v41  ;;  %v3480_v55 = vld [vmem:[#allocation9 + $0x140] sm:$0xff]  ;;  %v3495_v4 = vld [vmem:[#allocation9 + $0x1b8] sm:$0xff] }
 0x24c   :  { %3434 = vmatprep.mubr.f32.mxu1 %v7681_v16  ;;  %6220 = vmatprep.subr.mxu0 %v3471_v59  ;;  %v3448_v59 = vld [vmem:[#allocation9 + $0x40] sm:$0xff] }
 0x24d   :  { %6255 = vmatprep.subr.mxu1 %v3503_v54  ;;  %3435 = vmatmul.mubr.f32.vlgmr.msra.gmra.mxu1 %v7679_v15  ;;  %v3463_v54 = vld [vmem:[#allocation9 + $0xb8] sm:$0xff] }
 0x24e   :  { %6221 = vmatpush3.msra.mxu0 %v3455_v53  ;;  %6256 = vmatpush3.msra.mxu1 %v3487_v12  ;;  %v3447_v53 = vld [vmem:[#allocation9 + $0x38] sm:$0xff] }
 0x24f   :  { %6222 = vmatprep.subr.mxu0 %v3470_v58  ;;  %6257 = vmatprep.subr.mxu1 %v3502_v20  ;;  %v3479_v12 = vld [vmem:[#allocation9 + $0x138] sm:$0xff]  ;;  %v3462_v58 = vld [vmem:[#allocation9 + $0xb0] sm:$0xff] }
 0x250   :  { %6223 = vmatpush3.msra.mxu0 %v3454_v56  ;;  %6258 = vmatpush3.msra.mxu1 %v3486_v57  ;;  %v3494_v20 = vld [vmem:[#allocation9 + $0x1b0] sm:$0xff] }
 0x251   :  { %6224 = vmatprep.subr.mxu0 %v3469_v60  ;;  %6259 = vmatprep.subr.mxu1 %v3501_v13  ;;  %v3446_v56 = vld [vmem:[#allocation9 + $0x30] sm:$0xff]  ;;  %v3461_v60 = vld [vmem:[#allocation9 + $0xa8] sm:$0xff] }
 0x252   :  { %6225 = vmatpush3.msra.mxu0 %v3453_v17  ;;  %6260 = vmatpush3.msra.mxu1 %v3485_v19  ;;  %v3478_v57 = vld [vmem:[#allocation9 + $0x130] sm:$0xff]  ;;  %v3493_v13 = vld [vmem:[#allocation9 + $0x1a8] sm:$0xff] }
 0x253   :  { %6226 = vmatprep.subr.mxu0 %v3468_v44  ;;  %6261 = vmatprep.subr.mxu1 %v3500_v21  ;;  %v3445_v17 = vld [vmem:[#allocation9 + $0x28] sm:$0xff]  ;;  %v3460_v44 = vld [vmem:[#allocation9 + $0xa0] sm:$0xff] }
 0x254   :  { %6227 = vmatpush3.msra.mxu0 %v3452_v27  ;;  %6262 = vmatpush3.msra.mxu1 %v3484_v31  ;;  %v3477_v19 = vld [vmem:[#allocation9 + $0x128] sm:$0xff]  ;;  %v3492_v21 = vld [vmem:[#allocation9 + $0x1a0] sm:$0xff] }
 0x255   :  { %6228 = vmatprep.subr.mxu0 %v3467_v39  ;;  %6263 = vmatprep.subr.mxu1 %v3499_v42  ;;  %v3444_v27 = vld [vmem:[#allocation9 + $0x20] sm:$0xff]  ;;  %v3459_v39 = vld [vmem:[#allocation9 + $0x98] sm:$0xff] }
 0x256   :  { %6229 = vmatpush3.msra.mxu0 %v3451_v43  ;;  %6264 = vmatpush3.msra.mxu1 %v3483_v48  ;;  %v3476_v31 = vld [vmem:[#allocation9 + $0x120] sm:$0xff]  ;;  %v3491_v42 = vld [vmem:[#allocation9 + $0x198] sm:$0xff] }
 0x257   :  { %6230 = vmatprep.subr.mxu0 %v3466_v62  ;;  %6265 = vmatprep.subr.mxu1 %v3498_v45  ;;  %v3443_v43 = vld [vmem:[#allocation9 + $0x18] sm:$0xff]  ;;  %v3458_v62 = vld [vmem:[#allocation9 + $0x90] sm:$0xff] }
 0x258   :  { %6231 = vmatpush3.msra.mxu0 %v3450_v47  ;;  %6266 = vmatpush3.msra.mxu1 %v3482_v51  ;;  %v3475_v48 = vld [vmem:[#allocation9 + $0x118] sm:$0xff]  ;;  %v3490_v45 = vld [vmem:[#allocation9 + $0x190] sm:$0xff] }
 0x259   :  { %6232 = vmatprep.subr.mxu0 %v3465_v52  ;;  %6267 = vmatprep.subr.mxu1 %v3497_v46  ;;  %v3442_v47 = vld [vmem:[#allocation9 + $0x10] sm:$0xff]  ;;  %v3457_v52 = vld [vmem:[#allocation9 + $0x88] sm:$0xff] }
 0x25a   :  { %6233 = vmatpush3.msra.mxu0 %v3449_v50  ;;  %6268 = vmatpush3.msra.mxu1 %v3481_v5  ;;  %v3474_v51 = vld [vmem:[#allocation9 + $0x110] sm:$0xff]  ;;  %v3489_v46 = vld [vmem:[#allocation9 + $0x188] sm:$0xff] }
 0x25b   :  { %6234 = vmatprep.subr.mxu0 %v3464_v49  ;;  %6269 = vmatprep.subr.mxu1 %v3496_v18  ;;  %v3441_v50 = vld [vmem:[#allocation9 + $0x8] sm:$0xff]  ;;  %v3456_v49 = vld [vmem:[#allocation9 + $0x80] sm:$0xff] }
 0x25c   :  { %6235 = vmatpush3.msra.mxu0 %v3448_v59  ;;  %6270 = vmatpush3.msra.mxu1 %v3480_v55  ;;  %v3473_v5 = vld [vmem:[#allocation9 + $0x108] sm:$0xff]  ;;  %v3488_v18 = vld [vmem:[#allocation9 + $0x180] sm:$0xff] }
 0x25d   :  { %6236 = vmatprep.subr.mxu0 %v3463_v54  ;;  %6271 = vmatprep.subr.mxu1 %v3495_v4  ;;  %v3440_v59 = vld [vmem:[#allocation9] sm:$0xff]  ;;  %v3535_v54 = vld [vmem:[#allocation9 + $0x2f8] sm:$0xff] }
 0x25e   :  { %6237 = vmatpush3.msra.mxu0 %v3447_v53  ;;  %6272 = vmatpush3.msra.mxu1 %v3479_v12  ;;  %v3472_v55 = vld [vmem:[#allocation9 + $0x100] sm:$0xff]  ;;  %v3567_v4 = vld [vmem:[#allocation9 + $0x3f8] sm:$0xff] }
 0x25f   :  { %6238 = vmatprep.subr.mxu0 %v3462_v58  ;;  %6273 = vmatprep.subr.mxu1 %v3494_v20  ;;  %v3519_v53 = vld [vmem:[#allocation9 + $0x278] sm:$0xff]  ;;  %v3534_v58 = vld [vmem:[#allocation9 + $0x2f0] sm:$0xff] }
 0x260   :  { %6239 = vmatpush3.msra.mxu0 %v3446_v56  ;;  %6274 = vmatpush3.msra.mxu1 %v3478_v57  ;;  %v3551_v12 = vld [vmem:[#allocation9 + $0x378] sm:$0xff]  ;;  %v3566_v20 = vld [vmem:[#allocation9 + $0x3f0] sm:$0xff] }
 0x261   :  { %6240 = vmatprep.subr.mxu0 %v3461_v60  ;;  %6275 = vmatprep.subr.mxu1 %v3493_v13  ;;  %v3518_v56 = vld [vmem:[#allocation9 + $0x270] sm:$0xff]  ;;  %v3565_v60 = vld [vmem:[#allocation9 + $0x3e8] sm:$0xff] }
 0x262   :  { %6241 = vmatpush3.msra.mxu0 %v3445_v17  ;;  %6276 = vmatpush3.msra.mxu1 %v3477_v19  ;;  %v3550_v57 = vld [vmem:[#allocation9 + $0x370] sm:$0xff]  ;;  %v3517_v13 = vld [vmem:[#allocation9 + $0x268] sm:$0xff]  ;;  %v3532_v17 = vld [vmem:[#allocation9 + $0x2e0] sm:$0xff] }
 0x263   :  { %6242 = vmatprep.subr.mxu0 %v3460_v44  ;;  %6277 = vmatprep.subr.mxu1 %v3492_v21  ;;  %v3548_v19 = vld [vmem:[#allocation9 + $0x360] sm:$0xff]  ;;  %v3531_v44 = vld [vmem:[#allocation9 + $0x2d8] sm:$0xff] }
 0x264   :  { %6243 = vmatpush3.msra.mxu0 %v3444_v27  ;;  %6278 = vmatpush3.msra.mxu1 %v3476_v31  ;;  %v3563_v21 = vld [vmem:[#allocation9 + $0x3d8] sm:$0xff] }
 0x265   :  { %6244 = vmatprep.subr.mxu0 %v3459_v39  ;;  %6279 = vmatprep.subr.mxu1 %v3491_v42  ;;  %v3515_v27 = vld [vmem:[#allocation9 + $0x258] sm:$0xff]  ;;  %v3530_v39 = vld [vmem:[#allocation9 + $0x2d0] sm:$0xff] }
 0x266   :  { %6245 = vmatpush3.msra.mxu0 %v3443_v43  ;;  %6280 = vmatpush3.msra.mxu1 %v3475_v48  ;;  %v3547_v31 = vld [vmem:[#allocation9 + $0x358] sm:$0xff]  ;;  %v3562_v42 = vld [vmem:[#allocation9 + $0x3d0] sm:$0xff] }
 0x267   :  { %6246 = vmatprep.subr.mxu0 %v3458_v62  ;;  %6281 = vmatprep.subr.mxu1 %v3490_v45  ;;  %v3514_v43 = vld [vmem:[#allocation9 + $0x250] sm:$0xff]  ;;  %v3529_v62 = vld [vmem:[#allocation9 + $0x2c8] sm:$0xff] }
 0x268   :  { %6247 = vmatpush3.msra.mxu0 %v3442_v47  ;;  %6282 = vmatpush3.msra.mxu1 %v3474_v51  ;;  %v3546_v48 = vld [vmem:[#allocation9 + $0x350] sm:$0xff]  ;;  %v3561_v45 = vld [vmem:[#allocation9 + $0x3c8] sm:$0xff] }
 0x269   :  { %6248 = vmatprep.subr.mxu0 %v3457_v52  ;;  %6283 = vmatprep.subr.mxu1 %v3489_v46  ;;  %v3513_v47 = vld [vmem:[#allocation9 + $0x248] sm:$0xff]  ;;  %v3528_v52 = vld [vmem:[#allocation9 + $0x2c0] sm:$0xff] }
 0x26a   :  { %6249 = vmatpush3.msra.mxu0 %v3441_v50  ;;  %6284 = vmatpush3.msra.mxu1 %v3473_v5  ;;  %v3545_v51 = vld [vmem:[#allocation9 + $0x348] sm:$0xff]  ;;  %v3560_v46 = vld [vmem:[#allocation9 + $0x3c0] sm:$0xff] }
 0x26b   :  { %6250 = vmatprep.subr.mxu0 %v3456_v49  ;;  %6285 = vmatprep.subr.mxu1 %v3488_v18  ;;  %v3512_v50 = vld [vmem:[#allocation9 + $0x240] sm:$0xff]  ;;  %v3527_v49 = vld [vmem:[#allocation9 + $0x2b8] sm:$0xff] }
 0x26c   :  { %6251 = vmatpush3.msra.mxu0 %v3440_v59  ;;  %4016 = vmatprep.mubr.f32.mxu0 %v7468_v28  ;;  %v3533_v28 = vld [vmem:[#allocation9 + $0x2e8] sm:$0xff]  ;;  %v3544_v5 = vld [vmem:[#allocation9 + $0x340] sm:$0xff]  ;;  %v3559_v18 = vld [vmem:[#allocation9 + $0x3b8] sm:$0xff] }
 0x26d   :  { %6286 = vmatpush3.msra.mxu1 %v3472_v55  ;;  %4086 = vmatprep.mubr.f32.mxu1 %v7472_v30  ;;  %v3549_v30 = vld [vmem:[#allocation9 + $0x368] sm:$0xff]  ;;  %v3511_v59 = vld [vmem:[#allocation9 + $0x238] sm:$0xff] }
 0x26e   :  { %4017 = vmatmul.mubr.f32.vlgmr.msra.gmra.mxu0 %v7466_v24  ;;  %4087 = vmatmul.mubr.f32.vlgmr.msra.gmra.mxu1 %v7470_v29  ;;  %v3564_v24 = vld [vmem:[#allocation9 + $0x3e0] sm:$0xff]  ;;  %v3543_v55 = vld [vmem:[#allocation9 + $0x338] sm:$0xff] }
 0x26f   :  { %6290 = vmatprep.subr.mxu0 %v3535_v54  ;;  %6325 = vmatprep.subr.mxu1 %v3567_v4  ;;  %v3516_v29 = vld [vmem:[#allocation9 + $0x260] sm:$0xff]  ;;  %v3526_v54 = vld [vmem:[#allocation9 + $0x2b0] sm:$0xff] }
 0x270   :  { %6291 = vmatpush3.msra.mxu0 %v3519_v53  ;;  %6326 = vmatpush3.msra.mxu1 %v3551_v12  ;;  %v3558_v4 = vld [vmem:[#allocation9 + $0x3b0] sm:$0xff] }
 0x271   :  { %6292 = vmatprep.subr.mxu0 %v3534_v58  ;;  %6327 = vmatprep.subr.mxu1 %v3566_v20  ;;  %v3510_v53 = vld [vmem:[#allocation9 + $0x230] sm:$0xff]  ;;  %v3525_v58 = vld [vmem:[#allocation9 + $0x2a8] sm:$0xff] }
 0x272   :  { %6293 = vmatpush3.msra.mxu0 %v3518_v56  ;;  %6328 = vmatpush3.msra.mxu1 %v3550_v57  ;;  %v3542_v12 = vld [vmem:[#allocation9 + $0x330] sm:$0xff]  ;;  %v3557_v20 = vld [vmem:[#allocation9 + $0x3a8] sm:$0xff] }
 0x273   :  { %6294 = vmatprep.subr.mxu0 %v3533_v28  ;;  %6329 = vmatprep.subr.mxu1 %v3565_v60  ;;  %v3509_v56 = vld [vmem:[#allocation9 + $0x228] sm:$0xff]  ;;  %v3524_v28 = vld [vmem:[#allocation9 + $0x2a0] sm:$0xff] }
 0x274   :  { %6295 = vmatpush3.msra.mxu0 %v3517_v13  ;;  %6330 = vmatpush3.msra.mxu1 %v3549_v30  ;;  %v3541_v57 = vld [vmem:[#allocation9 + $0x328] sm:$0xff]  ;;  %v3556_v60 = vld [vmem:[#allocation9 + $0x3a0] sm:$0xff] }
 0x275   :  { %6296 = vmatprep.subr.mxu0 %v3532_v17  ;;  %6331 = vmatprep.subr.mxu1 %v3564_v24  ;;  %v3508_v13 = vld [vmem:[#allocation9 + $0x220] sm:$0xff]  ;;  %v3523_v17 = vld [vmem:[#allocation9 + $0x298] sm:$0xff] }
 0x276   :  { %6297 = vmatpush3.msra.mxu0 %v3516_v29  ;;  %6332 = vmatpush3.msra.mxu1 %v3548_v19  ;;  %v3540_v30 = vld [vmem:[#allocation9 + $0x320] sm:$0xff]  ;;  %v3555_v24 = vld [vmem:[#allocation9 + $0x398] sm:$0xff] }
 0x277   :  { %6298 = vmatprep.subr.mxu0 %v3531_v44  ;;  %6333 = vmatprep.subr.mxu1 %v3563_v21  ;;  %v3507_v29 = vld [vmem:[#allocation9 + $0x218] sm:$0xff]  ;;  %v3522_v44 = vld [vmem:[#allocation9 + $0x290] sm:$0xff] }
 0x278   :  { %6299 = vmatpush3.msra.mxu0 %v3515_v27  ;;  %6334 = vmatpush3.msra.mxu1 %v3547_v31  ;;  %v3539_v19 = vld [vmem:[#allocation9 + $0x318] sm:$0xff]  ;;  %v3554_v21 = vld [vmem:[#allocation9 + $0x390] sm:$0xff] }
 0x279   :  { %6300 = vmatprep.subr.mxu0 %v3530_v39  ;;  %6335 = vmatprep.subr.mxu1 %v3562_v42  ;;  %v3506_v27 = vld [vmem:[#allocation9 + $0x210] sm:$0xff]  ;;  %v3521_v39 = vld [vmem:[#allocation9 + $0x288] sm:$0xff] }
 0x27a   :  { %6301 = vmatpush3.msra.mxu0 %v3514_v43  ;;  %6336 = vmatpush3.msra.mxu1 %v3546_v48  ;;  %v3538_v31 = vld [vmem:[#allocation9 + $0x310] sm:$0xff]  ;;  %v3553_v42 = vld [vmem:[#allocation9 + $0x388] sm:$0xff] }
 0x27b   :  { %6302 = vmatprep.subr.mxu0 %v3529_v62  ;;  %6337 = vmatprep.subr.mxu1 %v3561_v45  ;;  %v3505_v43 = vld [vmem:[#allocation9 + $0x208] sm:$0xff]  ;;  %v3520_v62 = vld [vmem:[#allocation9 + $0x280] sm:$0xff] }
 0x27c   :  { %6303 = vmatpush3.msra.mxu0 %v3513_v47  ;;  %6338 = vmatpush3.msra.mxu1 %v3545_v51  ;;  %v3537_v48 = vld [vmem:[#allocation9 + $0x308] sm:$0xff]  ;;  %v3552_v45 = vld [vmem:[#allocation9 + $0x380] sm:$0xff] }
 0x27d   :  { %6304 = vmatprep.subr.mxu0 %v3528_v52  ;;  %6339 = vmatprep.subr.mxu1 %v3560_v46  ;;  %v3504_v47 = vld [vmem:[#allocation9 + $0x200] sm:$0xff]  ;;  %v3599_v52 = vld [vmem:[#allocation9 + $0x4f8] sm:$0xff] }
 0x27e   :  { %6305 = vmatpush3.msra.mxu0 %v3512_v50  ;;  %6340 = vmatpush3.msra.mxu1 %v3544_v5  ;;  %v3536_v51 = vld [vmem:[#allocation9 + $0x300] sm:$0xff]  ;;  %v3631_v46 = vld [vmem:[#allocation9 + $0x5f8] sm:$0xff] }
 0x27f   :  { %6306 = vmatprep.subr.mxu0 %v3527_v49  ;;  %6341 = vmatprep.subr.mxu1 %v3559_v18  ;;  %v3583_v50 = vld [vmem:[#allocation9 + $0x478] sm:$0xff]  ;;  %v3598_v49 = vld [vmem:[#allocation9 + $0x4f0] sm:$0xff] }
 0x280   :  { %6307 = vmatpush3.msra.mxu0 %v3511_v59  ;;  %6342 = vmatpush3.msra.mxu1 %v3543_v55  ;;  %v3615_v5 = vld [vmem:[#allocation9 + $0x578] sm:$0xff]  ;;  %v3630_v18 = vld [vmem:[#allocation9 + $0x5f0] sm:$0xff] }
 0x281   :  { %6308 = vmatprep.subr.mxu0 %v3526_v54  ;;  %6343 = vmatprep.subr.mxu1 %v3558_v4  ;;  %v3582_v59 = vld [vmem:[#allocation9 + $0x470] sm:$0xff]  ;;  %v3597_v54 = vld [vmem:[#allocation9 + $0x4e8] sm:$0xff] }
 0x282   :  { %6309 = vmatpush3.msra.mxu0 %v3510_v53  ;;  %6344 = vmatpush3.msra.mxu1 %v3542_v12  ;;  %v3614_v55 = vld [vmem:[#allocation9 + $0x570] sm:$0xff]  ;;  %v3581_v4 = vld [vmem:[#allocation9 + $0x468] sm:$0xff]  ;;  %v3596_v53 = vld [vmem:[#allocation9 + $0x4e0] sm:$0xff] }
 0x283   :  { %6310 = vmatprep.subr.mxu0 %v3525_v58  ;;  %6345 = vmatprep.subr.mxu1 %v3557_v20  ;;  %v3580_v12 = vld [vmem:[#allocation9 + $0x460] sm:$0xff]  ;;  %v3627_v20 = vld [vmem:[#allocation9 + $0x5d8] sm:$0xff] }
 0x284   :  { %6311 = vmatpush3.msra.mxu0 %v3509_v56  ;;  %6346 = vmatpush3.msra.mxu1 %v3541_v57  ;;  %v3612_v58 = vld [vmem:[#allocation9 + $0x560] sm:$0xff]  ;;  %v3579_v56 = vld [vmem:[#allocation9 + $0x458] sm:$0xff] }
 0x285   :  { %6312 = vmatprep.subr.mxu0 %v3524_v28  ;;  %6347 = vmatprep.subr.mxu1 %v3556_v60  ;;  %v3611_v57 = vld [vmem:[#allocation9 + $0x558] sm:$0xff]  ;;  %v3594_v28 = vld [vmem:[#allocation9 + $0x4d0] sm:$0xff] }
 0x286   :  { %6313 = vmatpush3.msra.mxu0 %v3508_v13  ;;  %6348 = vmatpush3.msra.mxu1 %v3540_v30  ;;  %v3626_v60 = vld [vmem:[#allocation9 + $0x5d0] sm:$0xff] }
 0x287   :  { %6314 = vmatprep.subr.mxu0 %v3523_v17  ;;  %6349 = vmatprep.subr.mxu1 %v3555_v24  ;;  %v3578_v13 = vld [vmem:[#allocation9 + $0x450] sm:$0xff]  ;;  %v3593_v17 = vld [vmem:[#allocation9 + $0x4c8] sm:$0xff] }
 0x288   :  { %6315 = vmatpush3.msra.mxu0 %v3507_v29  ;;  %6350 = vmatpush3.msra.mxu1 %v3539_v19  ;;  %v3610_v30 = vld [vmem:[#allocation9 + $0x550] sm:$0xff]  ;;  %v3625_v24 = vld [vmem:[#allocation9 + $0x5c8] sm:$0xff] }
 0x289   :  { %6316 = vmatprep.subr.mxu0 %v3522_v44  ;;  %6351 = vmatprep.subr.mxu1 %v3554_v21  ;;  %v3577_v29 = vld [vmem:[#allocation9 + $0x448] sm:$0xff]  ;;  %v3592_v44 = vld [vmem:[#allocation9 + $0x4c0] sm:$0xff] }
 0x28a   :  { %6317 = vmatpush3.msra.mxu0 %v3506_v27  ;;  %6352 = vmatpush3.msra.mxu1 %v3538_v31  ;;  %v3609_v19 = vld [vmem:[#allocation9 + $0x548] sm:$0xff]  ;;  %v3624_v21 = vld [vmem:[#allocation9 + $0x5c0] sm:$0xff] }
 0x28b   :  { %6318 = vmatprep.subr.mxu0 %v3521_v39  ;;  %6353 = vmatprep.subr.mxu1 %v3553_v42  ;;  %v3576_v27 = vld [vmem:[#allocation9 + $0x440] sm:$0xff]  ;;  %v3591_v39 = vld [vmem:[#allocation9 + $0x4b8] sm:$0xff] }
 0x28c   :  { %6319 = vmatpush3.msra.mxu0 %v3505_v43  ;;  %6354 = vmatpush3.msra.mxu1 %v3537_v48  ;;  %v3608_v31 = vld [vmem:[#allocation9 + $0x540] sm:$0xff]  ;;  %v3623_v42 = vld [vmem:[#allocation9 + $0x5b8] sm:$0xff] }
 0x28d   :  { %6320 = vmatprep.subr.mxu0 %v3520_v62  ;;  %6355 = vmatprep.subr.mxu1 %v3552_v45  ;;  %v3575_v43 = vld [vmem:[#allocation9 + $0x438] sm:$0xff]  ;;  %v3590_v62 = vld [vmem:[#allocation9 + $0x4b0] sm:$0xff] }
 0x28e   :  { %6321 = vmatpush3.msra.mxu0 %v3504_v47  ;;  %4156 = vmatprep.mubr.f32.mxu0 %v7476_v34  ;;  %v3629_v34 = vld [vmem:[#allocation9 + $0x5e8] sm:$0xff]  ;;  %v3607_v48 = vld [vmem:[#allocation9 + $0x538] sm:$0xff]  ;;  %v3622_v45 = vld [vmem:[#allocation9 + $0x5b0] sm:$0xff] }
 0x28f   :  { %6356 = vmatpush3.msra.mxu1 %v3536_v51  ;;  %4157 = vmatmul.mubr.f32.vlgmr.msra.gmra.mxu0 %v7474_v33  ;;  %v3613_v33 = vld [vmem:[#allocation9 + $0x568] sm:$0xff]  ;;  %v3574_v47 = vld [vmem:[#allocation9 + $0x430] sm:$0xff] }
 0x290   :  { %4226 = vmatprep.mubr.f32.mxu1 %v7480_v37  ;;  %6360 = vmatprep.subr.mxu0 %v3599_v52  ;;  %v3628_v37 = vld [vmem:[#allocation9 + $0x5e0] sm:$0xff]  ;;  %v3606_v51 = vld [vmem:[#allocation9 + $0x530] sm:$0xff]  ;;  %v3589_v52 = vld [vmem:[#allocation9 + $0x4a8] sm:$0xff] }
 0x291   :  { %6395 = vmatprep.subr.mxu1 %v3631_v46  ;;  %4227 = vmatmul.mubr.f32.vlgmr.msra.gmra.mxu1 %v7478_v35  ;;  %v3595_v35 = vld [vmem:[#allocation9 + $0x4d8] sm:$0xff]  ;;  %v3621_v46 = vld [vmem:[#allocation9 + $0x5a8] sm:$0xff] }
 0x292   :  { %6361 = vmatpush3.msra.mxu0 %v3583_v50  ;;  %6396 = vmatpush3.msra.mxu1 %v3615_v5  ;;  %v3573_v50 = vld [vmem:[#allocation9 + $0x428] sm:$0xff] }
 0x293   :  { %6362 = vmatprep.subr.mxu0 %v3598_v49  ;;  %6397 = vmatprep.subr.mxu1 %v3630_v18  ;;  %v3605_v5 = vld [vmem:[#allocation9 + $0x528] sm:$0xff]  ;;  %v3588_v49 = vld [vmem:[#allocation9 + $0x4a0] sm:$0xff] }
 0x294   :  { %6363 = vmatpush3.msra.mxu0 %v3582_v59  ;;  %6398 = vmatpush3.msra.mxu1 %v3614_v55  ;;  %v3620_v18 = vld [vmem:[#allocation9 + $0x5a0] sm:$0xff] }
 0x295   :  { %6364 = vmatprep.subr.mxu0 %v3597_v54  ;;  %6399 = vmatprep.subr.mxu1 %v3629_v34  ;;  %v3572_v59 = vld [vmem:[#allocation9 + $0x420] sm:$0xff]  ;;  %v3587_v54 = vld [vmem:[#allocation9 + $0x498] sm:$0xff] }
 0x296   :  { %6365 = vmatpush3.msra.mxu0 %v3581_v4  ;;  %6400 = vmatpush3.msra.mxu1 %v3613_v33  ;;  %v3604_v55 = vld [vmem:[#allocation9 + $0x520] sm:$0xff]  ;;  %v3619_v34 = vld [vmem:[#allocation9 + $0x598] sm:$0xff] }
 0x297   :  { %6366 = vmatprep.subr.mxu0 %v3596_v53  ;;  %6401 = vmatprep.subr.mxu1 %v3628_v37  ;;  %v3571_v4 = vld [vmem:[#allocation9 + $0x418] sm:$0xff]  ;;  %v3586_v53 = vld [vmem:[#allocation9 + $0x490] sm:$0xff] }
 0x298   :  { %6367 = vmatpush3.msra.mxu0 %v3580_v12  ;;  %6402 = vmatpush3.msra.mxu1 %v3612_v58  ;;  %v3603_v33 = vld [vmem:[#allocation9 + $0x518] sm:$0xff]  ;;  %v3618_v37 = vld [vmem:[#allocation9 + $0x590] sm:$0xff] }
 0x299   :  { %6368 = vmatprep.subr.mxu0 %v3595_v35  ;;  %6403 = vmatprep.subr.mxu1 %v3627_v20  ;;  %v3570_v12 = vld [vmem:[#allocation9 + $0x410] sm:$0xff]  ;;  %v3585_v35 = vld [vmem:[#allocation9 + $0x488] sm:$0xff] }
 0x29a   :  { %6369 = vmatpush3.msra.mxu0 %v3579_v56  ;;  %6404 = vmatpush3.msra.mxu1 %v3611_v57  ;;  %v3602_v58 = vld [vmem:[#allocation9 + $0x510] sm:$0xff]  ;;  %v3617_v20 = vld [vmem:[#allocation9 + $0x588] sm:$0xff] }
 0x29b   :  { %6370 = vmatprep.subr.mxu0 %v3594_v28  ;;  %6405 = vmatprep.subr.mxu1 %v3626_v60  ;;  %v3569_v56 = vld [vmem:[#allocation9 + $0x408] sm:$0xff]  ;;  %v3584_v28 = vld [vmem:[#allocation9 + $0x480] sm:$0xff] }
 0x29c   :  { %6371 = vmatpush3.msra.mxu0 %v3578_v13  ;;  %6406 = vmatpush3.msra.mxu1 %v3610_v30  ;;  %v3601_v57 = vld [vmem:[#allocation9 + $0x508] sm:$0xff]  ;;  %v3616_v60 = vld [vmem:[#allocation9 + $0x580] sm:$0xff] }
 0x29d   :  { %6372 = vmatprep.subr.mxu0 %v3593_v17  ;;  %6407 = vmatprep.subr.mxu1 %v3625_v24  ;;  %v3568_v13 = vld [vmem:[#allocation9 + $0x400] sm:$0xff]  ;;  %v3663_v17 = vld [vmem:[#allocation9 + $0x6f8] sm:$0xff] }
 0x29e   :  { %6373 = vmatpush3.msra.mxu0 %v3577_v29  ;;  %6408 = vmatpush3.msra.mxu1 %v3609_v19  ;;  %v3600_v30 = vld [vmem:[#allocation9 + $0x500] sm:$0xff]  ;;  %v3695_v24 = vld [vmem:[#allocation9 + $0x7f8] sm:$0xff] }
 0x29f   :  { %6374 = vmatprep.subr.mxu0 %v3592_v44  ;;  %6409 = vmatprep.subr.mxu1 %v3624_v21  ;;  %v3647_v29 = vld [vmem:[#allocation9 + $0x678] sm:$0xff]  ;;  %v3662_v44 = vld [vmem:[#allocation9 + $0x6f0] sm:$0xff] }
 0x2a0   :  { %6375 = vmatpush3.msra.mxu0 %v3576_v27  ;;  %6410 = vmatpush3.msra.mxu1 %v3608_v31  ;;  %v3679_v19 = vld [vmem:[#allocation9 + $0x778] sm:$0xff]  ;;  %v3694_v21 = vld [vmem:[#allocation9 + $0x7f0] sm:$0xff] }
 0x2a1   :  { %6376 = vmatprep.subr.mxu0 %v3591_v39  ;;  %6411 = vmatprep.subr.mxu1 %v3623_v42  ;;  %v3646_v27 = vld [vmem:[#allocation9 + $0x670] sm:$0xff]  ;;  %v3661_v39 = vld [vmem:[#allocation9 + $0x6e8] sm:$0xff] }
 0x2a2   :  { %6377 = vmatpush3.msra.mxu0 %v3575_v43  ;;  %6412 = vmatpush3.msra.mxu1 %v3607_v48  ;;  %v3678_v31 = vld [vmem:[#allocation9 + $0x770] sm:$0xff]  ;;  %v3645_v42 = vld [vmem:[#allocation9 + $0x668] sm:$0xff]  ;;  %v3660_v43 = vld [vmem:[#allocation9 + $0x6e0] sm:$0xff] }
 0x2a3   :  { %6378 = vmatprep.subr.mxu0 %v3590_v62  ;;  %6413 = vmatprep.subr.mxu1 %v3622_v45  ;;  %v3644_v48 = vld [vmem:[#allocation9 + $0x660] sm:$0xff]  ;;  %v3691_v45 = vld [vmem:[#allocation9 + $0x7d8] sm:$0xff] }
 0x2a4   :  { %6379 = vmatpush3.msra.mxu0 %v3574_v47  ;;  %6414 = vmatpush3.msra.mxu1 %v3606_v51  ;;  %v3676_v62 = vld [vmem:[#allocation9 + $0x760] sm:$0xff]  ;;  %v3643_v47 = vld [vmem:[#allocation9 + $0x658] sm:$0xff] }
 0x2a5   :  { %6380 = vmatprep.subr.mxu0 %v3589_v52  ;;  %6415 = vmatprep.subr.mxu1 %v3621_v46  ;;  %v3675_v51 = vld [vmem:[#allocation9 + $0x758] sm:$0xff]  ;;  %v3658_v52 = vld [vmem:[#allocation9 + $0x6d0] sm:$0xff] }
 0x2a6   :  { %6381 = vmatpush3.msra.mxu0 %v3573_v50  ;;  %6416 = vmatpush3.msra.mxu1 %v3605_v5  ;;  %v3690_v46 = vld [vmem:[#allocation9 + $0x7d0] sm:$0xff] }
 0x2a7   :  { %6382 = vmatprep.subr.mxu0 %v3588_v49  ;;  %6417 = vmatprep.subr.mxu1 %v3620_v18  ;;  %v3642_v50 = vld [vmem:[#allocation9 + $0x650] sm:$0xff]  ;;  %v3657_v49 = vld [vmem:[#allocation9 + $0x6c8] sm:$0xff] }
 0x2a8   :  { %6383 = vmatpush3.msra.mxu0 %v3572_v59  ;;  %6418 = vmatpush3.msra.mxu1 %v3604_v55  ;;  %v3674_v5 = vld [vmem:[#allocation9 + $0x750] sm:$0xff]  ;;  %v3689_v18 = vld [vmem:[#allocation9 + $0x7c8] sm:$0xff] }
 0x2a9   :  { %6384 = vmatprep.subr.mxu0 %v3587_v54  ;;  %6419 = vmatprep.subr.mxu1 %v3619_v34  ;;  %v3641_v59 = vld [vmem:[#allocation9 + $0x648] sm:$0xff]  ;;  %v3656_v54 = vld [vmem:[#allocation9 + $0x6c0] sm:$0xff] }
 0x2aa   :  { %6385 = vmatpush3.msra.mxu0 %v3571_v4  ;;  %6420 = vmatpush3.msra.mxu1 %v3603_v33  ;;  %v3673_v55 = vld [vmem:[#allocation9 + $0x748] sm:$0xff]  ;;  %v3688_v34 = vld [vmem:[#allocation9 + $0x7c0] sm:$0xff] }
 0x2ab   :  { %6386 = vmatprep.subr.mxu0 %v3586_v53  ;;  %6421 = vmatprep.subr.mxu1 %v3618_v37  ;;  %v3640_v4 = vld [vmem:[#allocation9 + $0x640] sm:$0xff]  ;;  %v3655_v53 = vld [vmem:[#allocation9 + $0x6b8] sm:$0xff] }
 0x2ac   :  { %6387 = vmatpush3.msra.mxu0 %v3570_v12  ;;  %6422 = vmatpush3.msra.mxu1 %v3602_v58  ;;  %v3672_v33 = vld [vmem:[#allocation9 + $0x740] sm:$0xff]  ;;  %v3687_v37 = vld [vmem:[#allocation9 + $0x7b8] sm:$0xff] }
 0x2ad   :  { %6388 = vmatprep.subr.mxu0 %v3585_v35  ;;  %6423 = vmatprep.subr.mxu1 %v3617_v20  ;;  %v3639_v12 = vld [vmem:[#allocation9 + $0x638] sm:$0xff]  ;;  %v3654_v35 = vld [vmem:[#allocation9 + $0x6b0] sm:$0xff] }
 0x2ae   :  { %6389 = vmatpush3.msra.mxu0 %v3569_v56  ;;  %6424 = vmatpush3.msra.mxu1 %v3601_v57  ;;  %v3671_v58 = vld [vmem:[#allocation9 + $0x738] sm:$0xff]  ;;  %v3686_v20 = vld [vmem:[#allocation9 + $0x7b0] sm:$0xff] }
 0x2af   :  { %6390 = vmatprep.subr.mxu0 %v3584_v28  ;;  %6425 = vmatprep.subr.mxu1 %v3616_v60  ;;  %v3638_v56 = vld [vmem:[#allocation9 + $0x630] sm:$0xff]  ;;  %v3653_v28 = vld [vmem:[#allocation9 + $0x6a8] sm:$0xff] }
 0x2b0   :  { %6391 = vmatpush3.msra.mxu0 %v3568_v13  ;;  %4296 = vmatprep.mubr.f32.mxu0 %v7535_v1  ;;  %v3693_v1 = vld [vmem:[#allocation9 + $0x7e8] sm:$0xff]  ;;  %v3670_v57 = vld [vmem:[#allocation9 + $0x730] sm:$0xff] }
 0x2b1   :  { %6426 = vmatpush3.msra.mxu1 %v3600_v30  ;;  %4297 = vmatmul.mubr.f32.vlgmr.msra.gmra.mxu0 %v7533_v63  ;;  %v3677_v63 = vld [vmem:[#allocation9 + $0x768] sm:$0xff] }
 0x2b2   :  { %4366 = vmatprep.mubr.f32.mxu1 %v7539_v3  ;;  %6430 = vmatprep.subr.mxu0 %v3663_v17  ;;  %v3692_v3 = vld [vmem:[#allocation9 + $0x7e0] sm:$0xff]  ;;  %v3685_v60 = vld [vmem:[#allocation9 + $0x7a8] sm:$0xff] }
 0x2b3   :  { %6465 = vmatprep.subr.mxu1 %v3695_v24  ;;  %4367 = vmatmul.mubr.f32.vlgmr.msra.gmra.mxu1 %v7537_v2  ;;  %v3659_v2 = vld [vmem:[#allocation9 + $0x6d8] sm:$0xff]  ;;  %v3637_v13 = vld [vmem:[#allocation9 + $0x628] sm:$0xff]  ;;  %v3652_v17 = vld [vmem:[#allocation9 + $0x6a0] sm:$0xff] }
 0x2b4   :  { %6431 = vmatpush3.msra.mxu0 %v3647_v29  ;;  %6466 = vmatpush3.msra.mxu1 %v3679_v19  ;;  %v3669_v30 = vld [vmem:[#allocation9 + $0x728] sm:$0xff]  ;;  %v3684_v24 = vld [vmem:[#allocation9 + $0x7a0] sm:$0xff] }
 0x2b5   :  { %6432 = vmatprep.subr.mxu0 %v3662_v44  ;;  %6467 = vmatprep.subr.mxu1 %v3694_v21  ;;  %v3636_v29 = vld [vmem:[#allocation9 + $0x620] sm:$0xff]  ;;  %v3651_v44 = vld [vmem:[#allocation9 + $0x698] sm:$0xff] }
 0x2b6   :  { %6433 = vmatpush3.msra.mxu0 %v3646_v27  ;;  %6468 = vmatpush3.msra.mxu1 %v3678_v31  ;;  %v3668_v19 = vld [vmem:[#allocation9 + $0x720] sm:$0xff]  ;;  %v3683_v21 = vld [vmem:[#allocation9 + $0x798] sm:$0xff] }
 0x2b7   :  { %6434 = vmatprep.subr.mxu0 %v3661_v39  ;;  %6469 = vmatprep.subr.mxu1 %v3693_v1  ;;  %v3635_v27 = vld [vmem:[#allocation9 + $0x618] sm:$0xff]  ;;  %v3650_v39 = vld [vmem:[#allocation9 + $0x690] sm:$0xff] }
 0x2b8   :  { %6435 = vmatpush3.msra.mxu0 %v3645_v42  ;;  %6470 = vmatpush3.msra.mxu1 %v3677_v63  ;;  %v3667_v31 = vld [vmem:[#allocation9 + $0x718] sm:$0xff]  ;;  %v3682_v1 = vld [vmem:[#allocation9 + $0x790] sm:$0xff] }
 0x2b9   :  { %6436 = vmatprep.subr.mxu0 %v3660_v43  ;;  %6471 = vmatprep.subr.mxu1 %v3692_v3  ;;  %v3634_v42 = vld [vmem:[#allocation9 + $0x610] sm:$0xff]  ;;  %v3649_v43 = vld [vmem:[#allocation9 + $0x688] sm:$0xff] }
 0x2ba   :  { %6437 = vmatpush3.msra.mxu0 %v3644_v48  ;;  %6472 = vmatpush3.msra.mxu1 %v3676_v62  ;;  %v3666_v63 = vld [vmem:[#allocation9 + $0x710] sm:$0xff]  ;;  %v3681_v3 = vld [vmem:[#allocation9 + $0x788] sm:$0xff] }
 0x2bb   :  { %6438 = vmatprep.subr.mxu0 %v3659_v2  ;;  %6473 = vmatprep.subr.mxu1 %v3691_v45  ;;  %v3633_v48 = vld [vmem:[#allocation9 + $0x608] sm:$0xff]  ;;  %v3648_v2 = vld [vmem:[#allocation9 + $0x680] sm:$0xff] }
 0x2bc   :  { %6439 = vmatpush3.msra.mxu0 %v3643_v47  ;;  %6474 = vmatpush3.msra.mxu1 %v3675_v51  ;;  %v3665_v62 = vld [vmem:[#allocation9 + $0x708] sm:$0xff]  ;;  %v3680_v45 = vld [vmem:[#allocation9 + $0x780] sm:$0xff] }
 0x2bd   :  { %6440 = vmatprep.subr.mxu0 %v3658_v52  ;;  %6475 = vmatprep.subr.mxu1 %v3690_v46  ;;  %v3632_v47 = vld [vmem:[#allocation9 + $0x600] sm:$0xff]  ;;  %v3727_v52 = vld [vmem:[#allocation9 + $0x8f8] sm:$0xff] }
 0x2be   :  { %6441 = vmatpush3.msra.mxu0 %v3642_v50  ;;  %6476 = vmatpush3.msra.mxu1 %v3674_v5  ;;  %v3664_v51 = vld [vmem:[#allocation9 + $0x700] sm:$0xff]  ;;  %v3759_v46 = vld [vmem:[#allocation9 + $0x9f8] sm:$0xff] }
 0x2bf   :  { %6442 = vmatprep.subr.mxu0 %v3657_v49  ;;  %6477 = vmatprep.subr.mxu1 %v3689_v18  ;;  %v3711_v50 = vld [vmem:[#allocation9 + $0x878] sm:$0xff]  ;;  %v3726_v49 = vld [vmem:[#allocation9 + $0x8f0] sm:$0xff] }
 0x2c0   :  { %6443 = vmatpush3.msra.mxu0 %v3641_v59  ;;  %6478 = vmatpush3.msra.mxu1 %v3673_v55  ;;  %v3743_v5 = vld [vmem:[#allocation9 + $0x978] sm:$0xff]  ;;  %v3758_v18 = vld [vmem:[#allocation9 + $0x9f0] sm:$0xff] }
 0x2c1   :  { %6444 = vmatprep.subr.mxu0 %v3656_v54  ;;  %6479 = vmatprep.subr.mxu1 %v3688_v34  ;;  %v3710_v59 = vld [vmem:[#allocation9 + $0x870] sm:$0xff]  ;;  %v3725_v54 = vld [vmem:[#allocation9 + $0x8e8] sm:$0xff] }
 0x2c2   :  { %6445 = vmatpush3.msra.mxu0 %v3640_v4  ;;  %6480 = vmatpush3.msra.mxu1 %v3672_v33  ;;  %v3742_v55 = vld [vmem:[#allocation9 + $0x970] sm:$0xff]  ;;  %v3709_v34 = vld [vmem:[#allocation9 + $0x868] sm:$0xff]  ;;  %v3724_v4 = vld [vmem:[#allocation9 + $0x8e0] sm:$0xff] }
 0x2c3   :  { %6446 = vmatprep.subr.mxu0 %v3655_v53  ;;  %6481 = vmatprep.subr.mxu1 %v3687_v37  ;;  %v3708_v33 = vld [vmem:[#allocation9 + $0x860] sm:$0xff]  ;;  %v3755_v37 = vld [vmem:[#allocation9 + $0x9d8] sm:$0xff] }
 0x2c4   :  { %6447 = vmatpush3.msra.mxu0 %v3639_v12  ;;  %6482 = vmatpush3.msra.mxu1 %v3671_v58  ;;  %v3740_v53 = vld [vmem:[#allocation9 + $0x960] sm:$0xff]  ;;  %v3707_v12 = vld [vmem:[#allocation9 + $0x858] sm:$0xff] }
 0x2c5   :  { %6448 = vmatprep.subr.mxu0 %v3654_v35  ;;  %6483 = vmatprep.subr.mxu1 %v3686_v20  ;;  %v3739_v58 = vld [vmem:[#allocation9 + $0x958] sm:$0xff]  ;;  %v3722_v35 = vld [vmem:[#allocation9 + $0x8d0] sm:$0xff] }
 0x2c6   :  { %6449 = vmatpush3.msra.mxu0 %v3638_v56  ;;  %6484 = vmatpush3.msra.mxu1 %v3670_v57  ;;  %v3754_v20 = vld [vmem:[#allocation9 + $0x9d0] sm:$0xff] }
 0x2c7   :  { %6450 = vmatprep.subr.mxu0 %v3653_v28  ;;  %6485 = vmatprep.subr.mxu1 %v3685_v60  ;;  %v3706_v56 = vld [vmem:[#allocation9 + $0x850] sm:$0xff]  ;;  %v3721_v28 = vld [vmem:[#allocation9 + $0x8c8] sm:$0xff] }
 0x2c8   :  { %6451 = vmatpush3.msra.mxu0 %v3637_v13  ;;  %6486 = vmatpush3.msra.mxu1 %v3669_v30  ;;  %v3738_v57 = vld [vmem:[#allocation9 + $0x950] sm:$0xff]  ;;  %v3753_v60 = vld [vmem:[#allocation9 + $0x9c8] sm:$0xff] }
 0x2c9   :  { %6452 = vmatprep.subr.mxu0 %v3652_v17  ;;  %6487 = vmatprep.subr.mxu1 %v3684_v24  ;;  %v3705_v13 = vld [vmem:[#allocation9 + $0x848] sm:$0xff]  ;;  %v3720_v17 = vld [vmem:[#allocation9 + $0x8c0] sm:$0xff] }
 0x2ca   :  { %6453 = vmatpush3.msra.mxu0 %v3636_v29  ;;  %6488 = vmatpush3.msra.mxu1 %v3668_v19  ;;  %v3737_v30 = vld [vmem:[#allocation9 + $0x948] sm:$0xff]  ;;  %v3752_v24 = vld [vmem:[#allocation9 + $0x9c0] sm:$0xff] }
 0x2cb   :  { %6454 = vmatprep.subr.mxu0 %v3651_v44  ;;  %6489 = vmatprep.subr.mxu1 %v3683_v21  ;;  %v3704_v29 = vld [vmem:[#allocation9 + $0x840] sm:$0xff]  ;;  %v3719_v44 = vld [vmem:[#allocation9 + $0x8b8] sm:$0xff] }
 0x2cc   :  { %6455 = vmatpush3.msra.mxu0 %v3635_v27  ;;  %6490 = vmatpush3.msra.mxu1 %v3667_v31  ;;  %v3736_v19 = vld [vmem:[#allocation9 + $0x940] sm:$0xff]  ;;  %v3751_v21 = vld [vmem:[#allocation9 + $0x9b8] sm:$0xff] }
 0x2cd   :  { %6456 = vmatprep.subr.mxu0 %v3650_v39  ;;  %6491 = vmatprep.subr.mxu1 %v3682_v1  ;;  %v3703_v27 = vld [vmem:[#allocation9 + $0x838] sm:$0xff]  ;;  %v3718_v39 = vld [vmem:[#allocation9 + $0x8b0] sm:$0xff] }
 0x2ce   :  { %6457 = vmatpush3.msra.mxu0 %v3634_v42  ;;  %6492 = vmatpush3.msra.mxu1 %v3666_v63  ;;  %v3735_v31 = vld [vmem:[#allocation9 + $0x938] sm:$0xff]  ;;  %v3750_v1 = vld [vmem:[#allocation9 + $0x9b0] sm:$0xff] }
 0x2cf   :  { %6458 = vmatprep.subr.mxu0 %v3649_v43  ;;  %6493 = vmatprep.subr.mxu1 %v3681_v3  ;;  %v3702_v42 = vld [vmem:[#allocation9 + $0x830] sm:$0xff]  ;;  %v3717_v43 = vld [vmem:[#allocation9 + $0x8a8] sm:$0xff] }
 0x2d0   :  { %6459 = vmatpush3.msra.mxu0 %v3633_v48  ;;  %6494 = vmatpush3.msra.mxu1 %v3665_v62  ;;  %v3734_v63 = vld [vmem:[#allocation9 + $0x930] sm:$0xff]  ;;  %v3749_v3 = vld [vmem:[#allocation9 + $0x9a8] sm:$0xff] }
 0x2d1   :  { %6460 = vmatprep.subr.mxu0 %v3648_v2  ;;  %6495 = vmatprep.subr.mxu1 %v3680_v45  ;;  %v3701_v48 = vld [vmem:[#allocation9 + $0x828] sm:$0xff]  ;;  %v3716_v2 = vld [vmem:[#allocation9 + $0x8a0] sm:$0xff] }
 0x2d2   :  { %6461 = vmatpush3.msra.mxu0 %v3632_v47  ;;  %4436 = vmatprep.mubr.f32.mxu0 %v7543_v7  ;;  %v3757_v7 = vld [vmem:[#allocation9 + $0x9e8] sm:$0xff]  ;;  %v3748_v45 = vld [vmem:[#allocation9 + $0x9a0] sm:$0xff] }
 0x2d3   :  { %6496 = vmatpush3.msra.mxu1 %v3664_v51  ;;  %4437 = vmatmul.mubr.f32.vlgmr.msra.gmra.mxu0 %v7541_v0  ;;  %v3741_v0 = vld [vmem:[#allocation9 + $0x968] sm:$0xff]  ;;  %v3700_v47 = vld [vmem:[#allocation9 + $0x820] sm:$0xff] }
 0x2d4   :  { %4506 = vmatprep.mubr.f32.mxu1 %v7547_v61  ;;  %6500 = vmatprep.subr.mxu0 %v3727_v52  ;;  %v3756_v61 = vld [vmem:[#allocation9 + $0x9e0] sm:$0xff]  ;;  %v3733_v62 = vld [vmem:[#allocation9 + $0x928] sm:$0xff]  ;;  %v3715_v52 = vld [vmem:[#allocation9 + $0x898] sm:$0xff] }
 0x2d5   :  { %6535 = vmatprep.subr.mxu1 %v3759_v46  ;;  %4507 = vmatmul.mubr.f32.vlgmr.msra.gmra.mxu1 %v7545_v8  ;;  %v3723_v8 = vld [vmem:[#allocation9 + $0x8d8] sm:$0xff]  ;;  %v3732_v51 = vld [vmem:[#allocation9 + $0x920] sm:$0xff] }
 0x2d6   :  { %6501 = vmatpush3.msra.mxu0 %v3711_v50  ;;  %6536 = vmatpush3.msra.mxu1 %v3743_v5  ;;  %v3747_v46 = vld [vmem:[#allocation9 + $0x998] sm:$0xff] }
 0x2d7   :  { %6502 = vmatprep.subr.mxu0 %v3726_v49  ;;  %6537 = vmatprep.subr.mxu1 %v3758_v18  ;;  %v3699_v50 = vld [vmem:[#allocation9 + $0x818] sm:$0xff]  ;;  %v3714_v49 = vld [vmem:[#allocation9 + $0x890] sm:$0xff] }
 0x2d8   :  { %6503 = vmatpush3.msra.mxu0 %v3710_v59  ;;  %6538 = vmatpush3.msra.mxu1 %v3742_v55  ;;  %v3731_v5 = vld [vmem:[#allocation9 + $0x918] sm:$0xff]  ;;  %v3746_v18 = vld [vmem:[#allocation9 + $0x990] sm:$0xff] }
 0x2d9   :  { %6504 = vmatprep.subr.mxu0 %v3725_v54  ;;  %6539 = vmatprep.subr.mxu1 %v3757_v7  ;;  %v3698_v59 = vld [vmem:[#allocation9 + $0x810] sm:$0xff]  ;;  %v3713_v54 = vld [vmem:[#allocation9 + $0x888] sm:$0xff] }
 0x2da   :  { %6505 = vmatpush3.msra.mxu0 %v3709_v34  ;;  %6540 = vmatpush3.msra.mxu1 %v3741_v0  ;;  %v3730_v55 = vld [vmem:[#allocation9 + $0x910] sm:$0xff]  ;;  %v3745_v7 = vld [vmem:[#allocation9 + $0x988] sm:$0xff] }
 0x2db   :  { %6506 = vmatprep.subr.mxu0 %v3724_v4  ;;  %6541 = vmatprep.subr.mxu1 %v3756_v61  ;;  %v3697_v34 = vld [vmem:[#allocation9 + $0x808] sm:$0xff]  ;;  %v3712_v4 = vld [vmem:[#allocation9 + $0x880] sm:$0xff] }
 0x2dc   :  { %6507 = vmatpush3.msra.mxu0 %v3708_v33  ;;  %6542 = vmatpush3.msra.mxu1 %v3740_v53  ;;  %v3729_v0 = vld [vmem:[#allocation9 + $0x908] sm:$0xff]  ;;  %v3744_v61 = vld [vmem:[#allocation9 + $0x980] sm:$0xff] }
 0x2dd   :  { %6508 = vmatprep.subr.mxu0 %v3723_v8  ;;  %6543 = vmatprep.subr.mxu1 %v3755_v37  ;;  %v3696_v33 = vld [vmem:[#allocation9 + $0x800] sm:$0xff]  ;;  %v3791_v8 = vld [vmem:[#allocation9 + $0xaf8] sm:$0xff] }
 0x2de   :  { %6509 = vmatpush3.msra.mxu0 %v3707_v12  ;;  %6544 = vmatpush3.msra.mxu1 %v3739_v58  ;;  %v3728_v53 = vld [vmem:[#allocation9 + $0x900] sm:$0xff]  ;;  %v3823_v37 = vld [vmem:[#allocation9 + $0xbf8] sm:$0xff] }
 0x2df   :  { %6510 = vmatprep.subr.mxu0 %v3722_v35  ;;  %6545 = vmatprep.subr.mxu1 %v3754_v20  ;;  %v3775_v12 = vld [vmem:[#allocation9 + $0xa78] sm:$0xff]  ;;  %v3790_v35 = vld [vmem:[#allocation9 + $0xaf0] sm:$0xff] }
 0x2e0   :  { %6511 = vmatpush3.msra.mxu0 %v3706_v56  ;;  %6546 = vmatpush3.msra.mxu1 %v3738_v57  ;;  %v3807_v58 = vld [vmem:[#allocation9 + $0xb78] sm:$0xff]  ;;  %v3822_v20 = vld [vmem:[#allocation9 + $0xbf0] sm:$0xff] }
 0x2e1   :  { %6512 = vmatprep.subr.mxu0 %v3721_v28  ;;  %6547 = vmatprep.subr.mxu1 %v3753_v60  ;;  %v3774_v56 = vld [vmem:[#allocation9 + $0xa70] sm:$0xff]  ;;  %v3789_v28 = vld [vmem:[#allocation9 + $0xae8] sm:$0xff] }
 0x2e2   :  { %6513 = vmatpush3.msra.mxu0 %v3705_v13  ;;  %6548 = vmatpush3.msra.mxu1 %v3737_v30  ;;  %v3806_v57 = vld [vmem:[#allocation9 + $0xb70] sm:$0xff]  ;;  %v3773_v60 = vld [vmem:[#allocation9 + $0xa68] sm:$0xff]  ;;  %v3788_v13 = vld [vmem:[#allocation9 + $0xae0] sm:$0xff] }
 0x2e3   :  { %6514 = vmatprep.subr.mxu0 %v3720_v17  ;;  %6549 = vmatprep.subr.mxu1 %v3752_v24  ;;  %v3772_v30 = vld [vmem:[#allocation9 + $0xa60] sm:$0xff]  ;;  %v3819_v24 = vld [vmem:[#allocation9 + $0xbd8] sm:$0xff] }
 0x2e4   :  { %6515 = vmatpush3.msra.mxu0 %v3704_v29  ;;  %6550 = vmatpush3.msra.mxu1 %v3736_v19  ;;  %v3804_v17 = vld [vmem:[#allocation9 + $0xb60] sm:$0xff]  ;;  %v3771_v29 = vld [vmem:[#allocation9 + $0xa58] sm:$0xff] }
 0x2e5   :  { %6516 = vmatprep.subr.mxu0 %v3719_v44  ;;  %6551 = vmatprep.subr.mxu1 %v3751_v21  ;;  %v3803_v19 = vld [vmem:[#allocation9 + $0xb58] sm:$0xff]  ;;  %v3786_v44 = vld [vmem:[#allocation9 + $0xad0] sm:$0xff] }
 0x2e6   :  { %6517 = vmatpush3.msra.mxu0 %v3703_v27  ;;  %6552 = vmatpush3.msra.mxu1 %v3735_v31  ;;  %v3818_v21 = vld [vmem:[#allocation9 + $0xbd0] sm:$0xff] }
 0x2e7   :  { %6518 = vmatprep.subr.mxu0 %v3718_v39  ;;  %6553 = vmatprep.subr.mxu1 %v3750_v1  ;;  %v3770_v27 = vld [vmem:[#allocation9 + $0xa50] sm:$0xff]  ;;  %v3785_v39 = vld [vmem:[#allocation9 + $0xac8] sm:$0xff] }
 0x2e8   :  { %6519 = vmatpush3.msra.mxu0 %v3702_v42  ;;  %6554 = vmatpush3.msra.mxu1 %v3734_v63  ;;  %v3802_v31 = vld [vmem:[#allocation9 + $0xb50] sm:$0xff]  ;;  %v3817_v1 = vld [vmem:[#allocation9 + $0xbc8] sm:$0xff] }
 0x2e9   :  { %6520 = vmatprep.subr.mxu0 %v3717_v43  ;;  %6555 = vmatprep.subr.mxu1 %v3749_v3  ;;  %v3769_v42 = vld [vmem:[#allocation9 + $0xa48] sm:$0xff]  ;;  %v3784_v43 = vld [vmem:[#allocation9 + $0xac0] sm:$0xff] }
 0x2ea   :  { %6521 = vmatpush3.msra.mxu0 %v3701_v48  ;;  %6556 = vmatpush3.msra.mxu1 %v3733_v62  ;;  %v3801_v63 = vld [vmem:[#allocation9 + $0xb48] sm:$0xff]  ;;  %v3816_v3 = vld [vmem:[#allocation9 + $0xbc0] sm:$0xff] }
 0x2eb   :  { %6522 = vmatprep.subr.mxu0 %v3716_v2  ;;  %6557 = vmatprep.subr.mxu1 %v3748_v45  ;;  %v3768_v48 = vld [vmem:[#allocation9 + $0xa40] sm:$0xff]  ;;  %v3783_v2 = vld [vmem:[#allocation9 + $0xab8] sm:$0xff] }
 0x2ec   :  { %6523 = vmatpush3.msra.mxu0 %v3700_v47  ;;  %6558 = vmatpush3.msra.mxu1 %v3732_v51  ;;  %v3800_v62 = vld [vmem:[#allocation9 + $0xb40] sm:$0xff]  ;;  %v3815_v45 = vld [vmem:[#allocation9 + $0xbb8] sm:$0xff] }
 0x2ed   :  { %6524 = vmatprep.subr.mxu0 %v3715_v52  ;;  %6559 = vmatprep.subr.mxu1 %v3747_v46  ;;  %v3767_v47 = vld [vmem:[#allocation9 + $0xa38] sm:$0xff]  ;;  %v3782_v52 = vld [vmem:[#allocation9 + $0xab0] sm:$0xff] }
 0x2ee   :  { %6525 = vmatpush3.msra.mxu0 %v3699_v50  ;;  %6560 = vmatpush3.msra.mxu1 %v3731_v5  ;;  %v3799_v51 = vld [vmem:[#allocation9 + $0xb38] sm:$0xff]  ;;  %v3814_v46 = vld [vmem:[#allocation9 + $0xbb0] sm:$0xff] }
 0x2ef   :  { %6526 = vmatprep.subr.mxu0 %v3714_v49  ;;  %6561 = vmatprep.subr.mxu1 %v3746_v18  ;;  %v3766_v50 = vld [vmem:[#allocation9 + $0xa30] sm:$0xff]  ;;  %v3781_v49 = vld [vmem:[#allocation9 + $0xaa8] sm:$0xff] }
 0x2f0   :  { %6527 = vmatpush3.msra.mxu0 %v3698_v59  ;;  %6562 = vmatpush3.msra.mxu1 %v3730_v55  ;;  %v3798_v5 = vld [vmem:[#allocation9 + $0xb30] sm:$0xff]  ;;  %v3813_v18 = vld [vmem:[#allocation9 + $0xba8] sm:$0xff] }
 0x2f1   :  { %6528 = vmatprep.subr.mxu0 %v3713_v54  ;;  %6563 = vmatprep.subr.mxu1 %v3745_v7  ;;  %v3765_v59 = vld [vmem:[#allocation9 + $0xa28] sm:$0xff]  ;;  %v3780_v54 = vld [vmem:[#allocation9 + $0xaa0] sm:$0xff] }
 0x2f2   :  { %6529 = vmatpush3.msra.mxu0 %v3697_v34  ;;  %6564 = vmatpush3.msra.mxu1 %v3729_v0  ;;  %v3797_v55 = vld [vmem:[#allocation9 + $0xb28] sm:$0xff]  ;;  %v3812_v7 = vld [vmem:[#allocation9 + $0xba0] sm:$0xff] }
 0x2f3   :  { %6530 = vmatprep.subr.mxu0 %v3712_v4  ;;  %6565 = vmatprep.subr.mxu1 %v3744_v61  ;;  %v3764_v34 = vld [vmem:[#allocation9 + $0xa20] sm:$0xff]  ;;  %v3779_v4 = vld [vmem:[#allocation9 + $0xa98] sm:$0xff] }
 0x2f4   :  { %6531 = vmatpush3.msra.mxu0 %v3696_v33  ;;  %4576 = vmatprep.mubr.f32.mxu0 %v7602_v23  ;;  %v3821_v23 = vld [vmem:[#allocation9 + $0xbe8] sm:$0xff]  ;;  %v3796_v0 = vld [vmem:[#allocation9 + $0xb20] sm:$0xff]  ;;  %v3811_v61 = vld [vmem:[#allocation9 + $0xb98] sm:$0xff] }
 0x2f5   :  { %6566 = vmatpush3.msra.mxu1 %v3728_v53  ;;  %4577 = vmatmul.mubr.f32.vlgmr.msra.gmra.mxu0 %v7600_v22  ;;  %v3805_v22 = vld [vmem:[#allocation9 + $0xb68] sm:$0xff]  ;;  %v3763_v33 = vld [vmem:[#allocation9 + $0xa18] sm:$0xff] }
 0x2f6   :  { %4646 = vmatprep.mubr.f32.mxu1 %v7606_v26  ;;  %6570 = vmatprep.subr.mxu0 %v3791_v8  ;;  %v3820_v26 = vld [vmem:[#allocation9 + $0xbe0] sm:$0xff]  ;;  %v3795_v53 = vld [vmem:[#allocation9 + $0xb18] sm:$0xff]  ;;  %v3778_v8 = vld [vmem:[#allocation9 + $0xa90] sm:$0xff] }
 0x2f7   :  { %6605 = vmatprep.subr.mxu1 %v3823_v37  ;;  %4647 = vmatmul.mubr.f32.vlgmr.msra.gmra.mxu1 %v7604_v25  ;;  %v3787_v25 = vld [vmem:[#allocation9 + $0xad8] sm:$0xff]  ;;  %v3810_v37 = vld [vmem:[#allocation9 + $0xb90] sm:$0xff] }
 0x2f8   :  { %6571 = vmatpush3.msra.mxu0 %v3775_v12  ;;  %6606 = vmatpush3.msra.mxu1 %v3807_v58  ;;  %v3762_v12 = vld [vmem:[#allocation9 + $0xa10] sm:$0xff] }
 0x2f9   :  { %6572 = vmatprep.subr.mxu0 %v3790_v35  ;;  %6607 = vmatprep.subr.mxu1 %v3822_v20  ;;  %v3794_v58 = vld [vmem:[#allocation9 + $0xb10] sm:$0xff]  ;;  %v3777_v35 = vld [vmem:[#allocation9 + $0xa88] sm:$0xff] }
 0x2fa   :  { %6573 = vmatpush3.msra.mxu0 %v3774_v56  ;;  %6608 = vmatpush3.msra.mxu1 %v3806_v57  ;;  %v3809_v20 = vld [vmem:[#allocation9 + $0xb88] sm:$0xff] }
 0x2fb   :  { %6574 = vmatprep.subr.mxu0 %v3789_v28  ;;  %6609 = vmatprep.subr.mxu1 %v3821_v23  ;;  %v3761_v56 = vld [vmem:[#allocation9 + $0xa08] sm:$0xff]  ;;  %v3776_v28 = vld [vmem:[#allocation9 + $0xa80] sm:$0xff] }
 0x2fc   :  { %6575 = vmatpush3.msra.mxu0 %v3773_v60  ;;  %6610 = vmatpush3.msra.mxu1 %v3805_v22  ;;  %v3793_v57 = vld [vmem:[#allocation9 + $0xb08] sm:$0xff]  ;;  %v3808_v23 = vld [vmem:[#allocation9 + $0xb80] sm:$0xff] }
 0x2fd   :  { %6576 = vmatprep.subr.mxu0 %v3788_v13  ;;  %6611 = vmatprep.subr.mxu1 %v3820_v26  ;;  %v3760_v60 = vld [vmem:[#allocation9 + $0xa00] sm:$0xff]  ;;  %v3855_v13 = vld [vmem:[#allocation9 + $0xcf8] sm:$0xff] }
 0x2fe   :  { %6577 = vmatpush3.msra.mxu0 %v3772_v30  ;;  %6612 = vmatpush3.msra.mxu1 %v3804_v17  ;;  %v3792_v22 = vld [vmem:[#allocation9 + $0xb00] sm:$0xff]  ;;  %v3887_v26 = vld [vmem:[#allocation9 + $0xdf8] sm:$0xff] }
 0x2ff   :  { %6578 = vmatprep.subr.mxu0 %v3787_v25  ;;  %6613 = vmatprep.subr.mxu1 %v3819_v24  ;;  %v3839_v30 = vld [vmem:[#allocation9 + $0xc78] sm:$0xff]  ;;  %v3854_v25 = vld [vmem:[#allocation9 + $0xcf0] sm:$0xff] }
 0x300   :  { %6579 = vmatpush3.msra.mxu0 %v3771_v29  ;;  %6614 = vmatpush3.msra.mxu1 %v3803_v19  ;;  %v3871_v17 = vld [vmem:[#allocation9 + $0xd78] sm:$0xff]  ;;  %v3886_v24 = vld [vmem:[#allocation9 + $0xdf0] sm:$0xff] }
 0x301   :  { %6580 = vmatprep.subr.mxu0 %v3786_v44  ;;  %6615 = vmatprep.subr.mxu1 %v3818_v21  ;;  %v3838_v29 = vld [vmem:[#allocation9 + $0xc70] sm:$0xff]  ;;  %v3853_v44 = vld [vmem:[#allocation9 + $0xce8] sm:$0xff] }
 0x302   :  { %6581 = vmatpush3.msra.mxu0 %v3770_v27  ;;  %6616 = vmatpush3.msra.mxu1 %v3802_v31  ;;  %v3870_v19 = vld [vmem:[#allocation9 + $0xd70] sm:$0xff]  ;;  %v3837_v21 = vld [vmem:[#allocation9 + $0xc68] sm:$0xff]  ;;  %v3852_v27 = vld [vmem:[#allocation9 + $0xce0] sm:$0xff] }
 0x303   :  { %6582 = vmatprep.subr.mxu0 %v3785_v39  ;;  %6617 = vmatprep.subr.mxu1 %v3817_v1  ;;  %v3836_v31 = vld [vmem:[#allocation9 + $0xc60] sm:$0xff]  ;;  %v3883_v1 = vld [vmem:[#allocation9 + $0xdd8] sm:$0xff] }
 0x304   :  { %6583 = vmatpush3.msra.mxu0 %v3769_v42  ;;  %6618 = vmatpush3.msra.mxu1 %v3801_v63  ;;  %v3868_v39 = vld [vmem:[#allocation9 + $0xd60] sm:$0xff]  ;;  %v3835_v42 = vld [vmem:[#allocation9 + $0xc58] sm:$0xff] }
 0x305   :  { %6584 = vmatprep.subr.mxu0 %v3784_v43  ;;  %6619 = vmatprep.subr.mxu1 %v3816_v3  ;;  %v3867_v63 = vld [vmem:[#allocation9 + $0xd58] sm:$0xff]  ;;  %v3850_v43 = vld [vmem:[#allocation9 + $0xcd0] sm:$0xff] }
 0x306   :  { %6585 = vmatpush3.msra.mxu0 %v3768_v48  ;;  %6620 = vmatpush3.msra.mxu1 %v3800_v62  ;;  %v3882_v3 = vld [vmem:[#allocation9 + $0xdd0] sm:$0xff] }
 0x307   :  { %6586 = vmatprep.subr.mxu0 %v3783_v2  ;;  %6621 = vmatprep.subr.mxu1 %v3815_v45  ;;  %v3834_v48 = vld [vmem:[#allocation9 + $0xc50] sm:$0xff]  ;;  %v3849_v2 = vld [vmem:[#allocation9 + $0xcc8] sm:$0xff] }
 0x308   :  { %6587 = vmatpush3.msra.mxu0 %v3767_v47  ;;  %6622 = vmatpush3.msra.mxu1 %v3799_v51  ;;  %v3866_v62 = vld [vmem:[#allocation9 + $0xd50] sm:$0xff]  ;;  %v3881_v45 = vld [vmem:[#allocation9 + $0xdc8] sm:$0xff] }
 0x309   :  { %6588 = vmatprep.subr.mxu0 %v3782_v52  ;;  %6623 = vmatprep.subr.mxu1 %v3814_v46  ;;  %v3833_v47 = vld [vmem:[#allocation9 + $0xc48] sm:$0xff]  ;;  %v3848_v52 = vld [vmem:[#allocation9 + $0xcc0] sm:$0xff] }
 0x30a   :  { %6589 = vmatpush3.msra.mxu0 %v3766_v50  ;;  %6624 = vmatpush3.msra.mxu1 %v3798_v5  ;;  %v3865_v51 = vld [vmem:[#allocation9 + $0xd48] sm:$0xff]  ;;  %v3880_v46 = vld [vmem:[#allocation9 + $0xdc0] sm:$0xff] }
 0x30b   :  { %6590 = vmatprep.subr.mxu0 %v3781_v49  ;;  %6625 = vmatprep.subr.mxu1 %v3813_v18  ;;  %v3832_v50 = vld [vmem:[#allocation9 + $0xc40] sm:$0xff]  ;;  %v3847_v49 = vld [vmem:[#allocation9 + $0xcb8] sm:$0xff] }
 0x30c   :  { %6591 = vmatpush3.msra.mxu0 %v3765_v59  ;;  %6626 = vmatpush3.msra.mxu1 %v3797_v55  ;;  %v3864_v5 = vld [vmem:[#allocation9 + $0xd40] sm:$0xff]  ;;  %v3879_v18 = vld [vmem:[#allocation9 + $0xdb8] sm:$0xff] }
 0x30d   :  { %6592 = vmatprep.subr.mxu0 %v3780_v54  ;;  %6627 = vmatprep.subr.mxu1 %v3812_v7  ;;  %v3831_v59 = vld [vmem:[#allocation9 + $0xc38] sm:$0xff]  ;;  %v3846_v54 = vld [vmem:[#allocation9 + $0xcb0] sm:$0xff] }
 0x30e   :  { %6593 = vmatpush3.msra.mxu0 %v3764_v34  ;;  %6628 = vmatpush3.msra.mxu1 %v3796_v0  ;;  %v3863_v55 = vld [vmem:[#allocation9 + $0xd38] sm:$0xff]  ;;  %v3878_v7 = vld [vmem:[#allocation9 + $0xdb0] sm:$0xff] }
 0x30f   :  { %6594 = vmatprep.subr.mxu0 %v3779_v4  ;;  %6629 = vmatprep.subr.mxu1 %v3811_v61  ;;  %v3830_v34 = vld [vmem:[#allocation9 + $0xc30] sm:$0xff]  ;;  %v3845_v4 = vld [vmem:[#allocation9 + $0xca8] sm:$0xff] }
 0x310   :  { %6595 = vmatpush3.msra.mxu0 %v3763_v33  ;;  %6630 = vmatpush3.msra.mxu1 %v3795_v53  ;;  %v3862_v0 = vld [vmem:[#allocation9 + $0xd30] sm:$0xff]  ;;  %v3877_v61 = vld [vmem:[#allocation9 + $0xda8] sm:$0xff] }
 0x311   :  { %6596 = vmatprep.subr.mxu0 %v3778_v8  ;;  %6631 = vmatprep.subr.mxu1 %v3810_v37  ;;  %v3829_v33 = vld [vmem:[#allocation9 + $0xc28] sm:$0xff]  ;;  %v3844_v8 = vld [vmem:[#allocation9 + $0xca0] sm:$0xff] }
 0x312   :  { %6597 = vmatpush3.msra.mxu0 %v3762_v12  ;;  %6632 = vmatpush3.msra.mxu1 %v3794_v58  ;;  %v3861_v53 = vld [vmem:[#allocation9 + $0xd28] sm:$0xff]  ;;  %v3876_v37 = vld [vmem:[#allocation9 + $0xda0] sm:$0xff] }
 0x313   :  { %6598 = vmatprep.subr.mxu0 %v3777_v35  ;;  %6633 = vmatprep.subr.mxu1 %v3809_v20  ;;  %v3828_v12 = vld [vmem:[#allocation9 + $0xc20] sm:$0xff]  ;;  %v3843_v35 = vld [vmem:[#allocation9 + $0xc98] sm:$0xff] }
 0x314   :  { %6599 = vmatpush3.msra.mxu0 %v3761_v56  ;;  %6634 = vmatpush3.msra.mxu1 %v3793_v57  ;;  %v3860_v58 = vld [vmem:[#allocation9 + $0xd20] sm:$0xff]  ;;  %v3875_v20 = vld [vmem:[#allocation9 + $0xd98] sm:$0xff] }
 0x315   :  { %6600 = vmatprep.subr.mxu0 %v3776_v28  ;;  %6635 = vmatprep.subr.mxu1 %v3808_v23  ;;  %v3827_v56 = vld [vmem:[#allocation9 + $0xc18] sm:$0xff]  ;;  %v3842_v28 = vld [vmem:[#allocation9 + $0xc90] sm:$0xff] }
 0x316   :  { %6601 = vmatpush3.msra.mxu0 %v3760_v60  ;;  %4716 = vmatprep.mubr.f32.mxu0 %v7610_v32  ;;  %v3885_v32 = vld [vmem:[#allocation9 + $0xde8] sm:$0xff]  ;;  %v3859_v57 = vld [vmem:[#allocation9 + $0xd18] sm:$0xff]  ;;  %v3874_v23 = vld [vmem:[#allocation9 + $0xd90] sm:$0xff] }
 0x317   :  { %6636 = vmatpush3.msra.mxu1 %v3792_v22  ;;  %4717 = vmatmul.mubr.f32.vlgmr.msra.gmra.mxu0 %v7608_v40  ;;  %v3869_v40 = vld [vmem:[#allocation9 + $0xd68] sm:$0xff]  ;;  %v3826_v60 = vld [vmem:[#allocation9 + $0xc10] sm:$0xff] }
 0x318   :  { %4786 = vmatprep.mubr.f32.mxu1 %v7614_v38  ;;  %6640 = vmatprep.subr.mxu0 %v3855_v13  ;;  %v3884_v38 = vld [vmem:[#allocation9 + $0xde0] sm:$0xff]  ;;  %v3858_v22 = vld [vmem:[#allocation9 + $0xd10] sm:$0xff]  ;;  %v3841_v13 = vld [vmem:[#allocation9 + $0xc88] sm:$0xff] }
 0x319   :  { %6675 = vmatprep.subr.mxu1 %v3887_v26  ;;  %4787 = vmatmul.mubr.f32.vlgmr.msra.gmra.mxu1 %v7612_v36  ;;  %v3851_v36 = vld [vmem:[#allocation9 + $0xcd8] sm:$0xff]  ;;  %v3873_v26 = vld [vmem:[#allocation9 + $0xd88] sm:$0xff] }
 0x31a   :  { %6641 = vmatpush3.msra.mxu0 %v3839_v30  ;;  %6676 = vmatpush3.msra.mxu1 %v3871_v17  ;;  %v3825_v30 = vld [vmem:[#allocation9 + $0xc08] sm:$0xff] }
 0x31b   :  { %6642 = vmatprep.subr.mxu0 %v3854_v25  ;;  %6677 = vmatprep.subr.mxu1 %v3886_v24  ;;  %v3857_v17 = vld [vmem:[#allocation9 + $0xd08] sm:$0xff]  ;;  %v3840_v25 = vld [vmem:[#allocation9 + $0xc80] sm:$0xff] }
 0x31c   :  { %6643 = vmatpush3.msra.mxu0 %v3838_v29  ;;  %6678 = vmatpush3.msra.mxu1 %v3870_v19  ;;  %v3872_v24 = vld [vmem:[#allocation9 + $0xd80] sm:$0xff] }
 0x31d   :  { %6644 = vmatprep.subr.mxu0 %v3853_v44  ;;  %6679 = vmatprep.subr.mxu1 %v3885_v32  ;;  %v3824_v29 = vld [vmem:[#allocation9 + $0xc00] sm:$0xff]  ;;  %v3919_v44 = vld [vmem:[#allocation9 + $0xef8] sm:$0xff] }
 0x31e   :  { %6645 = vmatpush3.msra.mxu0 %v3837_v21  ;;  %6680 = vmatpush3.msra.mxu1 %v3869_v40  ;;  %v3856_v19 = vld [vmem:[#allocation9 + $0xd00] sm:$0xff]  ;;  %v3951_v32 = vld [vmem:[#allocation9 + $0xff8] sm:$0xff] }
 0x31f   :  { %6646 = vmatprep.subr.mxu0 %v3852_v27  ;;  %6681 = vmatprep.subr.mxu1 %v3884_v38  ;;  %v3903_v21 = vld [vmem:[#allocation9 + $0xe78] sm:$0xff]  ;;  %v3918_v27 = vld [vmem:[#allocation9 + $0xef0] sm:$0xff] }
 0x320   :  { %6647 = vmatpush3.msra.mxu0 %v3836_v31  ;;  %6682 = vmatpush3.msra.mxu1 %v3868_v39  ;;  %v3935_v40 = vld [vmem:[#allocation9 + $0xf78] sm:$0xff]  ;;  %v3950_v38 = vld [vmem:[#allocation9 + $0xff0] sm:$0xff] }
 0x321   :  { %6648 = vmatprep.subr.mxu0 %v3851_v36  ;;  %6683 = vmatprep.subr.mxu1 %v3883_v1  ;;  %v3902_v31 = vld [vmem:[#allocation9 + $0xe70] sm:$0xff]  ;;  %v3917_v36 = vld [vmem:[#allocation9 + $0xee8] sm:$0xff] }
 0x322   :  { %6649 = vmatpush3.msra.mxu0 %v3835_v42  ;;  %6684 = vmatpush3.msra.mxu1 %v3867_v63  ;;  %v3934_v39 = vld [vmem:[#allocation9 + $0xf70] sm:$0xff]  ;;  %v3901_v1 = vld [vmem:[#allocation9 + $0xe68] sm:$0xff]  ;;  %v3916_v42 = vld [vmem:[#allocation9 + $0xee0] sm:$0xff] }
 0x323   :  { %6650 = vmatprep.subr.mxu0 %v3850_v43  ;;  %6685 = vmatprep.subr.mxu1 %v3882_v3  ;;  %v3900_v63 = vld [vmem:[#allocation9 + $0xe60] sm:$0xff]  ;;  %v3947_v3 = vld [vmem:[#allocation9 + $0xfd8] sm:$0xff] }
 0x324   :  { %6651 = vmatpush3.msra.mxu0 %v3834_v48  ;;  %6686 = vmatpush3.msra.mxu1 %v3866_v62  ;;  %v3932_v43 = vld [vmem:[#allocation9 + $0xf60] sm:$0xff]  ;;  %v3899_v48 = vld [vmem:[#allocation9 + $0xe58] sm:$0xff] }
 0x325   :  { %6652 = vmatprep.subr.mxu0 %v3849_v2  ;;  %6687 = vmatprep.subr.mxu1 %v3881_v45  ;;  %v3931_v62 = vld [vmem:[#allocation9 + $0xf58] sm:$0xff]  ;;  %v3914_v2 = vld [vmem:[#allocation9 + $0xed0] sm:$0xff] }
 0x326   :  { %6653 = vmatpush3.msra.mxu0 %v3833_v47  ;;  %6688 = vmatpush3.msra.mxu1 %v3865_v51  ;;  %v3946_v45 = vld [vmem:[#allocation9 + $0xfd0] sm:$0xff] }
 0x327   :  { %6654 = vmatprep.subr.mxu0 %v3848_v52  ;;  %6689 = vmatprep.subr.mxu1 %v3880_v46  ;;  %v3898_v47 = vld [vmem:[#allocation9 + $0xe50] sm:$0xff]  ;;  %v3913_v52 = vld [vmem:[#allocation9 + $0xec8] sm:$0xff] }
 0x328   :  { %6655 = vmatpush3.msra.mxu0 %v3832_v50  ;;  %6690 = vmatpush3.msra.mxu1 %v3864_v5  ;;  %v3930_v51 = vld [vmem:[#allocation9 + $0xf50] sm:$0xff]  ;;  %v3945_v46 = vld [vmem:[#allocation9 + $0xfc8] sm:$0xff] }
 0x329   :  { %6656 = vmatprep.subr.mxu0 %v3847_v49  ;;  %6691 = vmatprep.subr.mxu1 %v3879_v18  ;;  %v3897_v50 = vld [vmem:[#allocation9 + $0xe48] sm:$0xff]  ;;  %v3912_v49 = vld [vmem:[#allocation9 + $0xec0] sm:$0xff] }
 0x32a   :  { %6657 = vmatpush3.msra.mxu0 %v3831_v59  ;;  %6692 = vmatpush3.msra.mxu1 %v3863_v55  ;;  %v3929_v5 = vld [vmem:[#allocation9 + $0xf48] sm:$0xff]  ;;  %v3944_v18 = vld [vmem:[#allocation9 + $0xfc0] sm:$0xff] }
 0x32b   :  { %6658 = vmatprep.subr.mxu0 %v3846_v54  ;;  %6693 = vmatprep.subr.mxu1 %v3878_v7  ;;  %v3896_v59 = vld [vmem:[#allocation9 + $0xe40] sm:$0xff]  ;;  %v3911_v54 = vld [vmem:[#allocation9 + $0xeb8] sm:$0xff] }
 0x32c   :  { %6659 = vmatpush3.msra.mxu0 %v3830_v34  ;;  %6694 = vmatpush3.msra.mxu1 %v3862_v0  ;;  %v3928_v55 = vld [vmem:[#allocation9 + $0xf40] sm:$0xff]  ;;  %v3943_v7 = vld [vmem:[#allocation9 + $0xfb8] sm:$0xff] }
 0x32d   :  { %6660 = vmatprep.subr.mxu0 %v3845_v4  ;;  %6695 = vmatprep.subr.mxu1 %v3877_v61  ;;  %v3895_v34 = vld [vmem:[#allocation9 + $0xe38] sm:$0xff]  ;;  %v3910_v4 = vld [vmem:[#allocation9 + $0xeb0] sm:$0xff] }
 0x32e   :  { %6661 = vmatpush3.msra.mxu0 %v3829_v33  ;;  %6696 = vmatpush3.msra.mxu1 %v3861_v53  ;;  %v3927_v0 = vld [vmem:[#allocation9 + $0xf38] sm:$0xff]  ;;  %v3942_v61 = vld [vmem:[#allocation9 + $0xfb0] sm:$0xff] }
 0x32f   :  { %6662 = vmatprep.subr.mxu0 %v3844_v8  ;;  %6697 = vmatprep.subr.mxu1 %v3876_v37  ;;  %v3894_v33 = vld [vmem:[#allocation9 + $0xe30] sm:$0xff]  ;;  %v3909_v8 = vld [vmem:[#allocation9 + $0xea8] sm:$0xff] }
 0x330   :  { %6663 = vmatpush3.msra.mxu0 %v3828_v12  ;;  %6698 = vmatpush3.msra.mxu1 %v3860_v58  ;;  %v3926_v53 = vld [vmem:[#allocation9 + $0xf30] sm:$0xff]  ;;  %v3941_v37 = vld [vmem:[#allocation9 + $0xfa8] sm:$0xff] }
 0x331   :  { %6664 = vmatprep.subr.mxu0 %v3843_v35  ;;  %6699 = vmatprep.subr.mxu1 %v3875_v20  ;;  %v3893_v12 = vld [vmem:[#allocation9 + $0xe28] sm:$0xff]  ;;  %v3908_v35 = vld [vmem:[#allocation9 + $0xea0] sm:$0xff] }
 0x332   :  { %6665 = vmatpush3.msra.mxu0 %v3827_v56  ;;  %6700 = vmatpush3.msra.mxu1 %v3859_v57  ;;  %v3925_v58 = vld [vmem:[#allocation9 + $0xf28] sm:$0xff]  ;;  %v3940_v20 = vld [vmem:[#allocation9 + $0xfa0] sm:$0xff] }
 0x333   :  { %6666 = vmatprep.subr.mxu0 %v3842_v28  ;;  %6701 = vmatprep.subr.mxu1 %v3874_v23  ;;  %v3892_v56 = vld [vmem:[#allocation9 + $0xe20] sm:$0xff]  ;;  %v3907_v28 = vld [vmem:[#allocation9 + $0xe98] sm:$0xff] }
 0x334   :  { %6667 = vmatpush3.msra.mxu0 %v3826_v60  ;;  %6702 = vmatpush3.msra.mxu1 %v3858_v22  ;;  %v3924_v57 = vld [vmem:[#allocation9 + $0xf20] sm:$0xff]  ;;  %v3939_v23 = vld [vmem:[#allocation9 + $0xf98] sm:$0xff] }
 0x335   :  { %6668 = vmatprep.subr.mxu0 %v3841_v13  ;;  %6703 = vmatprep.subr.mxu1 %v3873_v26  ;;  %v3891_v60 = vld [vmem:[#allocation9 + $0xe18] sm:$0xff]  ;;  %v3906_v13 = vld [vmem:[#allocation9 + $0xe90] sm:$0xff] }
 0x336   :  { %6669 = vmatpush3.msra.mxu0 %v3825_v30  ;;  %6704 = vmatpush3.msra.mxu1 %v3857_v17  ;;  %v3923_v22 = vld [vmem:[#allocation9 + $0xf18] sm:$0xff]  ;;  %v3938_v26 = vld [vmem:[#allocation9 + $0xf90] sm:$0xff] }
 0x337   :  { %6670 = vmatprep.subr.mxu0 %v3840_v25  ;;  %6705 = vmatprep.subr.mxu1 %v3872_v24  ;;  %v3890_v30 = vld [vmem:[#allocation9 + $0xe10] sm:$0xff]  ;;  %v3905_v25 = vld [vmem:[#allocation9 + $0xe88] sm:$0xff] }
 0x338   :  { %6671 = vmatpush3.msra.mxu0 %v3824_v29  ;;  %4856 = vmatprep.mubr.f32.mxu0 %v7669_v9  ;;  %v3949_v9 = vld [vmem:[#allocation9 + $0xfe8] sm:$0xff]  ;;  %v3922_v17 = vld [vmem:[#allocation9 + $0xf10] sm:$0xff] }
 0x339   :  { %6706 = vmatpush3.msra.mxu1 %v3856_v19  ;;  %4857 = vmatmul.mubr.f32.vlgmr.msra.gmra.mxu0 %v7667_v6  ;;  %v3933_v6 = vld [vmem:[#allocation9 + $0xf68] sm:$0xff] }
 0x33a   :  { %4926 = vmatprep.mubr.f32.mxu1 %v7673_v11  ;;  %6710 = vmatprep.subr.mxu0 %v3919_v44  ;;  %v3948_v11 = vld [vmem:[#allocation9 + $0xfe0] sm:$0xff]  ;;  %v3937_v24 = vld [vmem:[#allocation9 + $0xf88] sm:$0xff] }
 0x33b   :  { %6745 = vmatprep.subr.mxu1 %v3951_v32  ;;  %4927 = vmatmul.mubr.f32.vlgmr.msra.gmra.mxu1 %v7671_v10  ;;  %v3915_v10 = vld [vmem:[#allocation9 + $0xed8] sm:$0xff]  ;;  %v3889_v29 = vld [vmem:[#allocation9 + $0xe08] sm:$0xff]  ;;  %v3904_v44 = vld [vmem:[#allocation9 + $0xe80] sm:$0xff] }
 0x33c   :  { %6711 = vmatpush3.msra.mxu0 %v3903_v21  ;;  %6746 = vmatpush3.msra.mxu1 %v3935_v40  ;;  %v3921_v19 = vld [vmem:[#allocation9 + $0xf08] sm:$0xff]  ;;  %v3936_v32 = vld [vmem:[#allocation9 + $0xf80] sm:$0xff] }
 0x33d   :  { %6712 = vmatprep.subr.mxu0 %v3918_v27  ;;  %6747 = vmatprep.subr.mxu1 %v3950_v38  ;;  %v3888_v21 = vld [vmem:[#allocation9 + $0xe00] sm:$0xff]  ;;  %v5132_v27 = vpop.f32.mrf.mxu0  ;;  %v5167_v38 = vpop.f32.mrf.mxu1 }
 0x33e   :  { %6713 = vmatpush3.msra.mxu0 %v3902_v31  ;;  %6748 = vmatpush3.msra.mxu1 %v3934_v39  ;;  %v3920_v40 = vld [vmem:[#allocation9 + $0xf00] sm:$0xff] }
 0x33f   :  { %6714 = vmatprep.subr.mxu0 %v3917_v36  ;;  %6749 = vmatprep.subr.mxu1 %v3949_v9  ;;  %v5133_v31 = vpop.f32.mrf.mxu0  ;;  %v5168_v36 = vpop.f32.mrf.mxu1 }
 0x340   :  { %6715 = vmatpush3.msra.mxu0 %v3901_v1  ;;  %6750 = vmatpush3.msra.mxu1 %v3933_v6 }
 0x341   :  { %6716 = vmatprep.subr.mxu0 %v3916_v42  ;;  %6751 = vmatprep.subr.mxu1 %v3948_v11  ;;  %v5202_v39 = vpop.f32.mrf.mxu0  ;;  %v5237_v9 = vpop.f32.mrf.mxu1 }
 0x342   :  { %6717 = vmatpush3.msra.mxu0 %v3900_v63  ;;  %6752 = vmatpush3.msra.mxu1 %v3932_v43 }
 0x343   :  { %6718 = vmatprep.subr.mxu0 %v3915_v10  ;;  %6753 = vmatprep.subr.mxu1 %v3947_v3  ;;  %v5203_v1 = vpop.f32.mrf.mxu0  ;;  %v5238_v42 = vpop.f32.mrf.mxu1 }
 0x344   :  { %6719 = vmatpush3.msra.mxu0 %v3899_v48  ;;  %6754 = vmatpush3.msra.mxu1 %v3931_v62 }
 0x345   :  { %6720 = vmatprep.subr.mxu0 %v3914_v2  ;;  %6755 = vmatprep.subr.mxu1 %v3946_v45  ;;  %v5272_v6 = vpop.f32.mrf.mxu0  ;;  %v5307_v11 = vpop.f32.mrf.mxu1 }
 0x346   :  { %6721 = vmatpush3.msra.mxu0 %v3898_v47  ;;  %6756 = vmatpush3.msra.mxu1 %v3930_v51 }
 0x347   :  { %6722 = vmatprep.subr.mxu0 %v3913_v52  ;;  %6757 = vmatprep.subr.mxu1 %v3945_v46  ;;  %v5273_v63 = vpop.f32.mrf.mxu0 }
 0x348   :  { %6723 = vmatpush3.msra.mxu0 %v3897_v50  ;;  %6758 = vmatpush3.msra.mxu1 %v3929_v5 }
 0x349   :  { %6724 = vmatprep.subr.mxu0 %v3912_v49  ;;  %6759 = vmatprep.subr.mxu1 %v3944_v18  ;;  %v5342_v43 = vpop.f32.mrf.mxu0 }
 0x34a   :  { %6725 = vmatpush3.msra.mxu0 %v3896_v59  ;;  %6760 = vmatpush3.msra.mxu1 %v3928_v55 }
 0x34b   :  { %6726 = vmatprep.subr.mxu0 %v3911_v54  ;;  %6761 = vmatprep.subr.mxu1 %v3943_v7  ;;  %v5343_v3 = vpop.f32.mrf.mxu0 }
 0x34c   :  { %6727 = vmatpush3.msra.mxu0 %v3895_v34  ;;  %6762 = vmatpush3.msra.mxu1 %v3927_v0 }
 0x34d   :  { %6728 = vmatprep.subr.mxu0 %v3910_v4  ;;  %6763 = vmatprep.subr.mxu1 %v3942_v61  ;;  %v5134_v61 = vadd.f32 %v5133_v31, %v5132_v27 }
 0x34e   :  { %6729 = vmatpush3.msra.mxu0 %v3894_v33  ;;  %6764 = vmatpush3.msra.mxu1 %v3926_v53  ;;  %v5169_v33 = vadd.f32 %v5168_v36, %v5167_v38 }
 0x34f   :  { %6730 = vmatprep.subr.mxu0 %v3909_v8  ;;  %6765 = vmatprep.subr.mxu1 %v3941_v37  ;;  %v5204_v37 = vadd.f32 %v5203_v1, %v5202_v39 }
 0x350   :  { %6731 = vmatpush3.msra.mxu0 %v3893_v12  ;;  %6766 = vmatpush3.msra.mxu1 %v3925_v58  ;;  %v1337_v58 = vadd.f32 %v5169_v33, %v5134_v61 }
 0x351   :  { %6732 = vmatprep.subr.mxu0 %v3908_v35  ;;  %6767 = vmatprep.subr.mxu1 %v3940_v20 }
 0x352   :  { %6733 = vmatpush3.msra.mxu0 %v3892_v56  ;;  %6768 = vmatpush3.msra.mxu1 %v3924_v57  ;;  %v1407_v20 = vadd.f32 %v5204_v37, %v1337_v58  ;;  %v5239_v56 = vadd.f32 %v5238_v42, %v5237_v9 }
 0x353   :  { %6734 = vmatprep.subr.mxu0 %v3907_v28  ;;  %6769 = vmatprep.subr.mxu1 %v3939_v23  ;;  %v5274_v23 = vadd.f32 %v5273_v63, %v5272_v6 }
 0x354   :  { %6735 = vmatpush3.msra.mxu0 %v3891_v60  ;;  %6770 = vmatpush3.msra.mxu1 %v3923_v22  ;;  %v1477_v22 = vadd.f32 %v5239_v56, %v1407_v20 }
 0x355   :  { %6736 = vmatprep.subr.mxu0 %v3906_v13  ;;  %6771 = vmatprep.subr.mxu1 %v3938_v26 }
 0x356   :  { %6737 = vmatpush3.msra.mxu0 %v3890_v30  ;;  %6772 = vmatpush3.msra.mxu1 %v3922_v17  ;;  %v1547_v26 = vadd.f32 %v5274_v23, %v1477_v22 }
 0x357   :  { %6738 = vmatprep.subr.mxu0 %v3905_v25  ;;  %6773 = vmatprep.subr.mxu1 %v3937_v24  ;;  %v5344_v24 = vadd.f32 %v5343_v3, %v5342_v43 }
 0x358   :  { %6739 = vmatpush3.msra.mxu0 %v3889_v29  ;;  %6774 = vmatpush3.msra.mxu1 %v3921_v19 }
 0x359   :  { %6740 = vmatprep.subr.mxu0 %v3904_v44  ;;  %6775 = vmatprep.subr.mxu1 %v3936_v32 }
 0x35a   :  { %6741 = vmatpush3.msra.mxu0 %v3888_v21  ;;  %4996 = vmatprep.mubr.f32.mxu0 %v7677_v14  ;;  %v5308_v14 = vpop.f32.mrf.mxu1 }
 0x35b   :  { %6776 = vmatpush3.msra.mxu1 %v3920_v40  ;;  %5066 = vmatprep.mubr.f32.mxu1 %v7681_v16  ;;  %v5412_v16 = vpop.f32.mrf.mxu0  ;;  %v5309_v30 = vadd.f32 %v5308_v14, %v5307_v11 }
 0x35c   :  { %4997 = vmatmul.mubr.f32.vlgmr.msra.gmra.mxu0 %v7675_v41  ;;  %5067 = vmatmul.mubr.f32.vlgmr.msra.gmra.mxu1 %v7679_v15  ;;  %v5377_v10 = vpop.f32.mrf.mxu1 }
 0x35d   :  { %v5413_v62 = vpop.f32.mrf.mxu0  ;;  %v1617_v19 = vadd.f32 %v5309_v30, %v1547_v26 }
 0x35e   :  { %v5378_v48 = vpop.f32.mrf.mxu1  ;;  %v5414_v38 = vadd.f32 %v5413_v62, %v5412_v16 }
 0x35f   :  { %v5482_v15 = vpop.f32.mrf.mxu0  ;;  %v1687_v32 = vadd.f32 %v5344_v24, %v1617_v19  ;;  %v5379_v21 = vadd.f32 %v5378_v48, %v5377_v10 }
 0x360   :  { %v5447_v41 = vpop.f32.mrf.mxu1 }
 0x361   :  { %v5483_v47 = vpop.f32.mrf.mxu0  ;;  %v1757_v39 = vadd.f32 %v5379_v21, %v1687_v32 }
 0x362   :  { %v5448_v2 = vpop.f32.mrf.mxu1  ;;  %v5484_v11 = vadd.f32 %v5483_v47, %v5482_v15 }
 0x363   :  { %v5552_v51 = vpop.f32.mrf.mxu0  ;;  %v1827_v9 = vadd.f32 %v5414_v38, %v1757_v39  ;;  %v5449_v1 = vadd.f32 %v5448_v2, %v5447_v41 }
 0x364   :  { %v5517_v45 = vpop.f32.mrf.mxu1 }
 0x365   :  { %v5553_v50 = vpop.f32.mrf.mxu0  ;;  %v1897_v43 = vadd.f32 %v5449_v1, %v1827_v9 }
 0x366   :  { %v5518_v52 = vpop.f32.mrf.mxu1  ;;  %v5554_v62 = vadd.f32 %v5553_v50, %v5552_v51 }
 0x367   :  { %v5622_v5 = vpop.f32.mrf.mxu0  ;;  %v1967_v10 = vadd.f32 %v5484_v11, %v1897_v43  ;;  %v5519_v3 = vadd.f32 %v5518_v52, %v5517_v45 }
 0x368   :  { %v5587_v46 = vpop.f32.mrf.mxu1 }
 0x369   :  { %v5623_v59 = vpop.f32.mrf.mxu0  ;;  %v2037_v41 = vadd.f32 %v5519_v3, %v1967_v10 }
 0x36a   :  { %v5588_v49 = vpop.f32.mrf.mxu1  ;;  %v5624_v58 = vadd.f32 %v5623_v59, %v5622_v5 }
 0x36b   :  { %v7782_v55 = vpop.f32.mrf.mxu0  ;;  %v2107_v33 = vadd.f32 %v5554_v62, %v2037_v41  ;;  %v5589_v37 = vadd.f32 %v5588_v49, %v5587_v46 }
 0x36c   :  { %v7780_v18 = vpop.f32.mrf.mxu1 }
 0x36d   :  { %v7786_v34 = vpop.f32.mrf.mxu0  ;;  %v2177_v56 = vadd.f32 %v5589_v37, %v2107_v33 }
 0x36e   :  { %v5658_v54 = vpop.f32.mrf.mxu1  ;;  %v5694_v22 = vadd.f32 %v7786_v34, %v7782_v55 }
 0x36f   :  { %v7788_v0 = vpop.f32.mrf.mxu0  ;;  %v2247_v52 = vadd.f32 %v5624_v58, %v2177_v56  ;;  %v5659_v23 = vadd.f32 %v5658_v54, %v7780_v18 }
 0x370   :  { %v7784_v7 = vpop.f32.mrf.mxu1 }
 0x371   :  { %v7794_v8 = vpop.f32.mrf.mxu0  ;;  %v2317_v30 = vadd.f32 %v5659_v23, %v2247_v52 }
 0x372   :  { %v7790_v4 = vpop.f32.mrf.mxu1  ;;  %v5764_v19 = vadd.f32 %v7794_v8, %v7788_v0 }
 0x373   :  { %v7796_v12 = vpop.f32.mrf.mxu0  ;;  %v2387_v49 = vadd.f32 %v5694_v22, %v2317_v30  ;;  %v5729_v24 = vadd.f32 %v7790_v4, %v7784_v7 }
 0x374   :  { %v7792_v53 = vpop.f32.mrf.mxu1 }
 0x375   :  { %v7802_v28 = vpop.f32.mrf.mxu0  ;;  %v2457_v54 = vadd.f32 %v5729_v24, %v2387_v49 }
 0x376   :  { %v7798_v35 = vpop.f32.mrf.mxu1  ;;  %v5834_v7 = vadd.f32 %v7802_v28, %v7796_v12 }
 0x377   :  { %v7804_v60 = vpop.f32.mrf.mxu0  ;;  %v2527_v9 = vadd.f32 %v5764_v19, %v2457_v54  ;;  %v5799_v55 = vadd.f32 %v7798_v35, %v7792_v53 }
 0x378   :  { %v7800_v57 = vpop.f32.mrf.mxu1 }
 0x379   :  { %v7810_v25 = vpop.f32.mrf.mxu0  ;;  %v2597_v0 = vadd.f32 %v5799_v55, %v2527_v9 }
 0x37a   :  { %v7806_v13 = vpop.f32.mrf.mxu1  ;;  %v5904_v53 = vadd.f32 %v7810_v25, %v7804_v60 }
 0x37b   :  { %v7812_v29 = vpop.f32.mrf.mxu0  ;;  %v2667_v62 = vadd.f32 %v5834_v7, %v2597_v0  ;;  %v5869_v41 = vadd.f32 %v7806_v13, %v7800_v57 }
 0x37c   :  { %v7808_v17 = vpop.f32.mrf.mxu1 }
 0x37d   :  { %v7818_v27 = vpop.f32.mrf.mxu0  ;;  %v2737_v12 = vadd.f32 %v5869_v41, %v2667_v62 }
 0x37e   :  { %v7814_v44 = vpop.f32.mrf.mxu1  ;;  %v5974_v57 = vadd.f32 %v7818_v27, %v7812_v29 }
 0x37f   :  { %v7820_v31 = vpop.f32.mrf.mxu0  ;;  %v2807_v23 = vadd.f32 %v5904_v53, %v2737_v12 }
 0x380   :  { %v7816_v40 = vpop.f32.mrf.mxu1 }
 0x381   :  { %v7826_v42 = vpop.f32.mrf.mxu0 }
 0x382   :  { %v7822_v36 = vpop.f32.mrf.mxu1 }
 0x383   :  { %v7828_v63 = vpop.f32.mrf.mxu0 }
 0x384   :  { %v7824_v6 = vpop.f32.mrf.mxu1 }
 0x385   :  { %v7834_v48 = vpop.f32.mrf.mxu0 }
 0x386   :  { %v7830_v14 = vpop.f32.mrf.mxu1 }
 0x387   :  { %v7836_v61 = vpop.f32.mrf.mxu0 }
 0x388   :  { %v7832_v16 = vpop.f32.mrf.mxu1 }
 0x389   :  { %v7842_v47 = vpop.f32.mrf.mxu0 }
 0x38a   :  { %v7838_v2 = vpop.f32.mrf.mxu1 }
 0x38b   :  { %v6252_v20 = vpop.f32.mrf.mxu0 }
 0x38c   :  { %v7840_v15 = vpop.f32.mrf.mxu1 }
 0x38d   :  { %v6253_v50 = vpop.f32.mrf.mxu0 }
 0x38e   :  { %v7844_v45 = vpop.f32.mrf.mxu1  ;;  %v6254_v32 = vadd.f32 %v6253_v50, %v6252_v20 }
 0x38f   :  { %v6322_v26 = vpop.f32.mrf.mxu0  ;;  %v6219_v41 = vadd.f32 %v7844_v45, %v7840_v15 }
 0x390   :  { %v6287_v51 = vpop.f32.mrf.mxu1 }
 0x391   :  { %v6323_v59 = vpop.f32.mrf.mxu0 }
 0x392   :  { %v6288_v46 = vpop.f32.mrf.mxu1  ;;  %v6324_v38 = vadd.f32 %v6323_v59, %v6322_v26 }
 0x393   :  { %v6289_v21 = vadd.f32 %v6288_v46, %v6287_v51  ;;  %v6392_v18 = vpop.f32.mrf.mxu0  ;;  %v5939_v51 = vadd.f32 %v7814_v44, %v7808_v17  ;;  %v6044_v17 = vadd.f32 %v7826_v42, %v7820_v31 }
 0x394   :  { %v6357_v5 = vpop.f32.mrf.mxu1 }
 0x395   :  { %v4089_v34 = vadd.f32 %v6289_v21, %v6254_v32  ;;  %v6393_v11 = vpop.f32.mrf.mxu0  ;;  %v2877_v60 = vadd.f32 %v5939_v51, %v2807_v23 }
 0x396   :  { %v6358_v39 = vpop.f32.mrf.mxu1  ;;  %v6394_v8 = vadd.f32 %v6393_v11, %v6392_v18 }
 0x397   :  { %v4159_v4 = vadd.f32 %v6324_v38, %v4089_v34  ;;  %v6359_v43 = vadd.f32 %v6358_v39, %v6357_v5  ;;  %v6462_v10 = vpop.f32.mrf.mxu0  ;;  %v2947_v24 = vadd.f32 %v5974_v57, %v2877_v60  ;;  %v6009_v5 = vadd.f32 %v7822_v36, %v7816_v40 }
 0x398   :  { %v6427_v1 = vpop.f32.mrf.mxu1  ;;  %v6079_v39 = vadd.f32 %v7830_v14, %v7824_v6  ;;  %v6114_v40 = vadd.f32 %v7834_v48, %v7828_v63 }
 0x399   :  { %v4229_v33 = vadd.f32 %v6359_v43, %v4159_v4  ;;  %v6463_v58 = vpop.f32.mrf.mxu0  ;;  %v3017_v29 = vadd.f32 %v6009_v5, %v2947_v24  ;;  %v6149_v4 = vadd.f32 %v7838_v2, %v7832_v16 }
 0x39a   :  { %v6428_v3 = vpop.f32.mrf.mxu1  ;;  %v6464_v28 = vadd.f32 %v6463_v58, %v6462_v10  ;;  %v6184_v10 = vadd.f32 %v7842_v47, %v7836_v61  ;;  %v5074_v61 = vstv %s7885_s0 }
 0x39b   :  { %v4299_v35 = vadd.f32 %v6394_v8, %v4229_v33  ;;  %v6429_v20 = vadd.f32 %v6428_v3, %v6427_v1  ;;  %v3087_v38 = vadd.f32 %v6044_v17, %v3017_v29 }
 0x39c   :  { %v6497_v37 = vpop.f32.mrf.mxu1 }
 0x39d   :  { %v4369_v50 = vadd.f32 %v6429_v20, %v4299_v35  ;;  %v3157_v11 = vadd.f32 %v6079_v39, %v3087_v38 }
 0x39e   :  { %v6498_v52 = vpop.f32.mrf.mxu1 }
 0x39f   :  { %v4439_v13 = vadd.f32 %v6464_v28, %v4369_v50  ;;  %v6499_v30 = vadd.f32 %v6498_v52, %v6497_v37  ;;  %v3227_v7 = vadd.f32 %v6114_v40, %v3157_v11 }
 0x3a1   :  { %v4509_v59 = vadd.f32 %v6499_v30, %v4439_v13  ;;  %v3297_v3 = vadd.f32 %v6149_v4, %v3227_v7 }
 0x3a3   :  { %v3367_v48 = vadd.f32 %v6184_v10, %v3297_v3 }
 0x3a5   :  { %v3437_v16 = vadd.f32 %v6219_v41, %v3367_v48 }
 0x3b5   :  { %v6532_v56 = vpop.f32.mrf.mxu0 }
 0x3b7   :  { %v6567_v22 = vpop.f32.mrf.mxu1  ;;  %v6533_v26 = vpop.f32.mrf.mxu0 }
 0x3b8   :  { %v6534_v25 = vadd.f32 %v6533_v26, %v6532_v56 }
 0x3b9   :  { %v6568_v49 = vpop.f32.mrf.mxu1 }
 0x3ba   :  { %v4579_v44 = vadd.f32 %v6534_v25, %v4509_v59  ;;  %v6569_v21 = vadd.f32 %v6568_v49, %v6567_v22 }
 0x3bc   :  { %v4649_v9 = vadd.f32 %v6569_v21, %v4579_v44 }
 0x3d7   :  { %v6602_v46 = vpop.f32.mrf.mxu0 }
 0x3d9   :  { %v6637_v19 = vpop.f32.mrf.mxu1  ;;  %v6603_v32 = vpop.f32.mrf.mxu0 }
 0x3da   :  { %v6604_v27 = vadd.f32 %v6603_v32, %v6602_v46 }
 0x3db   :  { %v6638_v54 = vpop.f32.mrf.mxu1 }
 0x3dc   :  { %v4719_v36 = vadd.f32 %v6604_v27, %v4649_v9  ;;  %v6639_v1 = vadd.f32 %v6638_v54, %v6637_v19 }
 0x3de   :  { %v4789_v43 = vadd.f32 %v6639_v1, %v4719_v36 }
 0x3f9   :  { %v6672_v18 = vpop.f32.mrf.mxu0 }
 0x3fb   :  { %v6707_v55 = vpop.f32.mrf.mxu1  ;;  %v6673_v34 = vpop.f32.mrf.mxu0 }
 0x3fc   :  { %v6674_v31 = vadd.f32 %v6673_v34, %v6672_v18 }
 0x3fd   :  { %v6708_v42 = vpop.f32.mrf.mxu1 }
 0x3fe   :  { %v4859_v6 = vadd.f32 %v6674_v31, %v4789_v43  ;;  %v6709_v14 = vadd.f32 %v6708_v42, %v6707_v55 }
 0x400   :  { %v4929_v33 = vadd.f32 %v6709_v14, %v4859_v6 }
 0x41c   :  { %v6742_v0 = vpop.f32.mrf.mxu0  ;;  %v6777_v8 = vpop.f32.mrf.mxu1 }
 0x41e   :  { %v6743_v62 = vpop.f32.mrf.mxu0  ;;  %v6778_v63 = vpop.f32.mrf.mxu1 }
 0x41f   :  { %v6744_v37 = vadd.f32 %v6743_v62, %v6742_v0  ;;  %v6779_v53 = vadd.f32 %v6778_v63, %v6777_v8 }
 0x421   :  { %v4999_v58 = vadd.f32 %v6744_v37, %v4929_v33 }
 0x423   :  { %v5069_v2 = vadd.f32 %v6779_v53, %v4999_v58 }
 0x425   :  { %v5072_v47 = vadd.f32 %v5069_v2, %v3437_v16 }
 0x427   :  { %v5075_v35 = vadd.f32 %v5074_v61, %v5072_v47 }
 0x429   :  { %v5099_v20 = vmul.f32 -1.442695, %v5075_v35 }
 0x42b   :  { %6787 = vpow2.f32 %v5099_v20 }
 0x438   :  { %v6788_v56 = vpop.eup %6787 }
 0x439   :  { %v5079_v12 = vadd.f32 1.0, %v6788_v56 }
 0x43b   :  { %6789 = vrcp.f32 %v5079_v12 }
 0x448   :  { %v6790_v15 = vpop.eup %6789 }
 0x449   :  { %5082 = vst [vmem:[#allocation10] sm:$0x1] %v6790_v15 }
 0x44a   :  { %7374 = shalt.err (!%p7371_p5)
}
 0x44b   :  { %5092 = dma.vmem_to_hbm [thread:$0]  %s5090_s6, 16, %s7889_s4, [#allocation6]  }
 0x44c   :  { %7387 = dma.done.wait [#allocation6], 16  }
 0x44d   :  { %7388 = vsyncadd [#allocation6], 4294967280 }
 0x44e   :  { %5096 = vsyncpa [#allocation5], 1 }
 0x44f   :  { %5097 = vsyncpa [#allocation8], 1 }
 0x450   :  { %5098 = vsyncpa [#allocation6], 1 }

</bundles_post_ra>
